<compile_context>
chip_gen: v7x
topology: tpu7x:2x2x1
jax: 0.10.0
libtpu: 0.0.40
codegen_flags: <defaults>
</compile_context>

<pallas_src>
import functools
import math

import numpy as np
import jax
import jax.numpy as jnp
from jax.experimental import pallas as pl
from jax.experimental.pallas import tpu as pltpu

BIG_NEG = -1e30          # stand-in for float('-inf') in the attention mask
LN_EPS = 1e-5            # PyTorch TransformerEncoderLayer default layer_norm_eps
LOG_2PI = math.log(2.0 * math.pi)


def _nan_to_num(x, nan, posinf, neginf):
    x = jnp.where(jnp.isnan(x), nan, x)
    x = jnp.where(x == jnp.inf, posinf, x)
    x = jnp.where(x == -jnp.inf, neginf, x)
    return x


def _tensorcores_per_chip():
    """v7x exposes 2 TensorCores per chip; v5e/v6e have one (fold the batch there)."""
    try:
        kind = jax.devices()[0].device_kind.lower()
    except Exception:
        return 1
    return 2 if ("v7" in kind or "7x" in kind) else 1


# --------------------------------------------------------------------------
# Fused full-forward kernel: one grid step == one group of NB folded batch elements
# --------------------------------------------------------------------------

def _gpo_kernel(inp_ref, tgt_ref, same_ref, we0_ref, wdm_ref, wff_ref, b_ref, o_ref,
                *, cfg, layout):
    f32 = jnp.float32
    NB, Lp, Ncp = cfg['NB'], cfg['Lp'], cfg['Ncp']
    dim_x, dim_y = cfg['dim_x'], cfg['dim_y']
    d_model, Dh, nhead = cfg['d_model'], cfg['Dh'], cfg['nhead']
    dim_ff, num_layers, emb_depth = cfg['dim_ff'], cfg['num_layers'], cfg['emb_depth']
    NBL = NB * Lp

    W_dm = wdm_ref[...]          # (d_model, *) packed weight slab
    W_ff = wff_ref[...]          # (dim_ff,  *) packed weight slab

    def brow(r, width):          # one packed bias / LayerNorm row -> (1, width)
        return b_ref[r][:, 0:width]

    def layernorm(v, rg, rb):
        mu = jnp.mean(v, axis=-1, keepdims=True)
        vc = v - mu
        var = jnp.mean(vc * vc, axis=-1, keepdims=True)
        return vc * jax.lax.rsqrt(var + LN_EPS) * brow(rg, d_model) + brow(rb, d_model)

    x_in = inp_ref[...]                                            # (NBL, dim_x+dim_y)

    # ---- additive attention bias built once in-kernel (no keybias operand) ----
    # per-key padding flag as a ROW vector via a tiny contraction (avoids a transpose)
    xsum_row = jax.lax.dot_general(jnp.ones((1, dim_x), f32), x_in[:, 0:dim_x],
                                   (((1,), (1,)), ((), ())),
                                   preferred_element_type=f32)      # (1, NBL)
    col_ids = jax.lax.broadcasted_iota(jnp.int32, (NBL, NBL), 1)
    if NB > 1:
        row_ids = jax.lax.broadcasted_iota(jnp.int32, (NBL, NBL), 0)
    conds = []
    for b in range(NB):
        lo, hi = b * Lp, (b + 1) * Lp
        conds.append((col_ids >= lo + Ncp) & (col_ids < hi))        # target columns masked
        if NB > 1:                                                  # block-diagonal batches
            conds.append(((row_ids >= lo) & (row_ids < hi)) &
                         ((col_ids < lo) | (col_ids >= hi)))
    masked = conds[0]
    for c in conds[1:]:
        masked = masked | c
    masked = masked | (xsum_row == 0.0)                             # key padding (incl. pad rows)
    bias = jnp.where(masked, BIG_NEG, 0.0).astype(f32)              # (NBL, NBL)

    # ---- embedder MLP (Linear -> ReLU -> ... -> Linear) ----
    x = jnp.dot(x_in, we0_ref[...], preferred_element_type=f32) \
        + brow(layout['emb_b_row'][0], d_model)
    for i in range(1, emb_depth):
        x = jnp.maximum(x, 0.0)
        off = layout['emb_w_off'][i - 1]
        x = jnp.dot(x, W_dm[:, off:off + d_model], preferred_element_type=f32) \
            + brow(layout['emb_b_row'][i], d_model)

    # ---- transformer encoder (post-LN, ReLU FFN, dropout = identity / eval) ----
    for l in range(num_layers):
        qoff = layout['qkv_w_off'][l]
        qkv = jnp.dot(x, W_dm[:, qoff:qoff + 3 * d_model], preferred_element_type=f32) \
              + brow(layout['qkv_b_row'][l], 3 * d_model)           # scale pre-folded into Wq/bq
        ctx_parts = []
        for h in range(nhead):
            q = qkv[:, h * Dh:(h + 1) * Dh]
            k = qkv[:, d_model + h * Dh:d_model + (h + 1) * Dh]
            v = qkv[:, 2 * d_model + h * Dh:2 * d_model + (h + 1) * Dh]
            s = jax.lax.dot_general(q, k, (((1,), (1,)), ((), ())),
                                    preferred_element_type=f32) + bias
            s = s - jnp.max(s, axis=-1, keepdims=True)
            p = jnp.exp(s)
            p = p * pl.reciprocal(jnp.sum(p, axis=-1, keepdims=True), approx=True)
            ctx_parts.append(jnp.dot(p, v, preferred_element_type=f32))
        ctx = jnp.concatenate(ctx_parts, axis=-1)                   # (NBL, d_model) lane-packed
        ooff = layout['wo_off'][l]
        attn = jnp.dot(ctx, W_dm[:, ooff:ooff + d_model], preferred_element_type=f32) \
               + brow(layout['bo_row'][l], d_model)
        rg1, rb1, rg2, rb2 = layout['ln_rows'][l]
        x = layernorm(x + attn, rg1, rb1)
        w1off = layout['w1_off'][l]
        ff = jnp.dot(x, W_dm[:, w1off:w1off + dim_ff], preferred_element_type=f32) \
             + brow(layout['b1_row'][l], dim_ff)
        ff = jnp.maximum(ff, 0.0)
        w2off = layout['w2_off'][l]
        ff = jnp.dot(ff, W_ff[:, w2off:w2off + d_model], preferred_element_type=f32) \
             + brow(layout['b2_row'][l], d_model)
        x = layernorm(x + ff, rg2, rb2)

    # ---- z_target = target rows of every folded batch (tile-aligned static slices) ----
    zs = [x[b * Lp + Ncp:(b + 1) * Lp, :] for b in range(NB)]
    z = zs[0] if NB == 1 else jnp.concatenate(zs, axis=0)           # (NB*Nt, d_model)

    # ---- predictor: Linear -> ReLU -> Linear ----
    p1 = layout['pw1_off']
    h1 = jnp.dot(z, W_dm[:, p1:p1 + dim_ff], preferred_element_type=f32) \
         + brow(layout['pb1_row'], dim_ff)
    h1 = jnp.maximum(h1, 0.0)
    p2 = layout['pw2_off']
    out2 = jnp.dot(h1, W_ff[:, p2:p2 + 2 * dim_y], preferred_element_type=f32) \
           + brow(layout['pb2_row'], 2 * dim_y)
    mean_raw = out2[:, 0:dim_y]
    std_raw = out2[:, dim_y:2 * dim_y]

    # ---- segmented softmax over options + Normal log-prob + length masking ----
    tgt = tgt_ref[...]                                              # yt | valid | rowmask
    yt = tgt[:, 0:dim_y]
    valid = tgt[:, dim_y:dim_y + 1]
    rowmask = tgt[:, dim_y + 1:dim_y + 2]

    m_masked = jnp.where(valid > 0.0, mean_raw, BIG_NEG)            # keep invalid rows out of max
    e = jnp.exp(m_masked - jnp.max(m_masked, axis=0, keepdims=True))
    e = jnp.where(valid > 0.0, e, 0.0)
    denom = jnp.dot(same_ref[...], e, preferred_element_type=f32)   # per-segment sums
    sm = jnp.where(valid > 0.0, e / jnp.maximum(denom, 1e-30), 0.0)

    mean = _nan_to_num(sm, 0.0, 1e6, -1e6)                          # torch.nan_to_num on mean
    std = jnp.exp(std_raw)                                          # bound_std=False branch
    std = _nan_to_num(std, 1.0, 1e6, 1e-6)                          # torch.nan_to_num on std
    std = jnp.maximum(std, 1e-6)                                    # clamp(min=1e-6)

    zz = (yt - mean) / std
    lp = (-0.5 * zz * zz - jnp.log(std) - 0.5 * LOG_2PI) * rowmask  # mask rows >= real lens
    ssum = jnp.sum(jnp.sum(lp, axis=-1, keepdims=True), axis=0, keepdims=True)   # (1, 1)
    o_ref[...] = jnp.broadcast_to(ssum, o_ref.shape)                # dense (8,128) store


# --------------------------------------------------------------------------
# Parameters: deterministic synthetic init, packed into a few lane-dense slabs.
# PyTorch Linear(in,out) weights are stored (in,out); the 1/sqrt(Dh) attention
# scale is folded into Wq / bq at pack time (outside jit).
# --------------------------------------------------------------------------

def init_packed_params(key, *, dim_x, dim_y, d_model, emb_depth, dim_ff, nhead, num_layers):
    rng = iter(jax.random.split(key, 8 * num_layers + 2 * emb_depth + 8))
    Dh = d_model // nhead
    scale = 1.0 / math.sqrt(Dh)
    dim_in = dim_x + dim_y
    BW = max(3 * d_model, dim_ff, 2 * dim_y)

    def dense(din, dout):
        k1, k2 = jax.random.split(next(rng))
        w = np.asarray(jax.random.normal(k1, (din, dout), jnp.float32)) / math.sqrt(din)
        b = np.asarray(jax.random.normal(k2, (dout,), jnp.float32)) * 0.01
        return w, b

    dm_cols, ff_cols, bias_rows = [], [], []

    def add_dm(w):
        off = sum(c.shape[1] for c in dm_cols); dm_cols.append(w); return off

    def add_ff(w):
        off = sum(c.shape[1] for c in ff_cols); ff_cols.append(w); return off

    def add_b(vec):
        row = np.zeros((1, BW), np.float32); row[0, :vec.shape[0]] = vec
        bias_rows.append(row); return len(bias_rows) - 1

    layout = dict(emb_w_off=[], emb_b_row=[], qkv_w_off=[], qkv_b_row=[],
                  wo_off=[], bo_row=[], w1_off=[], b1_row=[],
                  w2_off=[], b2_row=[], ln_rows=[])

    # embedder = build_mlp(dim_x+dim_y, d_model, d_model, emb_depth)
    w_e0, b_e0 = dense(dim_in, d_model)
    layout['emb_b_row'].append(add_b(b_e0))
    for _ in range(emb_depth - 1):
        w, b = dense(d_model, d_model)
        layout['emb_w_off'].append(add_dm(w))
        layout['emb_b_row'].append(add_b(b))

    # TransformerEncoderLayer x num_layers (post-LN, ReLU FFN)
    for _ in range(num_layers):
        wq, bq = dense(d_model, d_model)
        wk, bk = dense(d_model, d_model)
        wv, bv = dense(d_model, d_model)
        wo, bo = dense(d_model, d_model)
        w1, b1 = dense(d_model, dim_ff)
        w2, b2 = dense(dim_ff, d_model)
        layout['qkv_w_off'].append(add_dm(np.concatenate([wq * scale, wk, wv], axis=1)))
        layout['qkv_b_row'].append(add_b(np.concatenate([bq * scale, bk, bv], axis=0)))
        layout['wo_off'].append(add_dm(wo)); layout['bo_row'].append(add_b(bo))
        layout['w1_off'].append(add_dm(w1)); layout['b1_row'].append(add_b(b1))
        layout['w2_off'].append(add_ff(w2)); layout['b2_row'].append(add_b(b2))
        layout['ln_rows'].append((add_b(np.ones(d_model, np.float32)),
                                  add_b(np.zeros(d_model, np.float32)),
                                  add_b(np.ones(d_model, np.float32)),
                                  add_b(np.zeros(d_model, np.float32))))

    # predictor = Linear(d_model, dim_ff) -> ReLU -> Linear(dim_ff, 2*dim_y)
    pw1, pb1 = dense(d_model, dim_ff)
    pw2, pb2 = dense(dim_ff, 2 * dim_y)
    layout['pw1_off'] = add_dm(pw1); layout['pb1_row'] = add_b(pb1)
    layout['pw2_off'] = add_ff(pw2); layout['pb2_row'] = add_b(pb2)

    packed = dict(
        w_e0=jnp.asarray(w_e0),                                     # (dim_in, d_model)
        w_dm=jnp.asarray(np.concatenate(dm_cols, axis=1)),          # (d_model, *)
        w_ff=jnp.asarray(np.concatenate(ff_cols, axis=1)),          # (dim_ff, *)
        b_slab=jnp.asarray(np.stack(bias_rows, axis=0)),            # (R, 1, BW)
    )
    return packed, layout


# --------------------------------------------------------------------------
# GPO forward (autoreg=False, bound_std=False, dropout=0 / eval, reduce_ll=True)
# --------------------------------------------------------------------------

def make_gpo_forward(packed, layout, cfg):
    B, NB = cfg['B'], cfg['NB']
    G = B // NB
    Nc, Ncp, Nt, Lp = cfg['Nc'], cfg['Ncp'], cfg['Nt'], cfg['Lp']
    dim_x, dim_y = cfg['dim_x'], cfg['dim_y']
    dim_in = dim_x + dim_y
    NBL, NBT = NB * Lp, NB * Nt

    kernel = functools.partial(_gpo_kernel, cfg=cfg, layout=layout)

    call = pl.pallas_call(
        kernel,
        out_shape=jax.ShapeDtypeStruct((G, 8, 128), jnp.float32),
        grid=(G,),
        in_specs=[
            pl.BlockSpec((NBL, dim_in), lambda g: (g, 0)),          # folded input rows
            pl.BlockSpec((NBT, dim_y + 2), lambda g: (g, 0)),       # yt | valid | rowmask
            pl.BlockSpec((NBT, NBT), lambda g: (g, 0)),             # block-diag `same`
            pl.BlockSpec(packed['w_e0'].shape, lambda g: (0, 0)),
            pl.BlockSpec(packed['w_dm'].shape, lambda g: (0, 0)),
            pl.BlockSpec(packed['w_ff'].shape, lambda g: (0, 0)),
            pl.BlockSpec(packed['b_slab'].shape, lambda g: (0, 0, 0)),
        ],
        out_specs=pl.BlockSpec((None, 8, 128), lambda g: (g, 0, 0)),
        compiler_params=pltpu.CompilerParams(dimension_semantics=("parallel",)),
    )

    @jax.jit
    def fwd(params, xc, yc, xt, yt, same2d, vrmask):
        # construct_input (autoreg=False), with dummy zero context rows padding Nc -> Ncp
        # (their keys are removed by the in-kernel padding mask, as in the reference).
        x_y_ctx = jnp.concatenate([xc, yc], axis=-1)
        ctx_pad = jnp.zeros((B, Ncp - Nc, dim_in), jnp.float32)
        x_0_tar = jnp.concatenate([xt, jnp.zeros_like(yt)], axis=-1)
        inp2d = jnp.concatenate([x_y_ctx, ctx_pad, x_0_tar], axis=1).reshape(B * Lp, dim_in)
        tgt = jnp.concatenate([yt.reshape(B * Nt, dim_y), vrmask], axis=-1)
        part = call(inp2d, tgt, same2d,
                    params['w_e0'], params['w_dm'], params['w_ff'], params['b_slab'])
        tar_ll = jnp.sum(part[:, 0, 0]) / (B * Nt)                  # masked_lp.sum(-1).mean()
        return {'tar_ll': tar_ll, 'loss': -tar_ll}

    return fwd


# --------------------------------------------------------------------------
# Demo
# --------------------------------------------------------------------------

if __name__ == "__main__":
    dim_x, dim_y = 3, 2
    d_model, emb_depth, dim_ff, nhead, num_layers = 32, 2, 64, 4, 2
    B, Nc, Nt = 2, 6, 8

    # fold both batch elements into one grid step on single-TC chips (v5e/v6e);
    # keep grid=(B,) "parallel" on v7x so each TensorCore takes one batch element.
    NB = 1 if _tensorcores_per_chip() >= 2 else B
    Ncp = ((Nc + 7) // 8) * 8              # pad context so the target block is tile-aligned
    cfg = dict(B=B, NB=NB, Nc=Nc, Ncp=Ncp, Nt=Nt, Lp=Ncp + Nt,
               dim_x=dim_x, dim_y=dim_y, d_model=d_model, Dh=d_model // nhead,
               nhead=nhead, dim_ff=dim_ff, num_layers=num_layers, emb_depth=emb_depth)

    root = jax.random.PRNGKey(0)
    kp, kxc, kyc, kxt, kyt = jax.random.split(root, 5)
    packed, layout = init_packed_params(kp, dim_x=dim_x, dim_y=dim_y, d_model=d_model,
                                        emb_depth=emb_depth, dim_ff=dim_ff, nhead=nhead,
                                        num_layers=num_layers)

    xc = jax.random.normal(kxc, (B, Nc, dim_x), jnp.float32)
    yc = jax.random.normal(kyc, (B, Nc, dim_y), jnp.float32)
    xt = jax.random.normal(kxt, (B, Nt, dim_x), jnp.float32)
    yt = jax.random.normal(kyt, (B, Nt, dim_y), jnp.float32)

    # tarqlen -> per-option segment ids -> `same` / `valid` masks (host-side, static)
    tarqlen = [[3, 5], [4, 4]]
    seg_ids = np.full((B, Nt), -1, dtype=np.int32)
    for bidx, qlens in enumerate(tarqlen):
        s = 0
        for sidx, n in enumerate(qlens):
            seg_ids[bidx, s:s + n] = sidx
            s += n
    valid_b = seg_ids >= 0
    same = ((seg_ids[:, :, None] == seg_ids[:, None, :]) &
            valid_b[:, :, None]).astype(np.float32)                       # (B, Nt, Nt)
    valid = valid_b.astype(np.float32)[:, :, None]                        # (B, Nt, 1)

    target_real_lens = np.asarray((np.asarray(xt).sum(-1) != 0).sum(1))
    assert int(target_real_lens.max()) == Nt, \
        "Max target real lens is not equal to the number of target points"
    rowmask = (np.arange(Nt)[None, :] <
               target_real_lens[:, None]).astype(np.float32)[:, :, None]  # (B, Nt, 1)

    # host-side packing for the fold layout chosen above
    G = B // NB
    if NB == 1:
        same2d = same.reshape(B * Nt, Nt)
    else:
        same2d = np.zeros((G, NB * Nt, NB * Nt), np.float32)
        for g in range(G):
            for b in range(NB):
                same2d[g, b * Nt:(b + 1) * Nt, b * Nt:(b + 1) * Nt] = same[g * NB + b]
        same2d = same2d.reshape(G * NB * Nt, NB * Nt)
    vrmask = np.concatenate([valid, rowmask], axis=-1).reshape(B * Nt, 2).astype(np.float32)

    fwd = make_gpo_forward(packed, layout, cfg)
    outs = fwd(packed, xc, yc, xt, yt, jnp.asarray(same2d), jnp.asarray(vrmask))
    jax.block_until_ready(outs)
    # TODO(synk): dropout layers are treated as identity (eval mode / dropout=0).
    print("KERNEL_OK")
</pallas_src>

<mosaic_0001>
module attributes {stable_mosaic.version = 11 : i64} {
  func.func @_gpo_kernel(%arg0: i32, %arg1: memref<32x5xf32, #tpu.memory_space<vmem>>, %arg2: memref<16x4xf32, #tpu.memory_space<vmem>>, %arg3: memref<16x16xf32, #tpu.memory_space<vmem>>, %arg4: memref<5x32xf32, #tpu.memory_space<vmem>>, %arg5: memref<32x480xf32, #tpu.memory_space<vmem>>, %arg6: memref<64x68xf32, #tpu.memory_space<vmem>>, %arg7: memref<20x1x96xf32, #tpu.memory_space<vmem>>, %arg8: memref<1x8x128xf32, #tpu.memory_space<vmem>>) attributes {dimension_semantics = [#tpu.dimension_semantics<parallel>], iteration_bounds = array<i64: 1>, scalar_prefetch = 0 : i64, scratch_operands = 0 : i64, tpu.core_type = #tpu.core_type<tc>, window_params = [{transform_indices = @transform_0, window_bounds = array<i64: 32, 5>}, {transform_indices = @transform_1, window_bounds = array<i64: 16, 4>}, {transform_indices = @transform_2, window_bounds = array<i64: 16, 16>}, {pipeline_mode = #tpu.pipeline_mode<synchronous>, transform_indices = @transform_3, window_bounds = array<i64: 5, 32>}, {pipeline_mode = #tpu.pipeline_mode<synchronous>, transform_indices = @transform_4, window_bounds = array<i64: 32, 480>}, {pipeline_mode = #tpu.pipeline_mode<synchronous>, transform_indices = @transform_5, window_bounds = array<i64: 64, 68>}, {pipeline_mode = #tpu.pipeline_mode<synchronous>, transform_indices = @transform_6, window_bounds = array<i64: 20, 1, 96>}, {transform_indices = @transform_7, window_bounds = array<i64: 1, 8, 128>}]} {
    %c0 = arith.constant 0 : index
    %c0_0 = arith.constant 0 : index
    %0 = vector.load %arg5[%c0, %c0_0] : memref<32x480xf32, #tpu.memory_space<vmem>>, vector<32x480xf32>
    %c0_1 = arith.constant 0 : index
    %c0_2 = arith.constant 0 : index
    %1 = vector.load %arg6[%c0_1, %c0_2] : memref<64x68xf32, #tpu.memory_space<vmem>>, vector<64x68xf32>
    %c0_3 = arith.constant 0 : index
    %c0_4 = arith.constant 0 : index
    %2 = vector.load %arg1[%c0_3, %c0_4] : memref<32x5xf32, #tpu.memory_space<vmem>>, vector<32x5xf32>
    %cst = arith.constant 1.000000e+00 : f32
    %3 = vector.broadcast %cst : f32 to vector<1x3xf32>
    %4 = vector.extract_strided_slice %2 {offsets = [0, 0], sizes = [32, 3], strides = [1, 1]} : vector<32x5xf32> to vector<32x3xf32>
    %cst_5 = arith.constant dense<0.000000e+00> : vector<1x32xf32>
    %5 = tpu.matmul %3, %4, %cst_5 {dimension_numbers = #tpu.dot_dimension_numbers<[1], [1], [0], [0], [0, 0, 1, 0], [], []>} : vector<1x3xf32>, vector<32x3xf32>, vector<1x32xf32> -> vector<1x32xf32>
    %6 = tpu.iota {dimensions = array<i32: 1>} : vector<32x32xi32>
    %7 = tpu.iota {dimensions = array<i32: 0>} : vector<32x32xi32>
    %c8_i32 = arith.constant 8 : i32
    %8 = vector.broadcast %c8_i32 : i32 to vector<32x32xi32>
    %9 = arith.cmpi sge, %6, %8 : vector<32x32xi32>
    %c16_i32 = arith.constant 16 : i32
    %10 = vector.broadcast %c16_i32 : i32 to vector<32x32xi32>
    %11 = arith.cmpi slt, %6, %10 : vector<32x32xi32>
    %12 = arith.andi %9, %11 : vector<32x32xi1>
    %c0_i32 = arith.constant 0 : i32
    %13 = vector.broadcast %c0_i32 : i32 to vector<32x32xi32>
    %14 = arith.cmpi sge, %7, %13 : vector<32x32xi32>
    %c16_i32_6 = arith.constant 16 : i32
    %15 = vector.broadcast %c16_i32_6 : i32 to vector<32x32xi32>
    %16 = arith.cmpi slt, %7, %15 : vector<32x32xi32>
    %17 = arith.andi %14, %16 : vector<32x32xi1>
    %c0_i32_7 = arith.constant 0 : i32
    %18 = vector.broadcast %c0_i32_7 : i32 to vector<32x32xi32>
    %19 = arith.cmpi slt, %6, %18 : vector<32x32xi32>
    %c16_i32_8 = arith.constant 16 : i32
    %20 = vector.broadcast %c16_i32_8 : i32 to vector<32x32xi32>
    %21 = arith.cmpi sge, %6, %20 : vector<32x32xi32>
    %22 = arith.ori %19, %21 : vector<32x32xi1>
    %23 = arith.andi %17, %22 : vector<32x32xi1>
    %c24_i32 = arith.constant 24 : i32
    %24 = vector.broadcast %c24_i32 : i32 to vector<32x32xi32>
    %25 = arith.cmpi sge, %6, %24 : vector<32x32xi32>
    %c32_i32 = arith.constant 32 : i32
    %26 = vector.broadcast %c32_i32 : i32 to vector<32x32xi32>
    %27 = arith.cmpi slt, %6, %26 : vector<32x32xi32>
    %28 = arith.andi %25, %27 : vector<32x32xi1>
    %c16_i32_9 = arith.constant 16 : i32
    %29 = vector.broadcast %c16_i32_9 : i32 to vector<32x32xi32>
    %30 = arith.cmpi sge, %7, %29 : vector<32x32xi32>
    %c32_i32_10 = arith.constant 32 : i32
    %31 = vector.broadcast %c32_i32_10 : i32 to vector<32x32xi32>
    %32 = arith.cmpi slt, %7, %31 : vector<32x32xi32>
    %33 = arith.andi %30, %32 : vector<32x32xi1>
    %c16_i32_11 = arith.constant 16 : i32
    %34 = vector.broadcast %c16_i32_11 : i32 to vector<32x32xi32>
    %35 = arith.cmpi slt, %6, %34 : vector<32x32xi32>
    %c32_i32_12 = arith.constant 32 : i32
    %36 = vector.broadcast %c32_i32_12 : i32 to vector<32x32xi32>
    %37 = arith.cmpi sge, %6, %36 : vector<32x32xi32>
    %38 = arith.ori %35, %37 : vector<32x32xi1>
    %39 = arith.andi %33, %38 : vector<32x32xi1>
    %40 = arith.ori %12, %23 : vector<32x32xi1>
    %41 = arith.ori %40, %28 : vector<32x32xi1>
    %42 = arith.ori %41, %39 : vector<32x32xi1>
    %cst_13 = arith.constant 0.000000e+00 : f32
    %43 = vector.broadcast %cst_13 : f32 to vector<1x32xf32>
    %44 = arith.cmpf oeq, %5, %43 : vector<1x32xf32>
    %45 = vector.broadcast %44 : vector<1x32xi1> to vector<32x32xi1>
    %46 = arith.ori %42, %45 : vector<32x32xi1>
    %cst_14 = arith.constant -1.000000e+30 : f32
    %cst_15 = arith.constant 0.000000e+00 : f32
    %47 = vector.broadcast %cst_14 : f32 to vector<32x32xf32>
    %48 = vector.broadcast %cst_15 : f32 to vector<32x32xf32>
    %49 = arith.select %46, %47, %48 : vector<32x32xi1>, vector<32x32xf32>
    %c0_16 = arith.constant 0 : index
    %c0_17 = arith.constant 0 : index
    %50 = vector.load %arg4[%c0_16, %c0_17] : memref<5x32xf32, #tpu.memory_space<vmem>>, vector<5x32xf32>
    %cst_18 = arith.constant dense<0.000000e+00> : vector<32x32xf32>
    %51 = tpu.matmul %2, %50, %cst_18 {dimension_numbers = #tpu.dot_dimension_numbers<[1], [0], [0], [1], [0, 0, 1, 1], [], []>} : vector<32x5xf32>, vector<5x32xf32>, vector<32x32xf32> -> vector<32x32xf32>
    %c0_19 = arith.constant 0 : index
    %c0_20 = arith.constant 0 : index
    %c0_21 = arith.constant 0 : index
    %52 = vector.load %arg7[%c0_19, %c0_20, %c0_21] : memref<20x1x96xf32, #tpu.memory_space<vmem>>, vector<1x1x96xf32>
    %53 = vector.shape_cast %52 : vector<1x1x96xf32> to vector<1x96xf32>
    %54 = vector.extract_strided_slice %53 {offsets = [0, 0], sizes = [1, 32], strides = [1, 1]} : vector<1x96xf32> to vector<1x32xf32>
    %55 = vector.broadcast %54 : vector<1x32xf32> to vector<32x32xf32>
    %56 = arith.addf %51, %55 : vector<32x32xf32>
    %cst_22 = arith.constant 0.000000e+00 : f32
    %57 = vector.broadcast %cst_22 : f32 to vector<32x32xf32>
    %58 = arith.maximumf %56, %57 : vector<32x32xf32>
    %59 = vector.extract_strided_slice %0 {offsets = [0, 0], sizes = [32, 32], strides = [1, 1]} : vector<32x480xf32> to vector<32x32xf32>
    %cst_23 = arith.constant dense<0.000000e+00> : vector<32x32xf32>
    %60 = tpu.matmul %58, %59, %cst_23 {dimension_numbers = #tpu.dot_dimension_numbers<[1], [0], [0], [1], [0, 0, 1, 1], [], []>} : vector<32x32xf32>, vector<32x32xf32>, vector<32x32xf32> -> vector<32x32xf32>
    %c1 = arith.constant 1 : index
    %c0_24 = arith.constant 0 : index
    %c0_25 = arith.constant 0 : index
    %61 = vector.load %arg7[%c1, %c0_24, %c0_25] : memref<20x1x96xf32, #tpu.memory_space<vmem>>, vector<1x1x96xf32>
    %62 = vector.shape_cast %61 : vector<1x1x96xf32> to vector<1x96xf32>
    %63 = vector.extract_strided_slice %62 {offsets = [0, 0], sizes = [1, 32], strides = [1, 1]} : vector<1x96xf32> to vector<1x32xf32>
    %64 = vector.broadcast %63 : vector<1x32xf32> to vector<32x32xf32>
    %65 = arith.addf %60, %64 : vector<32x32xf32>
    %66 = vector.extract_strided_slice %0 {offsets = [0, 32], sizes = [32, 96], strides = [1, 1]} : vector<32x480xf32> to vector<32x96xf32>
    %cst_26 = arith.constant dense<0.000000e+00> : vector<32x96xf32>
    %67 = tpu.matmul %65, %66, %cst_26 {dimension_numbers = #tpu.dot_dimension_numbers<[1], [0], [0], [1], [0, 0, 1, 1], [], []>} : vector<32x32xf32>, vector<32x96xf32>, vector<32x96xf32> -> vector<32x96xf32>
    %c2 = arith.constant 2 : index
    %c0_27 = arith.constant 0 : index
    %c0_28 = arith.constant 0 : index
    %68 = vector.load %arg7[%c2, %c0_27, %c0_28] : memref<20x1x96xf32, #tpu.memory_space<vmem>>, vector<1x1x96xf32>
    %69 = vector.shape_cast %68 : vector<1x1x96xf32> to vector<1x96xf32>
    %70 = vector.broadcast %69 : vector<1x96xf32> to vector<32x96xf32>
    %71 = arith.addf %67, %70 : vector<32x96xf32>
    %72 = vector.extract_strided_slice %71 {offsets = [0, 0], sizes = [32, 8], strides = [1, 1]} : vector<32x96xf32> to vector<32x8xf32>
    %73 = vector.extract_strided_slice %71 {offsets = [0, 32], sizes = [32, 8], strides = [1, 1]} : vector<32x96xf32> to vector<32x8xf32>
    %74 = vector.extract_strided_slice %71 {offsets = [0, 64], sizes = [32, 8], strides = [1, 1]} : vector<32x96xf32> to vector<32x8xf32>
    %cst_29 = arith.constant dense<0.000000e+00> : vector<32x32xf32>
    %75 = tpu.matmul %72, %73, %cst_29 {dimension_numbers = #tpu.dot_dimension_numbers<[1], [1], [0], [0], [0, 0, 1, 0], [], []>} : vector<32x8xf32>, vector<32x8xf32>, vector<32x32xf32> -> vector<32x32xf32>
    %76 = arith.addf %75, %49 : vector<32x32xf32>
    %cst_30 = arith.constant dense<0xFF800000> : vector<32xf32>
    %77 = vector.multi_reduction <maximumf>, %76, %cst_30 [1] : vector<32x32xf32> to vector<32xf32>
    %78 = vector.shape_cast %77 : vector<32xf32> to vector<32x1xf32>
    %79 = vector.broadcast %78 : vector<32x1xf32> to vector<32x32xf32>
    %80 = arith.subf %76, %79 : vector<32x32xf32>
    %81 = math.exp %80 : vector<32x32xf32>
    %cst_31 = arith.constant dense<0.000000e+00> : vector<32xf32>
    %82 = vector.multi_reduction <add>, %81, %cst_31 [1] : vector<32x32xf32> to vector<32xf32>
    %83 = vector.shape_cast %82 : vector<32xf32> to vector<32x1xf32>
    %84 = tpu.reciprocal %83 {approx = true} : vector<32x1xf32> -> vector<32x1xf32>
    %85 = vector.broadcast %84 : vector<32x1xf32> to vector<32x32xf32>
    %86 = arith.mulf %81, %85 : vector<32x32xf32>
    %cst_32 = arith.constant dense<0.000000e+00> : vector<32x8xf32>
    %87 = tpu.matmul %86, %74, %cst_32 {dimension_numbers = #tpu.dot_dimension_numbers<[1], [0], [0], [1], [0, 0, 1, 1], [], []>} : vector<32x32xf32>, vector<32x8xf32>, vector<32x8xf32> -> vector<32x8xf32>
    %88 = vector.extract_strided_slice %71 {offsets = [0, 8], sizes = [32, 8], strides = [1, 1]} : vector<32x96xf32> to vector<32x8xf32>
    %89 = vector.extract_strided_slice %71 {offsets = [0, 40], sizes = [32, 8], strides = [1, 1]} : vector<32x96xf32> to vector<32x8xf32>
    %90 = vector.extract_strided_slice %71 {offsets = [0, 72], sizes = [32, 8], strides = [1, 1]} : vector<32x96xf32> to vector<32x8xf32>
    %cst_33 = arith.constant dense<0.000000e+00> : vector<32x32xf32>
    %91 = tpu.matmul %88, %89, %cst_33 {dimension_numbers = #tpu.dot_dimension_numbers<[1], [1], [0], [0], [0, 0, 1, 0], [], []>} : vector<32x8xf32>, vector<32x8xf32>, vector<32x32xf32> -> vector<32x32xf32>
    %92 = arith.addf %91, %49 : vector<32x32xf32>
    %cst_34 = arith.constant dense<0xFF800000> : vector<32xf32>
    %93 = vector.multi_reduction <maximumf>, %92, %cst_34 [1] : vector<32x32xf32> to vector<32xf32>
    %94 = vector.shape_cast %93 : vector<32xf32> to vector<32x1xf32>
    %95 = vector.broadcast %94 : vector<32x1xf32> to vector<32x32xf32>
    %96 = arith.subf %92, %95 : vector<32x32xf32>
    %97 = math.exp %96 : vector<32x32xf32>
    %cst_35 = arith.constant dense<0.000000e+00> : vector<32xf32>
    %98 = vector.multi_reduction <add>, %97, %cst_35 [1] : vector<32x32xf32> to vector<32xf32>
    %99 = vector.shape_cast %98 : vector<32xf32> to vector<32x1xf32>
    %100 = tpu.reciprocal %99 {approx = true} : vector<32x1xf32> -> vector<32x1xf32>
    %101 = vector.broadcast %100 : vector<32x1xf32> to vector<32x32xf32>
    %102 = arith.mulf %97, %101 : vector<32x32xf32>
    %cst_36 = arith.constant dense<0.000000e+00> : vector<32x8xf32>
    %103 = tpu.matmul %102, %90, %cst_36 {dimension_numbers = #tpu.dot_dimension_numbers<[1], [0], [0], [1], [0, 0, 1, 1], [], []>} : vector<32x32xf32>, vector<32x8xf32>, vector<32x8xf32> -> vector<32x8xf32>
    %104 = vector.extract_strided_slice %71 {offsets = [0, 16], sizes = [32, 8], strides = [1, 1]} : vector<32x96xf32> to vector<32x8xf32>
    %105 = vector.extract_strided_slice %71 {offsets = [0, 48], sizes = [32, 8], strides = [1, 1]} : vector<32x96xf32> to vector<32x8xf32>
    %106 = vector.extract_strided_slice %71 {offsets = [0, 80], sizes = [32, 8], strides = [1, 1]} : vector<32x96xf32> to vector<32x8xf32>
    %cst_37 = arith.constant dense<0.000000e+00> : vector<32x32xf32>
    %107 = tpu.matmul %104, %105, %cst_37 {dimension_numbers = #tpu.dot_dimension_numbers<[1], [1], [0], [0], [0, 0, 1, 0], [], []>} : vector<32x8xf32>, vector<32x8xf32>, vector<32x32xf32> -> vector<32x32xf32>
    %108 = arith.addf %107, %49 : vector<32x32xf32>
    %cst_38 = arith.constant dense<0xFF800000> : vector<32xf32>
    %109 = vector.multi_reduction <maximumf>, %108, %cst_38 [1] : vector<32x32xf32> to vector<32xf32>
    %110 = vector.shape_cast %109 : vector<32xf32> to vector<32x1xf32>
    %111 = vector.broadcast %110 : vector<32x1xf32> to vector<32x32xf32>
    %112 = arith.subf %108, %111 : vector<32x32xf32>
    %113 = math.exp %112 : vector<32x32xf32>
    %cst_39 = arith.constant dense<0.000000e+00> : vector<32xf32>
    %114 = vector.multi_reduction <add>, %113, %cst_39 [1] : vector<32x32xf32> to vector<32xf32>
    %115 = vector.shape_cast %114 : vector<32xf32> to vector<32x1xf32>
    %116 = tpu.reciprocal %115 {approx = true} : vector<32x1xf32> -> vector<32x1xf32>
    %117 = vector.broadcast %116 : vector<32x1xf32> to vector<32x32xf32>
    %118 = arith.mulf %113, %117 : vector<32x32xf32>
    %cst_40 = arith.constant dense<0.000000e+00> : vector<32x8xf32>
    %119 = tpu.matmul %118, %106, %cst_40 {dimension_numbers = #tpu.dot_dimension_numbers<[1], [0], [0], [1], [0, 0, 1, 1], [], []>} : vector<32x32xf32>, vector<32x8xf32>, vector<32x8xf32> -> vector<32x8xf32>
    %120 = vector.extract_strided_slice %71 {offsets = [0, 24], sizes = [32, 8], strides = [1, 1]} : vector<32x96xf32> to vector<32x8xf32>
    %121 = vector.extract_strided_slice %71 {offsets = [0, 56], sizes = [32, 8], strides = [1, 1]} : vector<32x96xf32> to vector<32x8xf32>
    %122 = vector.extract_strided_slice %71 {offsets = [0, 88], sizes = [32, 8], strides = [1, 1]} : vector<32x96xf32> to vector<32x8xf32>
    %cst_41 = arith.constant dense<0.000000e+00> : vector<32x32xf32>
    %123 = tpu.matmul %120, %121, %cst_41 {dimension_numbers = #tpu.dot_dimension_numbers<[1], [1], [0], [0], [0, 0, 1, 0], [], []>} : vector<32x8xf32>, vector<32x8xf32>, vector<32x32xf32> -> vector<32x32xf32>
    %124 = arith.addf %123, %49 : vector<32x32xf32>
    %cst_42 = arith.constant dense<0xFF800000> : vector<32xf32>
    %125 = vector.multi_reduction <maximumf>, %124, %cst_42 [1] : vector<32x32xf32> to vector<32xf32>
    %126 = vector.shape_cast %125 : vector<32xf32> to vector<32x1xf32>
    %127 = vector.broadcast %126 : vector<32x1xf32> to vector<32x32xf32>
    %128 = arith.subf %124, %127 : vector<32x32xf32>
    %129 = math.exp %128 : vector<32x32xf32>
    %cst_43 = arith.constant dense<0.000000e+00> : vector<32xf32>
    %130 = vector.multi_reduction <add>, %129, %cst_43 [1] : vector<32x32xf32> to vector<32xf32>
    %131 = vector.shape_cast %130 : vector<32xf32> to vector<32x1xf32>
    %132 = tpu.reciprocal %131 {approx = true} : vector<32x1xf32> -> vector<32x1xf32>
    %133 = vector.broadcast %132 : vector<32x1xf32> to vector<32x32xf32>
    %134 = arith.mulf %129, %133 : vector<32x32xf32>
    %cst_44 = arith.constant dense<0.000000e+00> : vector<32x8xf32>
    %135 = tpu.matmul %134, %122, %cst_44 {dimension_numbers = #tpu.dot_dimension_numbers<[1], [0], [0], [1], [0, 0, 1, 1], [], []>} : vector<32x32xf32>, vector<32x8xf32>, vector<32x8xf32> -> vector<32x8xf32>
    %136 = tpu.concatenate %87, %103, %119, %135 in 1 : vector<32x8xf32>, vector<32x8xf32>, vector<32x8xf32>, vector<32x8xf32> -> vector<32x32xf32>
    %137 = vector.extract_strided_slice %0 {offsets = [0, 128], sizes = [32, 32], strides = [1, 1]} : vector<32x480xf32> to vector<32x32xf32>
    %cst_45 = arith.constant dense<0.000000e+00> : vector<32x32xf32>
    %138 = tpu.matmul %136, %137, %cst_45 {dimension_numbers = #tpu.dot_dimension_numbers<[1], [0], [0], [1], [0, 0, 1, 1], [], []>} : vector<32x32xf32>, vector<32x32xf32>, vector<32x32xf32> -> vector<32x32xf32>
    %c3 = arith.constant 3 : index
    %c0_46 = arith.constant 0 : index
    %c0_47 = arith.constant 0 : index
    %139 = vector.load %arg7[%c3, %c0_46, %c0_47] : memref<20x1x96xf32, #tpu.memory_space<vmem>>, vector<1x1x96xf32>
    %140 = vector.shape_cast %139 : vector<1x1x96xf32> to vector<1x96xf32>
    %141 = vector.extract_strided_slice %140 {offsets = [0, 0], sizes = [1, 32], strides = [1, 1]} : vector<1x96xf32> to vector<1x32xf32>
    %142 = vector.broadcast %141 : vector<1x32xf32> to vector<32x32xf32>
    %143 = arith.addf %138, %142 : vector<32x32xf32>
    %144 = arith.addf %65, %143 : vector<32x32xf32>
    %cst_48 = arith.constant dense<0.000000e+00> : vector<32xf32>
    %145 = vector.multi_reduction <add>, %144, %cst_48 [1] : vector<32x32xf32> to vector<32xf32>
    %146 = vector.shape_cast %145 : vector<32xf32> to vector<32x1xf32>
    %cst_49 = arith.constant 3.200000e+01 : f32
    %147 = vector.broadcast %cst_49 : f32 to vector<32x1xf32>
    %148 = arith.divf %146, %147 : vector<32x1xf32>
    %149 = vector.broadcast %148 : vector<32x1xf32> to vector<32x32xf32>
    %150 = arith.subf %144, %149 : vector<32x32xf32>
    %151 = arith.mulf %150, %150 : vector<32x32xf32>
    %cst_50 = arith.constant dense<0.000000e+00> : vector<32xf32>
    %152 = vector.multi_reduction <add>, %151, %cst_50 [1] : vector<32x32xf32> to vector<32xf32>
    %153 = vector.shape_cast %152 : vector<32xf32> to vector<32x1xf32>
    %cst_51 = arith.constant 3.200000e+01 : f32
    %154 = vector.broadcast %cst_51 : f32 to vector<32x1xf32>
    %155 = arith.divf %153, %154 : vector<32x1xf32>
    %cst_52 = arith.constant 9.99999974E-6 : f32
    %156 = vector.broadcast %cst_52 : f32 to vector<32x1xf32>
    %157 = arith.addf %155, %156 : vector<32x1xf32>
    %158 = math.rsqrt %157 : vector<32x1xf32>
    %159 = vector.broadcast %158 : vector<32x1xf32> to vector<32x32xf32>
    %160 = arith.mulf %150, %159 : vector<32x32xf32>
    %c6 = arith.constant 6 : index
    %c0_53 = arith.constant 0 : index
    %c0_54 = arith.constant 0 : index
    %161 = vector.load %arg7[%c6, %c0_53, %c0_54] : memref<20x1x96xf32, #tpu.memory_space<vmem>>, vector<1x1x96xf32>
    %162 = vector.shape_cast %161 : vector<1x1x96xf32> to vector<1x96xf32>
    %163 = vector.extract_strided_slice %162 {offsets = [0, 0], sizes = [1, 32], strides = [1, 1]} : vector<1x96xf32> to vector<1x32xf32>
    %164 = vector.broadcast %163 : vector<1x32xf32> to vector<32x32xf32>
    %165 = arith.mulf %160, %164 : vector<32x32xf32>
    %c7 = arith.constant 7 : index
    %c0_55 = arith.constant 0 : index
    %c0_56 = arith.constant 0 : index
    %166 = vector.load %arg7[%c7, %c0_55, %c0_56] : memref<20x1x96xf32, #tpu.memory_space<vmem>>, vector<1x1x96xf32>
    %167 = vector.shape_cast %166 : vector<1x1x96xf32> to vector<1x96xf32>
    %168 = vector.extract_strided_slice %167 {offsets = [0, 0], sizes = [1, 32], strides = [1, 1]} : vector<1x96xf32> to vector<1x32xf32>
    %169 = vector.broadcast %168 : vector<1x32xf32> to vector<32x32xf32>
    %170 = arith.addf %165, %169 : vector<32x32xf32>
    %171 = vector.extract_strided_slice %0 {offsets = [0, 160], sizes = [32, 64], strides = [1, 1]} : vector<32x480xf32> to vector<32x64xf32>
    %cst_57 = arith.constant dense<0.000000e+00> : vector<32x64xf32>
    %172 = tpu.matmul %170, %171, %cst_57 {dimension_numbers = #tpu.dot_dimension_numbers<[1], [0], [0], [1], [0, 0, 1, 1], [], []>} : vector<32x32xf32>, vector<32x64xf32>, vector<32x64xf32> -> vector<32x64xf32>
    %c4 = arith.constant 4 : index
    %c0_58 = arith.constant 0 : index
    %c0_59 = arith.constant 0 : index
    %173 = vector.load %arg7[%c4, %c0_58, %c0_59] : memref<20x1x96xf32, #tpu.memory_space<vmem>>, vector<1x1x96xf32>
    %174 = vector.shape_cast %173 : vector<1x1x96xf32> to vector<1x96xf32>
    %175 = vector.extract_strided_slice %174 {offsets = [0, 0], sizes = [1, 64], strides = [1, 1]} : vector<1x96xf32> to vector<1x64xf32>
    %176 = vector.broadcast %175 : vector<1x64xf32> to vector<32x64xf32>
    %177 = arith.addf %172, %176 : vector<32x64xf32>
    %cst_60 = arith.constant 0.000000e+00 : f32
    %178 = vector.broadcast %cst_60 : f32 to vector<32x64xf32>
    %179 = arith.maximumf %177, %178 : vector<32x64xf32>
    %180 = vector.extract_strided_slice %1 {offsets = [0, 0], sizes = [64, 32], strides = [1, 1]} : vector<64x68xf32> to vector<64x32xf32>
    %cst_61 = arith.constant dense<0.000000e+00> : vector<32x32xf32>
    %181 = tpu.matmul %179, %180, %cst_61 {dimension_numbers = #tpu.dot_dimension_numbers<[1], [0], [0], [1], [0, 0, 1, 1], [], []>} : vector<32x64xf32>, vector<64x32xf32>, vector<32x32xf32> -> vector<32x32xf32>
    %c5 = arith.constant 5 : index
    %c0_62 = arith.constant 0 : index
    %c0_63 = arith.constant 0 : index
    %182 = vector.load %arg7[%c5, %c0_62, %c0_63] : memref<20x1x96xf32, #tpu.memory_space<vmem>>, vector<1x1x96xf32>
    %183 = vector.shape_cast %182 : vector<1x1x96xf32> to vector<1x96xf32>
    %184 = vector.extract_strided_slice %183 {offsets = [0, 0], sizes = [1, 32], strides = [1, 1]} : vector<1x96xf32> to vector<1x32xf32>
    %185 = vector.broadcast %184 : vector<1x32xf32> to vector<32x32xf32>
    %186 = arith.addf %181, %185 : vector<32x32xf32>
    %187 = arith.addf %170, %186 : vector<32x32xf32>
    %cst_64 = arith.constant dense<0.000000e+00> : vector<32xf32>
    %188 = vector.multi_reduction <add>, %187, %cst_64 [1] : vector<32x32xf32> to vector<32xf32>
    %189 = vector.shape_cast %188 : vector<32xf32> to vector<32x1xf32>
    %cst_65 = arith.constant 3.200000e+01 : f32
    %190 = vector.broadcast %cst_65 : f32 to vector<32x1xf32>
    %191 = arith.divf %189, %190 : vector<32x1xf32>
    %192 = vector.broadcast %191 : vector<32x1xf32> to vector<32x32xf32>
    %193 = arith.subf %187, %192 : vector<32x32xf32>
    %194 = arith.mulf %193, %193 : vector<32x32xf32>
    %cst_66 = arith.constant dense<0.000000e+00> : vector<32xf32>
    %195 = vector.multi_reduction <add>, %194, %cst_66 [1] : vector<32x32xf32> to vector<32xf32>
    %196 = vector.shape_cast %195 : vector<32xf32> to vector<32x1xf32>
    %cst_67 = arith.constant 3.200000e+01 : f32
    %197 = vector.broadcast %cst_67 : f32 to vector<32x1xf32>
    %198 = arith.divf %196, %197 : vector<32x1xf32>
    %cst_68 = arith.constant 9.99999974E-6 : f32
    %199 = vector.broadcast %cst_68 : f32 to vector<32x1xf32>
    %200 = arith.addf %198, %199 : vector<32x1xf32>
    %201 = math.rsqrt %200 : vector<32x1xf32>
    %202 = vector.broadcast %201 : vector<32x1xf32> to vector<32x32xf32>
    %203 = arith.mulf %193, %202 : vector<32x32xf32>
    %c8 = arith.constant 8 : index
    %c0_69 = arith.constant 0 : index
    %c0_70 = arith.constant 0 : index
    %204 = vector.load %arg7[%c8, %c0_69, %c0_70] : memref<20x1x96xf32, #tpu.memory_space<vmem>>, vector<1x1x96xf32>
    %205 = vector.shape_cast %204 : vector<1x1x96xf32> to vector<1x96xf32>
    %206 = vector.extract_strided_slice %205 {offsets = [0, 0], sizes = [1, 32], strides = [1, 1]} : vector<1x96xf32> to vector<1x32xf32>
    %207 = vector.broadcast %206 : vector<1x32xf32> to vector<32x32xf32>
    %208 = arith.mulf %203, %207 : vector<32x32xf32>
    %c9 = arith.constant 9 : index
    %c0_71 = arith.constant 0 : index
    %c0_72 = arith.constant 0 : index
    %209 = vector.load %arg7[%c9, %c0_71, %c0_72] : memref<20x1x96xf32, #tpu.memory_space<vmem>>, vector<1x1x96xf32>
    %210 = vector.shape_cast %209 : vector<1x1x96xf32> to vector<1x96xf32>
    %211 = vector.extract_strided_slice %210 {offsets = [0, 0], sizes = [1, 32], strides = [1, 1]} : vector<1x96xf32> to vector<1x32xf32>
    %212 = vector.broadcast %211 : vector<1x32xf32> to vector<32x32xf32>
    %213 = arith.addf %208, %212 : vector<32x32xf32>
    %214 = vector.extract_strided_slice %0 {offsets = [0, 224], sizes = [32, 96], strides = [1, 1]} : vector<32x480xf32> to vector<32x96xf32>
    %cst_73 = arith.constant dense<0.000000e+00> : vector<32x96xf32>
    %215 = tpu.matmul %213, %214, %cst_73 {dimension_numbers = #tpu.dot_dimension_numbers<[1], [0], [0], [1], [0, 0, 1, 1], [], []>} : vector<32x32xf32>, vector<32x96xf32>, vector<32x96xf32> -> vector<32x96xf32>
    %c10 = arith.constant 10 : index
    %c0_74 = arith.constant 0 : index
    %c0_75 = arith.constant 0 : index
    %216 = vector.load %arg7[%c10, %c0_74, %c0_75] : memref<20x1x96xf32, #tpu.memory_space<vmem>>, vector<1x1x96xf32>
    %217 = vector.shape_cast %216 : vector<1x1x96xf32> to vector<1x96xf32>
    %218 = vector.broadcast %217 : vector<1x96xf32> to vector<32x96xf32>
    %219 = arith.addf %215, %218 : vector<32x96xf32>
    %220 = vector.extract_strided_slice %219 {offsets = [0, 0], sizes = [32, 8], strides = [1, 1]} : vector<32x96xf32> to vector<32x8xf32>
    %221 = vector.extract_strided_slice %219 {offsets = [0, 32], sizes = [32, 8], strides = [1, 1]} : vector<32x96xf32> to vector<32x8xf32>
    %222 = vector.extract_strided_slice %219 {offsets = [0, 64], sizes = [32, 8], strides = [1, 1]} : vector<32x96xf32> to vector<32x8xf32>
    %cst_76 = arith.constant dense<0.000000e+00> : vector<32x32xf32>
    %223 = tpu.matmul %220, %221, %cst_76 {dimension_numbers = #tpu.dot_dimension_numbers<[1], [1], [0], [0], [0, 0, 1, 0], [], []>} : vector<32x8xf32>, vector<32x8xf32>, vector<32x32xf32> -> vector<32x32xf32>
    %224 = arith.addf %223, %49 : vector<32x32xf32>
    %cst_77 = arith.constant dense<0xFF800000> : vector<32xf32>
    %225 = vector.multi_reduction <maximumf>, %224, %cst_77 [1] : vector<32x32xf32> to vector<32xf32>
    %226 = vector.shape_cast %225 : vector<32xf32> to vector<32x1xf32>
    %227 = vector.broadcast %226 : vector<32x1xf32> to vector<32x32xf32>
    %228 = arith.subf %224, %227 : vector<32x32xf32>
    %229 = math.exp %228 : vector<32x32xf32>
    %cst_78 = arith.constant dense<0.000000e+00> : vector<32xf32>
    %230 = vector.multi_reduction <add>, %229, %cst_78 [1] : vector<32x32xf32> to vector<32xf32>
    %231 = vector.shape_cast %230 : vector<32xf32> to vector<32x1xf32>
    %232 = tpu.reciprocal %231 {approx = true} : vector<32x1xf32> -> vector<32x1xf32>
    %233 = vector.broadcast %232 : vector<32x1xf32> to vector<32x32xf32>
    %234 = arith.mulf %229, %233 : vector<32x32xf32>
    %cst_79 = arith.constant dense<0.000000e+00> : vector<32x8xf32>
    %235 = tpu.matmul %234, %222, %cst_79 {dimension_numbers = #tpu.dot_dimension_numbers<[1], [0], [0], [1], [0, 0, 1, 1], [], []>} : vector<32x32xf32>, vector<32x8xf32>, vector<32x8xf32> -> vector<32x8xf32>
    %236 = vector.extract_strided_slice %219 {offsets = [0, 8], sizes = [32, 8], strides = [1, 1]} : vector<32x96xf32> to vector<32x8xf32>
    %237 = vector.extract_strided_slice %219 {offsets = [0, 40], sizes = [32, 8], strides = [1, 1]} : vector<32x96xf32> to vector<32x8xf32>
    %238 = vector.extract_strided_slice %219 {offsets = [0, 72], sizes = [32, 8], strides = [1, 1]} : vector<32x96xf32> to vector<32x8xf32>
    %cst_80 = arith.constant dense<0.000000e+00> : vector<32x32xf32>
    %239 = tpu.matmul %236, %237, %cst_80 {dimension_numbers = #tpu.dot_dimension_numbers<[1], [1], [0], [0], [0, 0, 1, 0], [], []>} : vector<32x8xf32>, vector<32x8xf32>, vector<32x32xf32> -> vector<32x32xf32>
    %240 = arith.addf %239, %49 : vector<32x32xf32>
    %cst_81 = arith.constant dense<0xFF800000> : vector<32xf32>
    %241 = vector.multi_reduction <maximumf>, %240, %cst_81 [1] : vector<32x32xf32> to vector<32xf32>
    %242 = vector.shape_cast %241 : vector<32xf32> to vector<32x1xf32>
    %243 = vector.broadcast %242 : vector<32x1xf32> to vector<32x32xf32>
    %244 = arith.subf %240, %243 : vector<32x32xf32>
    %245 = math.exp %244 : vector<32x32xf32>
    %cst_82 = arith.constant dense<0.000000e+00> : vector<32xf32>
    %246 = vector.multi_reduction <add>, %245, %cst_82 [1] : vector<32x32xf32> to vector<32xf32>
    %247 = vector.shape_cast %246 : vector<32xf32> to vector<32x1xf32>
    %248 = tpu.reciprocal %247 {approx = true} : vector<32x1xf32> -> vector<32x1xf32>
    %249 = vector.broadcast %248 : vector<32x1xf32> to vector<32x32xf32>
    %250 = arith.mulf %245, %249 : vector<32x32xf32>
    %cst_83 = arith.constant dense<0.000000e+00> : vector<32x8xf32>
    %251 = tpu.matmul %250, %238, %cst_83 {dimension_numbers = #tpu.dot_dimension_numbers<[1], [0], [0], [1], [0, 0, 1, 1], [], []>} : vector<32x32xf32>, vector<32x8xf32>, vector<32x8xf32> -> vector<32x8xf32>
    %252 = vector.extract_strided_slice %219 {offsets = [0, 16], sizes = [32, 8], strides = [1, 1]} : vector<32x96xf32> to vector<32x8xf32>
    %253 = vector.extract_strided_slice %219 {offsets = [0, 48], sizes = [32, 8], strides = [1, 1]} : vector<32x96xf32> to vector<32x8xf32>
    %254 = vector.extract_strided_slice %219 {offsets = [0, 80], sizes = [32, 8], strides = [1, 1]} : vector<32x96xf32> to vector<32x8xf32>
    %cst_84 = arith.constant dense<0.000000e+00> : vector<32x32xf32>
    %255 = tpu.matmul %252, %253, %cst_84 {dimension_numbers = #tpu.dot_dimension_numbers<[1], [1], [0], [0], [0, 0, 1, 0], [], []>} : vector<32x8xf32>, vector<32x8xf32>, vector<32x32xf32> -> vector<32x32xf32>
    %256 = arith.addf %255, %49 : vector<32x32xf32>
    %cst_85 = arith.constant dense<0xFF800000> : vector<32xf32>
    %257 = vector.multi_reduction <maximumf>, %256, %cst_85 [1] : vector<32x32xf32> to vector<32xf32>
    %258 = vector.shape_cast %257 : vector<32xf32> to vector<32x1xf32>
    %259 = vector.broadcast %258 : vector<32x1xf32> to vector<32x32xf32>
    %260 = arith.subf %256, %259 : vector<32x32xf32>
    %261 = math.exp %260 : vector<32x32xf32>
    %cst_86 = arith.constant dense<0.000000e+00> : vector<32xf32>
    %262 = vector.multi_reduction <add>, %261, %cst_86 [1] : vector<32x32xf32> to vector<32xf32>
    %263 = vector.shape_cast %262 : vector<32xf32> to vector<32x1xf32>
    %264 = tpu.reciprocal %263 {approx = true} : vector<32x1xf32> -> vector<32x1xf32>
    %265 = vector.broadcast %264 : vector<32x1xf32> to vector<32x32xf32>
    %266 = arith.mulf %261, %265 : vector<32x32xf32>
    %cst_87 = arith.constant dense<0.000000e+00> : vector<32x8xf32>
    %267 = tpu.matmul %266, %254, %cst_87 {dimension_numbers = #tpu.dot_dimension_numbers<[1], [0], [0], [1], [0, 0, 1, 1], [], []>} : vector<32x32xf32>, vector<32x8xf32>, vector<32x8xf32> -> vector<32x8xf32>
    %268 = vector.extract_strided_slice %219 {offsets = [0, 24], sizes = [32, 8], strides = [1, 1]} : vector<32x96xf32> to vector<32x8xf32>
    %269 = vector.extract_strided_slice %219 {offsets = [0, 56], sizes = [32, 8], strides = [1, 1]} : vector<32x96xf32> to vector<32x8xf32>
    %270 = vector.extract_strided_slice %219 {offsets = [0, 88], sizes = [32, 8], strides = [1, 1]} : vector<32x96xf32> to vector<32x8xf32>
    %cst_88 = arith.constant dense<0.000000e+00> : vector<32x32xf32>
    %271 = tpu.matmul %268, %269, %cst_88 {dimension_numbers = #tpu.dot_dimension_numbers<[1], [1], [0], [0], [0, 0, 1, 0], [], []>} : vector<32x8xf32>, vector<32x8xf32>, vector<32x32xf32> -> vector<32x32xf32>
    %272 = arith.addf %271, %49 : vector<32x32xf32>
    %cst_89 = arith.constant dense<0xFF800000> : vector<32xf32>
    %273 = vector.multi_reduction <maximumf>, %272, %cst_89 [1] : vector<32x32xf32> to vector<32xf32>
    %274 = vector.shape_cast %273 : vector<32xf32> to vector<32x1xf32>
    %275 = vector.broadcast %274 : vector<32x1xf32> to vector<32x32xf32>
    %276 = arith.subf %272, %275 : vector<32x32xf32>
    %277 = math.exp %276 : vector<32x32xf32>
    %cst_90 = arith.constant dense<0.000000e+00> : vector<32xf32>
    %278 = vector.multi_reduction <add>, %277, %cst_90 [1] : vector<32x32xf32> to vector<32xf32>
    %279 = vector.shape_cast %278 : vector<32xf32> to vector<32x1xf32>
    %280 = tpu.reciprocal %279 {approx = true} : vector<32x1xf32> -> vector<32x1xf32>
    %281 = vector.broadcast %280 : vector<32x1xf32> to vector<32x32xf32>
    %282 = arith.mulf %277, %281 : vector<32x32xf32>
    %cst_91 = arith.constant dense<0.000000e+00> : vector<32x8xf32>
    %283 = tpu.matmul %282, %270, %cst_91 {dimension_numbers = #tpu.dot_dimension_numbers<[1], [0], [0], [1], [0, 0, 1, 1], [], []>} : vector<32x32xf32>, vector<32x8xf32>, vector<32x8xf32> -> vector<32x8xf32>
    %284 = tpu.concatenate %235, %251, %267, %283 in 1 : vector<32x8xf32>, vector<32x8xf32>, vector<32x8xf32>, vector<32x8xf32> -> vector<32x32xf32>
    %285 = vector.extract_strided_slice %0 {offsets = [0, 320], sizes = [32, 32], strides = [1, 1]} : vector<32x480xf32> to vector<32x32xf32>
    %cst_92 = arith.constant dense<0.000000e+00> : vector<32x32xf32>
    %286 = tpu.matmul %284, %285, %cst_92 {dimension_numbers = #tpu.dot_dimension_numbers<[1], [0], [0], [1], [0, 0, 1, 1], [], []>} : vector<32x32xf32>, vector<32x32xf32>, vector<32x32xf32> -> vector<32x32xf32>
    %c11 = arith.constant 11 : index
    %c0_93 = arith.constant 0 : index
    %c0_94 = arith.constant 0 : index
    %287 = vector.load %arg7[%c11, %c0_93, %c0_94] : memref<20x1x96xf32, #tpu.memory_space<vmem>>, vector<1x1x96xf32>
    %288 = vector.shape_cast %287 : vector<1x1x96xf32> to vector<1x96xf32>
    %289 = vector.extract_strided_slice %288 {offsets = [0, 0], sizes = [1, 32], strides = [1, 1]} : vector<1x96xf32> to vector<1x32xf32>
    %290 = vector.broadcast %289 : vector<1x32xf32> to vector<32x32xf32>
    %291 = arith.addf %286, %290 : vector<32x32xf32>
    %292 = arith.addf %213, %291 : vector<32x32xf32>
    %cst_95 = arith.constant dense<0.000000e+00> : vector<32xf32>
    %293 = vector.multi_reduction <add>, %292, %cst_95 [1] : vector<32x32xf32> to vector<32xf32>
    %294 = vector.shape_cast %293 : vector<32xf32> to vector<32x1xf32>
    %cst_96 = arith.constant 3.200000e+01 : f32
    %295 = vector.broadcast %cst_96 : f32 to vector<32x1xf32>
    %296 = arith.divf %294, %295 : vector<32x1xf32>
    %297 = vector.broadcast %296 : vector<32x1xf32> to vector<32x32xf32>
    %298 = arith.subf %292, %297 : vector<32x32xf32>
    %299 = arith.mulf %298, %298 : vector<32x32xf32>
    %cst_97 = arith.constant dense<0.000000e+00> : vector<32xf32>
    %300 = vector.multi_reduction <add>, %299, %cst_97 [1] : vector<32x32xf32> to vector<32xf32>
    %301 = vector.shape_cast %300 : vector<32xf32> to vector<32x1xf32>
    %cst_98 = arith.constant 3.200000e+01 : f32
    %302 = vector.broadcast %cst_98 : f32 to vector<32x1xf32>
    %303 = arith.divf %301, %302 : vector<32x1xf32>
    %cst_99 = arith.constant 9.99999974E-6 : f32
    %304 = vector.broadcast %cst_99 : f32 to vector<32x1xf32>
    %305 = arith.addf %303, %304 : vector<32x1xf32>
    %306 = math.rsqrt %305 : vector<32x1xf32>
    %307 = vector.broadcast %306 : vector<32x1xf32> to vector<32x32xf32>
    %308 = arith.mulf %298, %307 : vector<32x32xf32>
    %c14 = arith.constant 14 : index
    %c0_100 = arith.constant 0 : index
    %c0_101 = arith.constant 0 : index
    %309 = vector.load %arg7[%c14, %c0_100, %c0_101] : memref<20x1x96xf32, #tpu.memory_space<vmem>>, vector<1x1x96xf32>
    %310 = vector.shape_cast %309 : vector<1x1x96xf32> to vector<1x96xf32>
    %311 = vector.extract_strided_slice %310 {offsets = [0, 0], sizes = [1, 32], strides = [1, 1]} : vector<1x96xf32> to vector<1x32xf32>
    %312 = vector.broadcast %311 : vector<1x32xf32> to vector<32x32xf32>
    %313 = arith.mulf %308, %312 : vector<32x32xf32>
    %c15 = arith.constant 15 : index
    %c0_102 = arith.constant 0 : index
    %c0_103 = arith.constant 0 : index
    %314 = vector.load %arg7[%c15, %c0_102, %c0_103] : memref<20x1x96xf32, #tpu.memory_space<vmem>>, vector<1x1x96xf32>
    %315 = vector.shape_cast %314 : vector<1x1x96xf32> to vector<1x96xf32>
    %316 = vector.extract_strided_slice %315 {offsets = [0, 0], sizes = [1, 32], strides = [1, 1]} : vector<1x96xf32> to vector<1x32xf32>
    %317 = vector.broadcast %316 : vector<1x32xf32> to vector<32x32xf32>
    %318 = arith.addf %313, %317 : vector<32x32xf32>
    %319 = vector.extract_strided_slice %0 {offsets = [0, 352], sizes = [32, 64], strides = [1, 1]} : vector<32x480xf32> to vector<32x64xf32>
    %cst_104 = arith.constant dense<0.000000e+00> : vector<32x64xf32>
    %320 = tpu.matmul %318, %319, %cst_104 {dimension_numbers = #tpu.dot_dimension_numbers<[1], [0], [0], [1], [0, 0, 1, 1], [], []>} : vector<32x32xf32>, vector<32x64xf32>, vector<32x64xf32> -> vector<32x64xf32>
    %c12 = arith.constant 12 : index
    %c0_105 = arith.constant 0 : index
    %c0_106 = arith.constant 0 : index
    %321 = vector.load %arg7[%c12, %c0_105, %c0_106] : memref<20x1x96xf32, #tpu.memory_space<vmem>>, vector<1x1x96xf32>
    %322 = vector.shape_cast %321 : vector<1x1x96xf32> to vector<1x96xf32>
    %323 = vector.extract_strided_slice %322 {offsets = [0, 0], sizes = [1, 64], strides = [1, 1]} : vector<1x96xf32> to vector<1x64xf32>
    %324 = vector.broadcast %323 : vector<1x64xf32> to vector<32x64xf32>
    %325 = arith.addf %320, %324 : vector<32x64xf32>
    %cst_107 = arith.constant 0.000000e+00 : f32
    %326 = vector.broadcast %cst_107 : f32 to vector<32x64xf32>
    %327 = arith.maximumf %325, %326 : vector<32x64xf32>
    %328 = vector.extract_strided_slice %1 {offsets = [0, 32], sizes = [64, 32], strides = [1, 1]} : vector<64x68xf32> to vector<64x32xf32>
    %cst_108 = arith.constant dense<0.000000e+00> : vector<32x32xf32>
    %329 = tpu.matmul %327, %328, %cst_108 {dimension_numbers = #tpu.dot_dimension_numbers<[1], [0], [0], [1], [0, 0, 1, 1], [], []>} : vector<32x64xf32>, vector<64x32xf32>, vector<32x32xf32> -> vector<32x32xf32>
    %c13 = arith.constant 13 : index
    %c0_109 = arith.constant 0 : index
    %c0_110 = arith.constant 0 : index
    %330 = vector.load %arg7[%c13, %c0_109, %c0_110] : memref<20x1x96xf32, #tpu.memory_space<vmem>>, vector<1x1x96xf32>
    %331 = vector.shape_cast %330 : vector<1x1x96xf32> to vector<1x96xf32>
    %332 = vector.extract_strided_slice %331 {offsets = [0, 0], sizes = [1, 32], strides = [1, 1]} : vector<1x96xf32> to vector<1x32xf32>
    %333 = vector.broadcast %332 : vector<1x32xf32> to vector<32x32xf32>
    %334 = arith.addf %329, %333 : vector<32x32xf32>
    %335 = arith.addf %318, %334 : vector<32x32xf32>
    %cst_111 = arith.constant dense<0.000000e+00> : vector<32xf32>
    %336 = vector.multi_reduction <add>, %335, %cst_111 [1] : vector<32x32xf32> to vector<32xf32>
    %337 = vector.shape_cast %336 : vector<32xf32> to vector<32x1xf32>
    %cst_112 = arith.constant 3.200000e+01 : f32
    %338 = vector.broadcast %cst_112 : f32 to vector<32x1xf32>
    %339 = arith.divf %337, %338 : vector<32x1xf32>
    %340 = vector.broadcast %339 : vector<32x1xf32> to vector<32x32xf32>
    %341 = arith.subf %335, %340 : vector<32x32xf32>
    %342 = arith.mulf %341, %341 : vector<32x32xf32>
    %cst_113 = arith.constant dense<0.000000e+00> : vector<32xf32>
    %343 = vector.multi_reduction <add>, %342, %cst_113 [1] : vector<32x32xf32> to vector<32xf32>
    %344 = vector.shape_cast %343 : vector<32xf32> to vector<32x1xf32>
    %cst_114 = arith.constant 3.200000e+01 : f32
    %345 = vector.broadcast %cst_114 : f32 to vector<32x1xf32>
    %346 = arith.divf %344, %345 : vector<32x1xf32>
    %cst_115 = arith.constant 9.99999974E-6 : f32
    %347 = vector.broadcast %cst_115 : f32 to vector<32x1xf32>
    %348 = arith.addf %346, %347 : vector<32x1xf32>
    %349 = math.rsqrt %348 : vector<32x1xf32>
    %350 = vector.broadcast %349 : vector<32x1xf32> to vector<32x32xf32>
    %351 = arith.mulf %341, %350 : vector<32x32xf32>
    %c16 = arith.constant 16 : index
    %c0_116 = arith.constant 0 : index
    %c0_117 = arith.constant 0 : index
    %352 = vector.load %arg7[%c16, %c0_116, %c0_117] : memref<20x1x96xf32, #tpu.memory_space<vmem>>, vector<1x1x96xf32>
    %353 = vector.shape_cast %352 : vector<1x1x96xf32> to vector<1x96xf32>
    %354 = vector.extract_strided_slice %353 {offsets = [0, 0], sizes = [1, 32], strides = [1, 1]} : vector<1x96xf32> to vector<1x32xf32>
    %355 = vector.broadcast %354 : vector<1x32xf32> to vector<32x32xf32>
    %356 = arith.mulf %351, %355 : vector<32x32xf32>
    %c17 = arith.constant 17 : index
    %c0_118 = arith.constant 0 : index
    %c0_119 = arith.constant 0 : index
    %357 = vector.load %arg7[%c17, %c0_118, %c0_119] : memref<20x1x96xf32, #tpu.memory_space<vmem>>, vector<1x1x96xf32>
    %358 = vector.shape_cast %357 : vector<1x1x96xf32> to vector<1x96xf32>
    %359 = vector.extract_strided_slice %358 {offsets = [0, 0], sizes = [1, 32], strides = [1, 1]} : vector<1x96xf32> to vector<1x32xf32>
    %360 = vector.broadcast %359 : vector<1x32xf32> to vector<32x32xf32>
    %361 = arith.addf %356, %360 : vector<32x32xf32>
    %362 = vector.extract_strided_slice %361 {offsets = [8, 0], sizes = [8, 32], strides = [1, 1]} : vector<32x32xf32> to vector<8x32xf32>
    %363 = vector.extract_strided_slice %361 {offsets = [24, 0], sizes = [8, 32], strides = [1, 1]} : vector<32x32xf32> to vector<8x32xf32>
    %364 = tpu.concatenate %362, %363 in 0 : vector<8x32xf32>, vector<8x32xf32> -> vector<16x32xf32>
    %365 = vector.extract_strided_slice %0 {offsets = [0, 416], sizes = [32, 64], strides = [1, 1]} : vector<32x480xf32> to vector<32x64xf32>
    %cst_120 = arith.constant dense<0.000000e+00> : vector<16x64xf32>
    %366 = tpu.matmul %364, %365, %cst_120 {dimension_numbers = #tpu.dot_dimension_numbers<[1], [0], [0], [1], [0, 0, 1, 1], [], []>} : vector<16x32xf32>, vector<32x64xf32>, vector<16x64xf32> -> vector<16x64xf32>
    %c18 = arith.constant 18 : index
    %c0_121 = arith.constant 0 : index
    %c0_122 = arith.constant 0 : index
    %367 = vector.load %arg7[%c18, %c0_121, %c0_122] : memref<20x1x96xf32, #tpu.memory_space<vmem>>, vector<1x1x96xf32>
    %368 = vector.shape_cast %367 : vector<1x1x96xf32> to vector<1x96xf32>
    %369 = vector.extract_strided_slice %368 {offsets = [0, 0], sizes = [1, 64], strides = [1, 1]} : vector<1x96xf32> to vector<1x64xf32>
    %370 = vector.broadcast %369 : vector<1x64xf32> to vector<16x64xf32>
    %371 = arith.addf %366, %370 : vector<16x64xf32>
    %cst_123 = arith.constant 0.000000e+00 : f32
    %372 = vector.broadcast %cst_123 : f32 to vector<16x64xf32>
    %373 = arith.maximumf %371, %372 : vector<16x64xf32>
    %374 = vector.extract_strided_slice %1 {offsets = [0, 64], sizes = [64, 4], strides = [1, 1]} : vector<64x68xf32> to vector<64x4xf32>
    %cst_124 = arith.constant dense<0.000000e+00> : vector<16x4xf32>
    %375 = tpu.matmul %373, %374, %cst_124 {dimension_numbers = #tpu.dot_dimension_numbers<[1], [0], [0], [1], [0, 0, 1, 1], [], []>} : vector<16x64xf32>, vector<64x4xf32>, vector<16x4xf32> -> vector<16x4xf32>
    %c19 = arith.constant 19 : index
    %c0_125 = arith.constant 0 : index
    %c0_126 = arith.constant 0 : index
    %376 = vector.load %arg7[%c19, %c0_125, %c0_126] : memref<20x1x96xf32, #tpu.memory_space<vmem>>, vector<1x1x96xf32>
    %377 = vector.shape_cast %376 : vector<1x1x96xf32> to vector<1x96xf32>
    %378 = vector.extract_strided_slice %377 {offsets = [0, 0], sizes = [1, 4], strides = [1, 1]} : vector<1x96xf32> to vector<1x4xf32>
    %379 = vector.broadcast %378 : vector<1x4xf32> to vector<16x4xf32>
    %380 = arith.addf %375, %379 : vector<16x4xf32>
    %381 = vector.extract_strided_slice %380 {offsets = [0, 0], sizes = [16, 2], strides = [1, 1]} : vector<16x4xf32> to vector<16x2xf32>
    %382 = vector.extract_strided_slice %380 {offsets = [0, 2], sizes = [16, 2], strides = [1, 1]} : vector<16x4xf32> to vector<16x2xf32>
    %c0_127 = arith.constant 0 : index
    %c0_128 = arith.constant 0 : index
    %383 = vector.load %arg2[%c0_127, %c0_128] : memref<16x4xf32, #tpu.memory_space<vmem>>, vector<16x4xf32>
    %384 = vector.extract_strided_slice %383 {offsets = [0, 0], sizes = [16, 2], strides = [1, 1]} : vector<16x4xf32> to vector<16x2xf32>
    %385 = vector.extract_strided_slice %383 {offsets = [0, 2], sizes = [16, 1], strides = [1, 1]} : vector<16x4xf32> to vector<16x1xf32>
    %386 = vector.extract_strided_slice %383 {offsets = [0, 3], sizes = [16, 1], strides = [1, 1]} : vector<16x4xf32> to vector<16x1xf32>
    %cst_129 = arith.constant 0.000000e+00 : f32
    %387 = vector.broadcast %cst_129 : f32 to vector<16x1xf32>
    %388 = arith.cmpf ogt, %385, %387 : vector<16x1xf32>
    %cst_130 = arith.constant -1.000000e+30 : f32
    %389 = vector.shape_cast %388 : vector<16x1xi1> to vector<16x1xi1>
    %390 = vector.broadcast %389 : vector<16x1xi1> to vector<16x2xi1>
    %391 = vector.broadcast %cst_130 : f32 to vector<16x2xf32>
    %392 = arith.select %390, %381, %391 : vector<16x2xi1>, vector<16x2xf32>
    %cst_131 = arith.constant dense<0xFF800000> : vector<2xf32>
    %393 = vector.multi_reduction <maximumf>, %392, %cst_131 [0] : vector<16x2xf32> to vector<2xf32>
    %394 = vector.shape_cast %393 : vector<2xf32> to vector<1x2xf32>
    %395 = vector.broadcast %394 : vector<1x2xf32> to vector<16x2xf32>
    %396 = arith.subf %392, %395 : vector<16x2xf32>
    %397 = math.exp %396 : vector<16x2xf32>
    %cst_132 = arith.constant 0.000000e+00 : f32
    %398 = vector.broadcast %cst_132 : f32 to vector<16x1xf32>
    %399 = arith.cmpf ogt, %385, %398 : vector<16x1xf32>
    %cst_133 = arith.constant 0.000000e+00 : f32
    %400 = vector.shape_cast %399 : vector<16x1xi1> to vector<16x1xi1>
    %401 = vector.broadcast %400 : vector<16x1xi1> to vector<16x2xi1>
    %402 = vector.broadcast %cst_133 : f32 to vector<16x2xf32>
    %403 = arith.select %401, %397, %402 : vector<16x2xi1>, vector<16x2xf32>
    %c0_134 = arith.constant 0 : index
    %c0_135 = arith.constant 0 : index
    %404 = vector.load %arg3[%c0_134, %c0_135] : memref<16x16xf32, #tpu.memory_space<vmem>>, vector<16x16xf32>
    %cst_136 = arith.constant dense<0.000000e+00> : vector<16x2xf32>
    %405 = tpu.matmul %404, %403, %cst_136 {dimension_numbers = #tpu.dot_dimension_numbers<[1], [0], [0], [1], [0, 0, 1, 1], [], []>} : vector<16x16xf32>, vector<16x2xf32>, vector<16x2xf32> -> vector<16x2xf32>
    %cst_137 = arith.constant 0.000000e+00 : f32
    %406 = vector.broadcast %cst_137 : f32 to vector<16x1xf32>
    %407 = arith.cmpf ogt, %385, %406 : vector<16x1xf32>
    %cst_138 = arith.constant 1.000000e-30 : f32
    %408 = vector.broadcast %cst_138 : f32 to vector<16x2xf32>
    %409 = arith.maximumf %405, %408 : vector<16x2xf32>
    %410 = arith.divf %403, %409 : vector<16x2xf32>
    %cst_139 = arith.constant 0.000000e+00 : f32
    %411 = vector.shape_cast %407 : vector<16x1xi1> to vector<16x1xi1>
    %412 = vector.broadcast %411 : vector<16x1xi1> to vector<16x2xi1>
    %413 = vector.broadcast %cst_139 : f32 to vector<16x2xf32>
    %414 = arith.select %412, %410, %413 : vector<16x2xi1>, vector<16x2xf32>
    %415 = arith.cmpf one, %414, %414 : vector<16x2xf32>
    %cst_140 = arith.constant 0.000000e+00 : f32
    %416 = vector.broadcast %cst_140 : f32 to vector<16x2xf32>
    %417 = arith.select %415, %416, %414 : vector<16x2xi1>, vector<16x2xf32>
    %cst_141 = arith.constant 0x7F800000 : f32
    %418 = vector.broadcast %cst_141 : f32 to vector<16x2xf32>
    %419 = arith.cmpf oeq, %417, %418 : vector<16x2xf32>
    %cst_142 = arith.constant 1.000000e+06 : f32
    %420 = vector.broadcast %cst_142 : f32 to vector<16x2xf32>
    %421 = arith.select %419, %420, %417 : vector<16x2xi1>, vector<16x2xf32>
    %cst_143 = arith.constant 0xFF800000 : f32
    %422 = vector.broadcast %cst_143 : f32 to vector<16x2xf32>
    %423 = arith.cmpf oeq, %421, %422 : vector<16x2xf32>
    %cst_144 = arith.constant -1.000000e+06 : f32
    %424 = vector.broadcast %cst_144 : f32 to vector<16x2xf32>
    %425 = arith.select %423, %424, %421 : vector<16x2xi1>, vector<16x2xf32>
    %426 = math.exp %382 : vector<16x2xf32>
    %427 = arith.cmpf one, %426, %426 : vector<16x2xf32>
    %cst_145 = arith.constant 1.000000e+00 : f32
    %428 = vector.broadcast %cst_145 : f32 to vector<16x2xf32>
    %429 = arith.select %427, %428, %426 : vector<16x2xi1>, vector<16x2xf32>
    %cst_146 = arith.constant 0x7F800000 : f32
    %430 = vector.broadcast %cst_146 : f32 to vector<16x2xf32>
    %431 = arith.cmpf oeq, %429, %430 : vector<16x2xf32>
    %cst_147 = arith.constant 1.000000e+06 : f32
    %432 = vector.broadcast %cst_147 : f32 to vector<16x2xf32>
    %433 = arith.select %431, %432, %429 : vector<16x2xi1>, vector<16x2xf32>
    %cst_148 = arith.constant 0xFF800000 : f32
    %434 = vector.broadcast %cst_148 : f32 to vector<16x2xf32>
    %435 = arith.cmpf oeq, %433, %434 : vector<16x2xf32>
    %cst_149 = arith.constant 9.99999997E-7 : f32
    %436 = vector.broadcast %cst_149 : f32 to vector<16x2xf32>
    %437 = arith.select %435, %436, %433 : vector<16x2xi1>, vector<16x2xf32>
    %cst_150 = arith.constant 9.99999997E-7 : f32
    %438 = vector.broadcast %cst_150 : f32 to vector<16x2xf32>
    %439 = arith.maximumf %437, %438 : vector<16x2xf32>
    %440 = arith.subf %384, %425 : vector<16x2xf32>
    %441 = arith.divf %440, %439 : vector<16x2xf32>
    %cst_151 = arith.constant -5.000000e-01 : f32
    %442 = vector.broadcast %cst_151 : f32 to vector<16x2xf32>
    %443 = arith.mulf %442, %441 : vector<16x2xf32>
    %444 = arith.mulf %443, %441 : vector<16x2xf32>
    %445 = math.log %439 : vector<16x2xf32>
    %446 = arith.subf %444, %445 : vector<16x2xf32>
    %cst_152 = arith.constant 0.918938517 : f32
    %447 = vector.broadcast %cst_152 : f32 to vector<16x2xf32>
    %448 = arith.subf %446, %447 : vector<16x2xf32>
    %449 = vector.broadcast %386 : vector<16x1xf32> to vector<16x2xf32>
    %450 = arith.mulf %448, %449 : vector<16x2xf32>
    %cst_153 = arith.constant dense<0.000000e+00> : vector<16xf32>
    %451 = vector.multi_reduction <add>, %450, %cst_153 [1] : vector<16x2xf32> to vector<16xf32>
    %452 = vector.shape_cast %451 : vector<16xf32> to vector<16x1xf32>
    %cst_154 = arith.constant dense<0.000000e+00> : vector<1xf32>
    %453 = vector.multi_reduction <add>, %452, %cst_154 [0] : vector<16x1xf32> to vector<1xf32>
    %454 = vector.shape_cast %453 : vector<1xf32> to vector<1x1xf32>
    %455 = vector.shape_cast %454 : vector<1x1xf32> to vector<1x1xf32>
    %456 = vector.broadcast %455 : vector<1x1xf32> to vector<8x128xf32>
    %c0_155 = arith.constant 0 : index
    %c0_156 = arith.constant 0 : index
    %c0_157 = arith.constant 0 : index
    %457 = vector.load %arg8[%c0_155, %c0_156, %c0_157] : memref<1x8x128xf32, #tpu.memory_space<vmem>>, vector<1x8x128xf32>
    %458 = vector.shape_cast %457 : vector<1x8x128xf32> to vector<8x128xf32>
    %459 = vector.shape_cast %456 : vector<8x128xf32> to vector<1x8x128xf32>
    tpu.vector_store %arg8[%c0_155, %c0_156, %c0_157], %459 {strides = array<i32>} : memref<1x8x128xf32, #tpu.memory_space<vmem>>, vector<1x8x128xf32>,
    return
  }
  func.func @transform_0(%arg0: i32) -> (i32, i32) {
    %c0_i32 = arith.constant 0 : i32
    %c0_i32_0 = arith.constant 0 : i32
    return %arg0, %c0_i32 : i32, i32
  }
  func.func @transform_1(%arg0: i32) -> (i32, i32) {
    %c0_i32 = arith.constant 0 : i32
    %c0_i32_0 = arith.constant 0 : i32
    return %arg0, %c0_i32 : i32, i32
  }
  func.func @transform_2(%arg0: i32) -> (i32, i32) {
    %c0_i32 = arith.constant 0 : i32
    %c0_i32_0 = arith.constant 0 : i32
    return %arg0, %c0_i32 : i32, i32
  }
  func.func @transform_3(%arg0: i32) -> (i32, i32) {
    %c0_i32 = arith.constant 0 : i32
    %c0_i32_0 = arith.constant 0 : i32
    %c0_i32_1 = arith.constant 0 : i32
    return %c0_i32, %c0_i32_0 : i32, i32
  }
  func.func @transform_4(%arg0: i32) -> (i32, i32) {
    %c0_i32 = arith.constant 0 : i32
    %c0_i32_0 = arith.constant 0 : i32
    %c0_i32_1 = arith.constant 0 : i32
    return %c0_i32, %c0_i32_0 : i32, i32
  }
  func.func @transform_5(%arg0: i32) -> (i32, i32) {
    %c0_i32 = arith.constant 0 : i32
    %c0_i32_0 = arith.constant 0 : i32
    %c0_i32_1 = arith.constant 0 : i32
    return %c0_i32, %c0_i32_0 : i32, i32
  }
  func.func @transform_6(%arg0: i32) -> (i32, i32, i32) {
    %c0_i32 = arith.constant 0 : i32
    %c0_i32_0 = arith.constant 0 : i32
    %c0_i32_1 = arith.constant 0 : i32
    %c0_i32_2 = arith.constant 0 : i32
    return %c0_i32, %c0_i32_0, %c0_i32_1 : i32, i32, i32
  }
  func.func @transform_7(%arg0: i32) -> (i32, i32, i32) {
    %c0_i32 = arith.constant 0 : i32
    %c0_i32_0 = arith.constant 0 : i32
    %c0_i32_1 = arith.constant 0 : i32
    return %arg0, %c0_i32, %c0_i32_0 : i32, i32, i32
  }
}

</mosaic_0001>

<bundles_post_ra>
// kernel: fwd.1
= control target key start
LH: loop header
LB: loop body
LE: loop exit
PB: predicated region body
PF: predicated region fallthrough
CT: control target
= control target key end

     0   :  { %12 = vsyncpa [#allocation3], 0  ;;  %s7110_s0 = inlined_call_operand.vmem [shape: f32[32,5], index: 0, kind: input, shape index: {}]   ;;  %s7111_s1 = inlined_call_operand.vmem [shape: f32[16,4], index: 1, kind: input, shape index: {}]   ;;  %s7112_s2 = inlined_call_operand.hbm [shape: f32[16,16], index: 2, kind: input, shape index: {}]   ;;  %s7113_s3 = inlined_call_operand.vmem [shape: f32[5,32], index: 3, kind: input, shape index: {}]   ;;  %s7114_s4 = inlined_call_operand.vmem [shape: f32[32,480], index: 4, kind: input, shape index: {}]   ;;  %s7115_s5 = inlined_call_operand.hbm [shape: f32[64,68], index: 5, kind: input, shape index: {}]   ;;  %s7116_s6 = inlined_call_operand.hbm [shape: f32[20,1,96], index: 6, kind: input, shape index: {}]   ;;  %s7117_s7 = inlined_call_operand.vmem [shape: f32[1,8,128], index: 7, kind: output, shape index: {}]  }
   0x1   :  { %13 = vsyncpa [#allocation5], 0  ;;  %s6120_s24 = smov [#allocation4]   ;;  %s6121_s26 = smov [#allocation2]  }
   0x2   :  { %s39_s25 = sshll.u32 %s6120_s24, 4  ;;  %s23_s27 = sshll.u32 %s6121_s26, 4  ;;  %s40_s25 = int_to_ptr.vmem [resolvable:$true] %s39_s25  ;;  %s6188_s27 = int_to_ptr.vmem [resolvable:$true] %s23_s27 }
   0x3   :  { %s6050_s30 = scalar_lea.hbm %s7115_s5, 1024 }
   0x4   :  { %p6051_p0 = scmp.ne.s32.totalorder %s7115_s5, %s6050_s30  ;;  %p6054_p1 = scmp.lt.u32.totalorder %s6050_s30, %s7115_s5 }
   0x6   :  { %p6056_p2 = pnand %p6054_p1, %p6051_p0 }
   0x8   :  { %6059 = shalt.err (!%p6056_p2)
}
   0x9   :  { %s6060_s12 = scalar_lea.vmem %s40_s25, 1024  ;;  %p6065_p4 = scmp.lt.s32.totalorder %s40_s25, %s40_s25 }
   0xa   :  { %p6061_p3 = scmp.ne.s32.totalorder %s40_s25, %s6060_s12  ;;  %p6066_p5 = scmp.lt.s32.totalorder %s6060_s12, %s6060_s12 }
   0xc   :  { %p6067_p6 = por %p6066_p5, %p6065_p4 }
   0xe   :  { %p6068_p7 = pnand %p6067_p6, %p6061_p3 }
  0x10   :  { %6071 = shalt.err (!%p6068_p7)
}
  0x11   :  { %s6122_s13 = smov 128   ;;  %s6123_s14 = smov 8  }
  0x12   :  { %45 = dma.hbm_to_vmem [thread:$0]  %s7115_s5, 1024, %s40_s25, [#allocation5], %s6122_s13, %s6122_s13, %s6123_s14  }
  0x13   :  { %s6072_s19 = scalar_lea.hbm %s7112_s2, 256 }
  0x14   :  { %p6073_p8 = scmp.ne.s32.totalorder %s7112_s2, %s6072_s19  ;;  %p6076_p9 = scmp.lt.u32.totalorder %s6072_s19, %s7112_s2 }
  0x16   :  { %p6078_p10 = pnand %p6076_p9, %p6073_p8 }
  0x18   :  { %6081 = shalt.err (!%p6078_p10)
}
  0x19   :  { %s6082_s24 = scalar_lea.vmem %s6188_s27, 256  ;;  %p6087_p12 = scmp.lt.s32.totalorder %s6188_s27, %s6188_s27 }
  0x1a   :  { %p6083_p11 = scmp.ne.s32.totalorder %s6188_s27, %s6082_s24  ;;  %p6088_p13 = scmp.lt.s32.totalorder %s6082_s24, %s6082_s24 }
  0x1c   :  { %p6089_p0 = por %p6088_p13, %p6087_p12 }
  0x1e   :  { %p6090_p1 = pnand %p6089_p0, %p6083_p11 }
  0x20   :  { %6093 = shalt.err (!%p6090_p1)
}
  0x21   :  { %29 = dma.hbm_to_vmem [thread:$0]  %s7112_s2, 256, %s6188_s27, [#allocation3], %s6122_s13, %s6122_s13, %s6123_s14  }
  0x22   :  { %s6124_s26 = smov [#allocation6]   ;;  %s6094_s8 = scalar_lea.hbm %s7116_s6, 320 }
  0x23   :  { %s51_s28 = sshll.u32 %s6124_s26, 4  ;;  %p6095_p2 = scmp.ne.s32.totalorder %s7116_s6, %s6094_s8  ;;  %s52_s28 = int_to_ptr.vmem [resolvable:$true] %s51_s28 }
  0x24   :  { %p6098_p3 = scmp.lt.u32.totalorder %s6094_s8, %s7116_s6 }
  0x26   :  { %p6100_p4 = pnand %p6098_p3, %p6095_p2 }
  0x28   :  { %6103 = shalt.err (!%p6100_p4)
}
  0x29   :  { %s6104_s15 = scalar_lea.vmem %s52_s28, 320  ;;  %p6109_p6 = scmp.lt.s32.totalorder %s52_s28, %s52_s28 }
  0x2a   :  { %p6105_p5 = scmp.ne.s32.totalorder %s52_s28, %s6104_s15  ;;  %p6110_p7 = scmp.lt.s32.totalorder %s6104_s15, %s6104_s15 }
  0x2c   :  { %p6111_p8 = por %p6110_p7, %p6109_p6 }
  0x2e   :  { %p6112_p9 = pnand %p6111_p8, %p6105_p5 }
  0x30   :  { %6115 = shalt.err (!%p6112_p9)
}
  0x31   :  { %s6125_s2 = smov 16   ;;  %s6126_s27 = smov 1  }
  0x32   :  { %57 = dma.hbm_to_vmem [thread:$0]  %s7116_s6, 320, %s52_s28, [#allocation5], %s6125_s2, %s6125_s2, %s6126_s27  }
  0x33   :  { %6116 = dma.done.wait [#allocation3], 256  }
  0x34   :  { %6117 = vsyncadd [#allocation3], 4294967040 }
  0x35   :  { %6118 = dma.done.wait [#allocation5], 1344  }
  0x36   :  { %6119 = vsyncadd [#allocation5], 4294965952  ;;  %v6127_v0 = vmov 0.0|0.0   ;;  %vm6128_vm0 = vmmov 0   ;;  %v6129_v1 = vmov 0.0   ;;  %vm95_vm1 = vcmask 23552  }
  0x37   :  { %5278 = vmatprep.subr.bf16.mxu0 %v6127_v0  ;;  %4864 = vmatprep.mubr.msk.f32.mxu0 %vm6128_vm0, %v6129_v1  ;;  %v91_v2 = vld [vmem:[%s7110_s0] sm:$0xff]  ;;  %v92_v3 = vld [vmem:[%s7110_s0 + $0x8] sm:$0xff]  ;;  %vm5280_vm2 = vmpackc.low %vm95_vm1, %vm95_vm1  ;;  %vm275_vm3 = vcmask 1044480   ;;  %vm266_vm4 = vcmask 39936   ;;  %v6130_v9 = vmov 1.0   ;;  %s6131_s9 = smov 96  }
  0x38   :  { %v5279_v4 = vpack.c.bf16 %v92_v3, %v91_v2  ;;  %v93_v5 = vld [vmem:[%s7110_s0 + $0x10] sm:$0xff]  ;;  %v94_v6 = vld [vmem:[%s7110_s0 + $0x18] sm:$0xff]  ;;  %v258_v8 = vld [vmem:[%s7113_s3] sm:$0x1f]  ;;  %vm7119_vm5 = vcmask 261120   ;;  %vm7118_vm6 = vcmask 64512  }
  0x39   :  { %v5283_v7 = vpack.c.bf16 %v94_v6, %v93_v5  ;;  %v67_v10 = vld [vmem:[%s7114_s4] sm:$0xff]  ;;  %v4451_v20 = vld [vmem:[#allocation6] ss:$0 sm:$0xff]  ;;  %v4457_v41 = vld [vmem:[#allocation6 + $0x1] ss:$0 sm:$0xff]  ;;  %s6133_s10 = smov 64  }
  0x3a   :  { %5281 = vmatpush3.bf16.xpose.msk.msra.mxu0 %vm5280_vm2, %v5279_v4  ;;  %v71_v11 = vld [vmem:[%s7114_s4 + $0x20] sm:$0xff]  ;;  %v4462_v50 = vld [vmem:[#allocation6 + $0x2] ss:$0 sm:$0xff]  ;;  %vm6314_vm7 = vmpackc.low %vm7118_vm6, %vm7118_vm6  ;;  %s6134_s11 = smov 88   ;;  %s6135_s12 = smov 120  }
  0x3b   :  { %5282 = vmatprep.subr.bf16.mxu0 %v6127_v0  ;;  %v5286_v12 = vpack.c.bf16 %v71_v11, %v67_v10  ;;  %v75_v13 = vld [vmem:[%s7114_s4 + $0x40] sm:$0xff]  ;;  %v5592_v16 = vpack.i.bf16 %v71_v11, %v67_v10  ;;  %v7122_v0 = vmov 0  ;;  %v6132_v11 = vmov 0   ;;  %s6136_s15 = smov 56   ;;  %s6137_s27 = smov 80  }
  0x3c   :  { %v79_v14 = vld [vmem:[%s7114_s4 + $0x60] sm:$0xff]  ;;  %v7123_v0 = vsel %vm6314_vm7, 4294967295, %v7122_v0  ;;  %s6138_s13 = smov 112   ;;  %s6139_s16 = smov 48  }
  0x3d   :  { %5287 = vmatprep.subr.bf16.mxu1 %v5286_v12  ;;  %v5290_v15 = vpack.c.bf16 %v79_v14, %v75_v13  ;;  %5593 = vrot.lane.b32.xlu0 %v5592_v16, %s6131_s9  ;;  %v5597_v17 = vpack.i.bf16 %v79_v14, %v75_v13  ;;  %s6140_s17 = smov 72   ;;  %s6141_s18 = smov 104  }
  0x3e   :  { %5289 = vmatpush3.bf16.msra.mxu1 %v5286_v12  ;;  %s6142_s19 = smov 40   ;;  %s6143_s26 = smov 24  }
  0x3f   :  { %5291 = vmatprep.subr.bf16.mxu1 %v5290_v15  ;;  %s6144_s3 = smov 32  }
  0x41   :  { %5598 = vrot.lane.b32.xlu0 %v5597_v17, %s6131_s9 }
  0x42   :  { %5285 = vmatpush3.bf16.xpose.msk.msra.mxu0 %vm5280_vm2, %v5283_v7  ;;  %5293 = vmatpush3.bf16.msra.mxu1 %v5290_v15  ;;  %v181_v7 = vlaneseq }
  0x43   :  { %4867 = vmatprep.subr.msk.mxu0 %vm275_vm3, %v258_v8 }
  0x49   :  { %4865 = vmatmul.mubr.msk.f32.vlgmr.msra.gmra.mrb[0].mxu0 %vm95_vm1, %v6130_v9  ;;  %v246_v9 = vshrl.u32 %v181_v7, 7 }
  0x4a   :  { %4868 = vmatpush3.msk.msra.mxu0 %vm275_vm3, %v258_v8  ;;  %4869 = vmatprep.mubr.msk.f32.mxu0 %vm266_vm4, %v91_v2  ;;  %v182_v8 = vand.u32 127, %v181_v7 }
  0x4b   :  { %v247_v10 = vsub.s32 0, %v246_v9 }
  0x4c   :  { %vm188_vm9 = vcmp.ge.s32.totalorder %v182_v8, 8  ;;  %vm189_vm10 = vcmp.lt.s32.totalorder %v182_v8, 16  ;;  %vm210_vm11 = vcmp.ge.s32.totalorder %v182_v8, 24  ;;  %vm211_vm12 = vcmp.lt.s32.totalorder %v182_v8, 32 }
  0x4d   :  { %4870 = vmatmul.mubr.msk.f32.vlgmr.msra.gmra.mrb[2].mxu0 %vm266_vm4, %v92_v3  ;;  %vm190_vm13 = vmand %vm188_vm9, %vm189_vm10  ;;  %vm204_vm14 = vcmp.ge.s32.totalorder %v182_v8, 16  ;;  %vm225_vm1 = vcmp.ge.s32.totalorder %v182_v8, 32  ;;  %vm7124_vm9 = vcmask 261120  }
  0x4e   :  { %4872 = vmatprep.mubr.msk.f32.mxu0 %vm266_vm4, %v93_v5  ;;  %vm212_vm15 = vmand %vm210_vm11, %vm211_vm12 }
  0x4f   :  { %vm231_vm0 = vmor %vm190_vm13, %vm204_vm14  ;;  %vm7132_vm14 = vnez %v7123_v0 }
  0x50   :  { %vm235_vm2 = vmor %vm231_vm0, %vm212_vm15 }
  0x51   :  { %4873 = vmatmul.mubr.msk.f32.gmra.mrb[4].mxu0 %vm266_vm4, %v94_v6  ;;  %vm226_vm4 = vmor %vm189_vm10, %vm225_vm1 }
  0x52   :  { %vm7125_vm11 = vmmov %vm7124_vm9 }
  0xaf   :  { %v5594_v21 = vpop.permute.xlu0 %5593 }
  0xb0   :  { %v5596_v23 = vunpack.i.h.bf16 %v5594_v21  ;;  %v5595_v24 = vunpack.i.l.bf16 %v5594_v21 }
  0xb2   :  { %v5294_v28 = vpack.c.bf16 %v5596_v23, %v5595_v24 }
  0xb3   :  { %v5599_v37 = vpop.permute.xlu0 %5598 }
  0xb4   :  { %5295 = vmatprep.subr.bf16.mxu1 %v5294_v28  ;;  %v5601_v38 = vunpack.i.h.bf16 %v5599_v37  ;;  %v5600_v39 = vunpack.i.l.bf16 %v5599_v37 }
  0xb6   :  { %v5298_v40 = vpack.c.bf16 %v5601_v38, %v5600_v39 }
 0x11c   :  { %v6268_v18 = vpop.f32.mrb[0].mxu0 }
 0x11d   :  { %v4866_v19 = vpop.f32.mrb[1].mxu0  ;;  %vm243_vm8 = vcmp.eq.f32.partialorder %v6268_v18, 0.0 }
 0x11e   :  { %v244_v12 = vsel %vm243_vm8, 1, %v6132_v11 }
 0x11f   :  { %v248_v13 = vrot.slane %v244_v12, %v247_v10 }
 0x120   :  { %v4871_v22 = vpop.f32.mrb[2].mxu0 }
 0x121   :  { %v351_v25 = vadd.f32 %v4871_v22, %v4451_v20  ;;  %v345_v26 = vpop.f32.mrb[3].mxu0  ;;  %vm249_vm3 = vcmp.eq.s32.totalorder %v248_v13, 1 }
 0x122   :  { %v346_v27 = vadd.f32 %v4451_v20, %v345_v26 }
 0x123   :  { %v365_v31 = vmax.f32 %v351_v25, 0.0 }
 0x124   :  { %v364_v29 = vmax.f32 %v346_v27, 0.0  ;;  %v4874_v30 = vpop.f32.mrb[4].mxu0 }
 0x125   :  { %v361_v32 = vadd.f32 %v4874_v30, %v4451_v20  ;;  %v355_v33 = vpop.f32.mrb[5].mxu0 }
 0x126   :  { %v356_v34 = vadd.f32 %v4451_v20, %v355_v33  ;;  %4883 = vmatprep.mubr.msk.f32.mxu1 %vm7119_vm5, %v364_v29 }
 0x127   :  { %v367_v35 = vmax.f32 %v361_v32, 0.0  ;;  %4884 = vmatmul.mubr.msk.f32.vlgmr.msra.gmra.mrb[0].mxu1 %vm7119_vm5, %v365_v31 }
 0x128   :  { %v366_v36 = vmax.f32 %v356_v34, 0.0  ;;  %5297 = vmatpush3.bf16.msra.mxu1 %v5294_v28 }
 0x129   :  { %5299 = vmatprep.subr.bf16.mxu1 %v5298_v40 }
 0x12a   :  { %4886 = vmatprep.mubr.msk.f32.mxu1 %vm7119_vm5, %v366_v36 }
 0x12b   :  { %4887 = vmatmul.mubr.msk.f32.gmra.mrb[2].mxu1 %vm7119_vm5, %v367_v35 }
 0x12c   :  { %5301 = vmatpush3.bf16.msra.mxu1 %v5298_v40 }
 0x1fa   :  { %v4885_v42 = vpop.f32.mrb[0].mxu1 }
 0x1fb   :  { %v455_v43 = vpop.f32.mrb[1].mxu1  ;;  %v6276_v45 = vadd.f32 %v4885_v42, %v4457_v41 }
 0x1fc   :  { %v6274_v44 = vadd.f32 %v4457_v41, %v455_v43 }
 0x1fe   :  { %v4888_v46 = vpop.f32.mrb[2].mxu1  ;;  %4897 = vmatprep.mubr.msk.f32.mxu1 %vm7119_vm5, %v6274_v44 }
 0x1ff   :  { %v6280_v47 = vadd.f32 %v4888_v46, %v4457_v41  ;;  %v465_v48 = vpop.f32.mrb[3].mxu1  ;;  %4898 = vmatmul.mubr.msk.f32.vlgmr.msra.gmra.mrb[4].mxu1 %vm7119_vm5, %v6276_v45 }
 0x200   :  { %v6284_v49 = vadd.f32 %v4457_v41, %v465_v48 }
 0x202   :  { %4900 = vmatprep.mubr.msk.f32.mxu1 %vm7119_vm5, %v6284_v49 }
 0x203   :  { %4901 = vmatmul.mubr.msk.f32.gmra.mrb[6].mxu1 %vm7119_vm5, %v6280_v47  ;;  %vm250_vm5 = vmor %vm235_vm2, %vm249_vm3 }
 0x204   :  { %v6335_v14 = vsel %vm250_vm5, -1e+30, %v6129_v1  ;;  %vm7126_vm5 = vmmov %vm7124_vm9 }
 0x205   :  { %vm7129_vm10 = vmmov %vm7126_vm5 }
 0x206   :  { %vm7130_vm12 = vmmov %vm7126_vm5 }
 0x207   :  { %vm7134_vm0 = vmmov %vm7126_vm5 }
 0x208   :  { %vm7135_vm1 = vmmov %vm7134_vm0 }
 0x209   :  { %vm7136_vm2 = vmmov %vm7134_vm0 }
 0x2d2   :  { %v4899_v51 = vpop.f32.mrb[4].mxu1 }
 0x2d3   :  { %v6290_v52 = vadd.f32 %v4899_v51, %v4462_v50  ;;  %v576_v53 = vpop.f32.mrb[5].mxu1 }
 0x2d4   :  { %v6292_v54 = vadd.f32 %v4462_v50, %v576_v53 }
 0x2d6   :  { %v4902_v55 = vpop.f32.mrb[6].mxu1  ;;  %4911 = vmatprep.mubr.msk.f32.mxu0 %vm7118_vm6, %v6292_v54  ;;  %v6298_v56 = vpack.i.bf16 %v6290_v52, %v6292_v54 }
 0x2d7   :  { %v6300_v57 = vadd.f32 %v4902_v55, %v4462_v50  ;;  %v586_v58 = vpop.f32.mrb[7].mxu1 }
 0x2d8   :  { %v6302_v59 = vadd.f32 %v4462_v50, %v586_v58  ;;  %5603 = vrot.lane.b32.xlu1 %v6298_v56, %s6131_s9 }
 0x2da   :  { %v6308_v60 = vpack.i.bf16 %v6300_v57, %v6302_v59 }
 0x2dc   :  { %5608 = vrot.lane.b32.xlu1 %v6308_v60, %s6131_s9 }
 0x34a   :  { %v5604_v61 = vpop.permute.xlu1 %5603 }
 0x34b   :  { %v5606_v62 = vunpack.i.h.bf16 %v5604_v61  ;;  %v5605_v63 = vunpack.i.l.bf16 %v5604_v61 }
 0x34d   :  { %v5302_v2 = vpack.c.bf16 %v5606_v62, %v5605_v63 }
 0x34e   :  { %v5609_v3 = vpop.permute.xlu1 %5608 }
 0x34f   :  { %v5611_v4 = vunpack.i.h.bf16 %v5609_v3  ;;  %v5610_v5 = vunpack.i.l.bf16 %v5609_v3  ;;  %5304 = vmatprep.subr.msk.bf16.mxu0 %vm6314_vm7, %v5302_v2 }
 0x350   :  { %5307 = vmatpush3.bf16.xpose.msk.msra.mxu0 %vm6314_vm7, %v5302_v2 }
 0x351   :  { %v5308_v6 = vpack.c.bf16 %v5611_v4, %v5610_v5 }
 0x353   :  { %5310 = vmatprep.subr.msk.bf16.mxu0 %vm6314_vm7, %v5308_v6 }
 0x358   :  { %5313 = vmatpush3.bf16.xpose.msk.msra.mxu0 %vm6314_vm7, %v5308_v6 }
 0x35f   :  { %4912 = vmatmul.mubr.msk.f32.vlgmr.msra.gmra.mrb[6].mxu0 %vm7118_vm6, %v6290_v52 }
 0x360   :  { %4914 = vmatprep.mubr.msk.f32.mxu0 %vm7118_vm6, %v6302_v59 }
 0x363   :  { %4915 = vmatmul.mubr.msk.f32.gmra.mrb[8].mxu0 %vm7118_vm6, %v6300_v57  ;;  %vm237_vm6 = vmor %vm190_vm13, %vm212_vm15 }
 0x364   :  { %vm241_vm7 = vmor %vm237_vm6, %vm226_vm4 }
 0x365   :  { %vm252_vm8 = vmor %vm241_vm7, %vm249_vm3  ;;  %vm7137_vm3 = vcmask 64512  }
 0x366   :  { %v6342_v22 = vsel %vm252_vm8, -1e+30, %v6129_v1  ;;  %vm7127_vm6 = vmmov %vm7126_vm5 }
 0x367   :  { %vm7128_vm7 = vmmov %vm7126_vm5 }
 0x368   :  { %vm7131_vm13 = vmmov %vm7126_vm5 }
 0x369   :  { %vm7133_vm15 = vmmov %vm7126_vm5 }
 0x36a   :  { %vm7138_vm4 = vmmov %vm7137_vm3 }
 0x36b   :  { %vm7139_vm8 = vmmov %vm7137_vm3 }
 0x432   :  { %v4913_v15 = vpop.f32.mrb[6].mxu0 }
 0x433   :  { %v696_v16 = vadd.f32 %v4913_v15, %v6335_v14  ;;  %v690_v17 = vpop.f32.mrb[7].mxu0 }
 0x434   :  { %v691_v18 = vadd.f32 %v690_v17, %v6335_v14 }
 0x435   :  { %v712_v19 = vsel %vm7124_vm9, %v696_v16, -inf  ;;  %vm7140_vm9 = vmmov %vm7137_vm3 }
 0x436   :  { %713 = vmax.xlane.f32.xlu1 %v712_v19  ;;  %v4916_v20 = vpop.f32.mrb[8].mxu0  ;;  %v709_v21 = vsel %vm7125_vm11, %v691_v18, -inf  ;;  %vm7141_vm11 = vmmov %vm7134_vm0 }
 0x437   :  { %v700_v23 = vpop.f32.mrb[9].mxu0  ;;  %710 = vmax.xlane.f32.xlu0 %v709_v21  ;;  %v706_v25 = vadd.f32 %v4916_v20, %v6342_v22 }
 0x438   :  { %v701_v24 = vadd.f32 %v700_v23, %v6342_v22 }
 0x439   :  { %v718_v27 = vsel %vm7127_vm6, %v706_v25, -inf  ;;  %vm7143_vm6 = vmmov %vm7134_vm0 }
 0x43a   :  { %v715_v26 = vsel %vm7126_vm5, %v701_v24, -inf  ;;  %vm7142_vm5 = vmmov %vm7134_vm0 }
 0x43b   :  { %716 = vmax.xlane.f32.xlu0 %v715_v26 }
 0x43f   :  { %719 = vmax.xlane.f32.xlu0 %v718_v27 }
 0x447   :  { %5613 = vrot.lane.b32.xlu1 %v6298_v56, %s6133_s10 }
 0x44b   :  { %5623 = vrot.lane.b32.xlu1 %v6298_v56, %s6134_s11 }
 0x4c3   :  { %v714_v1 = vpop.xlane.xlu1 %713 }
 0x4c4   :  { %v722_v28 = vsub.f32 %v696_v16, %v714_v1  ;;  %v711_v29 = vpop.xlane.xlu0 %710 }
 0x4c5   :  { %v721_v30 = vsub.f32 %v691_v18, %v711_v29 }
 0x4c6   :  { %v727_v31 = vmul.f32 1.442695, %v722_v28 }
 0x4c7   :  { %v725_v32 = vmul.f32 1.442695, %v721_v30  ;;  %v5614_v33 = vpop.permute.xlu1 %5613 }
 0x4c8   :  { %5866 = vpow2.f32 %v727_v31  ;;  %v5616_v34 = vunpack.i.h.bf16 %v5614_v33  ;;  %v5615_v35 = vunpack.i.l.bf16 %v5614_v33  ;;  %v717_v41 = vpop.xlane.xlu0 %716 }
 0x4c9   :  { %5868 = vpow2.f32 %v725_v32  ;;  %v723_v46 = vsub.f32 %v701_v24, %v717_v41 }
 0x4ca   :  { %v5314_v36 = vpack.c.bf16 %v5616_v34, %v5615_v35 }
 0x4cb   :  { %v729_v50 = vmul.f32 1.442695, %v723_v46  ;;  %v5624_v61 = vpop.permute.xlu1 %5623 }
 0x4cc   :  { %5315 = vmatprep.subr.bf16.mxu1 %v5314_v36  ;;  %v720_v42 = vpop.xlane.xlu0 %719  ;;  %v5626_v3 = vunpack.i.h.bf16 %v5624_v61  ;;  %v5625_v4 = vunpack.i.l.bf16 %v5624_v61 }
 0x4cd   :  { %5317 = vmatpush3.bf16.msra.mxu1 %v5314_v36  ;;  %v724_v43 = vsub.f32 %v706_v25, %v720_v42 }
 0x4ce   :  { %v5322_v8 = vpack.c.bf16 %v5626_v3, %v5625_v4 }
 0x4cf   :  { %v731_v48 = vmul.f32 1.442695, %v724_v43 }
 0x4d1   :  { %5870 = vpow2.f32 %v731_v48 }
 0x4d2   :  { %v5867_v37 = vpop.eup %5866  ;;  %5872 = vpow2.f32 %v729_v50 }
 0x4d3   :  { %v5869_v38 = vpop.eup %5868  ;;  %v736_v39 = vsel %vm7128_vm7, %v5867_v37, 0.0  ;;  %vm7144_vm7 = vmmov %vm7134_vm0 }
 0x4d4   :  { %737 = vadd.xlane.f32.xlu0 %v736_v39  ;;  %v733_v40 = vsel %vm7129_vm10, %v5869_v38, 0.0  ;;  %vm7145_vm10 = vmmov %vm7134_vm0 }
 0x4d5   :  { %734 = vadd.xlane.f32.xlu1 %v733_v40 }
 0x4db   :  { %v5871_v51 = vpop.eup %5870 }
 0x4dc   :  { %v5873_v53 = vpop.eup %5872  ;;  %v742_v55 = vsel %vm7130_vm12, %v5871_v51, 0.0  ;;  %vm7146_vm12 = vmmov %vm7134_vm0 }
 0x4dd   :  { %v739_v58 = vsel %vm7131_vm13, %v5873_v53, 0.0  ;;  %vm7147_vm13 = vmmov %vm7134_vm0 }
 0x4e6   :  { %5628 = vrot.lane.b32.xlu1 %v6308_v60, %s6134_s11 }
 0x4ea   :  { %5618 = vrot.lane.b32.xlu0 %v6308_v60, %s6133_s10 }
 0x509   :  { %743 = vadd.xlane.f32.xlu0 %v742_v55 }
 0x50a   :  { %740 = vadd.xlane.f32.xlu1 %v739_v58 }
 0x51b   :  { %864 = vrot.lane.b32.xlu1 %v6290_v52, %s6135_s12 }
 0x51f   :  { %868 = vrot.lane.b32.xlu1 %v6300_v57, %s6135_s12  ;;  %862 = vrot.lane.b32.xlu0 %v6292_v54, %s6135_s12 }
 0x523   :  { %866 = vrot.lane.b32.xlu0 %v6302_v59, %s6135_s12 }
 0x561   :  { %v738_v62 = vpop.xlane.xlu0 %737 }
 0x562   :  { %5874 = vrcp.f32 %v738_v62  ;;  %v735_v63 = vpop.xlane.xlu1 %734 }
 0x563   :  { %5876 = vrcp.f32 %v735_v63 }
 0x565   :  { %v5619_v2 = vpop.permute.xlu0 %5618 }
 0x566   :  { %v5621_v5 = vunpack.i.h.bf16 %v5619_v2  ;;  %v5620_v6 = vunpack.i.l.bf16 %v5619_v2  ;;  %v5629_v10 = vpop.permute.xlu1 %5628 }
 0x567   :  { %v5631_v16 = vunpack.i.h.bf16 %v5629_v10  ;;  %v5630_v17 = vunpack.i.l.bf16 %v5629_v10 }
 0x568   :  { %v5318_v7 = vpack.c.bf16 %v5621_v5, %v5620_v6 }
 0x569   :  { %v5328_v18 = vpack.c.bf16 %v5631_v16, %v5630_v17 }
 0x56a   :  { %5319 = vmatprep.subr.bf16.mxu1 %v5318_v7 }
 0x56b   :  { %5321 = vmatpush3.bf16.msra.mxu1 %v5318_v7 }
 0x56c   :  { %v5875_v9 = vpop.eup %5874  ;;  %5324 = vmatprep.subr.msk.bf16.mxu1 %vm7132_vm14, %v5322_v8 }
 0x56d   :  { %v5877_v12 = vpop.eup %5876  ;;  %v750_v15 = vmul.f32 %v5875_v9, %v5867_v37 }
 0x56e   :  { %v749_v13 = vmul.f32 %v5877_v12, %v5869_v38 }
 0x570   :  { %4925 = vmatprep.mubr.msk.f32.mxu1 %vm7133_vm15, %v749_v13  ;;  %vm7148_vm15 = vmmov %vm7134_vm0 }
 0x571   :  { %4926 = vmatmul.mubr.msk.f32.vlgmr.msra.gmra.mrb[8].mxu1 %vm7134_vm0, %v750_v15 }
 0x574   :  { %5327 = vmatpush3.bf16.xpose.msk.msra.mxu1 %vm7132_vm14, %v5322_v8 }
 0x575   :  { %5330 = vmatprep.subr.msk.bf16.mxu1 %vm7132_vm14, %v5328_v18 }
 0x57c   :  { %5333 = vmatpush3.bf16.xpose.msk.msra.mxu1 %vm7132_vm14, %v5328_v18 }
 0x596   :  { %v744_v19 = vpop.xlane.xlu0 %743 }
 0x597   :  { %5878 = vrcp.f32 %v744_v19  ;;  %v741_v20 = vpop.xlane.xlu1 %740 }
 0x598   :  { %5880 = vrcp.f32 %v741_v20 }
 0x59a   :  { %v863_v25 = vpop.permute.xlu0 %862 }
 0x59b   :  { %v865_v27 = vpop.permute.xlu1 %864 }
 0x59e   :  { %v867_v1 = vpop.permute.xlu0 %866 }
 0x59f   :  { %v869_v28 = vpop.permute.xlu1 %868 }
 0x5a1   :  { %v5879_v21 = vpop.eup %5878 }
 0x5a2   :  { %v5881_v23 = vpop.eup %5880  ;;  %v752_v26 = vmul.f32 %v5879_v21, %v5871_v51 }
 0x5a3   :  { %v751_v24 = vmul.f32 %v5881_v23, %v5873_v53 }
 0x5a5   :  { %4928 = vmatprep.mubr.msk.f32.mxu1 %vm7135_vm1, %v751_v24  ;;  %vm7149_vm1 = vmmov %vm7134_vm0 }
 0x5a6   :  { %4929 = vmatmul.mubr.msk.f32.gmra.mrb[10].mxu1 %vm7136_vm2, %v752_v26  ;;  %vm7150_vm2 = vmmov %vm7134_vm0 }
 0x5a7   :  { %4939 = vmatprep.mubr.msk.f32.mxu1 %vm7137_vm3, %v863_v25  ;;  %vm7151_vm3 = vmmov %vm7134_vm0 }
 0x5aa   :  { %4940 = vmatmul.mubr.msk.f32.vlgmr.msra.gmra.mrb[12].mxu1 %vm7138_vm4, %v865_v27 }
 0x5ab   :  { %4942 = vmatprep.mubr.msk.f32.mxu1 %vm7139_vm8, %v867_v1  ;;  %vm7152_vm8 = vmmov %vm7138_vm4 }
 0x5ae   :  { %4943 = vmatmul.mubr.msk.f32.gmra.mrb[14].mxu1 %vm7140_vm9, %v869_v28  ;;  %vm7153_vm9 = vmmov %vm7138_vm4 }
 0x644   :  { %v6384_v29 = vpop.f32.mrb[8].mxu1 }
 0x645   :  { %v6386_v30 = vpop.f32.mrb[9].mxu1 }
 0x679   :  { %v6388_v31 = vpop.f32.mrb[10].mxu1 }
 0x67a   :  { %v6390_v32 = vpop.f32.mrb[11].mxu1 }
 0x67d   :  { %v4941_v33 = vpop.f32.mrb[12].mxu1 }
 0x67e   :  { %v966_v34 = vadd.f32 %v4941_v33, %v6335_v14  ;;  %v960_v35 = vpop.f32.mrb[13].mxu1 }
 0x67f   :  { %v961_v36 = vadd.f32 %v960_v35, %v6335_v14 }
 0x680   :  { %v982_v37 = vsel %vm7141_vm11, %v966_v34, -inf  ;;  %vm7154_vm11 = vmmov %vm7138_vm4 }
 0x681   :  { %983 = vmax.xlane.f32.xlu1 %v982_v37  ;;  %v4944_v38 = vpop.f32.mrb[14].mxu1  ;;  %v979_v39 = vsel %vm7142_vm5, %v961_v36, -inf  ;;  %vm7155_vm5 = vmmov %vm7134_vm0 }
 0x682   :  { %v970_v40 = vpop.f32.mrb[15].mxu1  ;;  %980 = vmax.xlane.f32.xlu0 %v979_v39  ;;  %v976_v42 = vadd.f32 %v4944_v38, %v6342_v22 }
 0x683   :  { %v971_v41 = vadd.f32 %v970_v40, %v6342_v22 }
 0x684   :  { %v988_v46 = vsel %vm7144_vm7, %v976_v42, -inf  ;;  %vm7157_vm7 = vmmov %vm7134_vm0 }
 0x685   :  { %v985_v43 = vsel %vm7143_vm6, %v971_v41, -inf  ;;  %vm7156_vm6 = vmmov %vm7134_vm0 }
 0x686   :  { %986 = vmax.xlane.f32.xlu0 %v985_v43 }
 0x68a   :  { %989 = vmax.xlane.f32.xlu0 %v988_v46 }
 0x692   :  { %5633 = vrot.lane.b32.xlu1 %v6298_v56, %s6136_s15 }
 0x696   :  { %5643 = vrot.lane.b32.xlu1 %v6298_v56, %s6137_s27 }
 0x70e   :  { %v984_v48 = vpop.xlane.xlu1 %983 }
 0x70f   :  { %v992_v50 = vsub.f32 %v966_v34, %v984_v48  ;;  %v981_v51 = vpop.xlane.xlu0 %980 }
 0x710   :  { %v991_v53 = vsub.f32 %v961_v36, %v981_v51 }
 0x711   :  { %v997_v55 = vmul.f32 1.442695, %v992_v50 }
 0x712   :  { %v995_v58 = vmul.f32 1.442695, %v991_v53  ;;  %v5634_v61 = vpop.permute.xlu1 %5633 }
 0x713   :  { %5882 = vpow2.f32 %v997_v55  ;;  %v5636_v62 = vunpack.i.h.bf16 %v5634_v61  ;;  %v5635_v63 = vunpack.i.l.bf16 %v5634_v61  ;;  %v987_v7 = vpop.xlane.xlu0 %986 }
 0x714   :  { %5884 = vpow2.f32 %v995_v58  ;;  %v993_v10 = vsub.f32 %v971_v41, %v987_v7 }
 0x715   :  { %v5334_v2 = vpack.c.bf16 %v5636_v62, %v5635_v63 }
 0x716   :  { %v999_v13 = vmul.f32 1.442695, %v993_v10  ;;  %v5644_v19 = vpop.permute.xlu1 %5643 }
 0x717   :  { %5335 = vmatprep.subr.bf16.mxu0 %v5334_v2  ;;  %v990_v8 = vpop.xlane.xlu0 %989  ;;  %v5646_v24 = vunpack.i.h.bf16 %v5644_v19  ;;  %v5645_v25 = vunpack.i.l.bf16 %v5644_v19 }
 0x718   :  { %5337 = vmatpush3.bf16.msra.mxu0 %v5334_v2  ;;  %v994_v9 = vsub.f32 %v976_v42, %v990_v8 }
 0x719   :  { %v5342_v28 = vpack.c.bf16 %v5646_v24, %v5645_v25 }
 0x71a   :  { %v1001_v12 = vmul.f32 1.442695, %v994_v9 }
 0x71c   :  { %5886 = vpow2.f32 %v1001_v12 }
 0x71d   :  { %v5883_v3 = vpop.eup %5882  ;;  %5888 = vpow2.f32 %v999_v13 }
 0x71e   :  { %v5885_v4 = vpop.eup %5884  ;;  %v1006_v5 = vsel %vm7145_vm10, %v5883_v3, 0.0  ;;  %vm7158_vm10 = vmmov %vm7134_vm0 }
 0x71f   :  { %1007 = vadd.xlane.f32.xlu0 %v1006_v5  ;;  %v1003_v6 = vsel %vm7146_vm12, %v5885_v4, 0.0  ;;  %vm7159_vm12 = vmmov %vm7134_vm0 }
 0x720   :  { %1004 = vadd.xlane.f32.xlu1 %v1003_v6 }
 0x726   :  { %v5887_v15 = vpop.eup %5886 }
 0x727   :  { %v5889_v16 = vpop.eup %5888  ;;  %v1012_v17 = vsel %vm7147_vm13, %v5887_v15, 0.0  ;;  %vm7160_vm13 = vmmov %vm7134_vm0 }
 0x728   :  { %v1009_v18 = vsel %vm7148_vm15, %v5889_v16, 0.0  ;;  %vm7161_vm15 = vmmov %vm7134_vm0 }
 0x731   :  { %5648 = vrot.lane.b32.xlu1 %v6308_v60, %s6137_s27 }
 0x735   :  { %5638 = vrot.lane.b32.xlu0 %v6308_v60, %s6136_s15 }
 0x754   :  { %1013 = vadd.xlane.f32.xlu0 %v1012_v17 }
 0x755   :  { %1010 = vadd.xlane.f32.xlu1 %v1009_v18 }
 0x766   :  { %1134 = vrot.lane.b32.xlu1 %v6290_v52, %s6138_s13 }
 0x76a   :  { %1138 = vrot.lane.b32.xlu1 %v6300_v57, %s6138_s13  ;;  %1132 = vrot.lane.b32.xlu0 %v6292_v54, %s6138_s13 }
 0x76e   :  { %1136 = vrot.lane.b32.xlu0 %v6302_v59, %s6138_s13 }
 0x7ac   :  { %v1008_v20 = vpop.xlane.xlu0 %1007 }
 0x7ad   :  { %5890 = vrcp.f32 %v1008_v20  ;;  %v1005_v21 = vpop.xlane.xlu1 %1004 }
 0x7ae   :  { %5892 = vrcp.f32 %v1005_v21 }
 0x7b0   :  { %v5639_v23 = vpop.permute.xlu0 %5638 }
 0x7b1   :  { %v5641_v26 = vunpack.i.h.bf16 %v5639_v23  ;;  %v5640_v27 = vunpack.i.l.bf16 %v5639_v23  ;;  %v5649_v34 = vpop.permute.xlu1 %5648 }
 0x7b2   :  { %v5651_v38 = vunpack.i.h.bf16 %v5649_v34  ;;  %v5650_v39 = vunpack.i.l.bf16 %v5649_v34 }
 0x7b3   :  { %v5338_v1 = vpack.c.bf16 %v5641_v26, %v5640_v27 }
 0x7b4   :  { %v5348_v40 = vpack.c.bf16 %v5651_v38, %v5650_v39 }
 0x7b5   :  { %5339 = vmatprep.subr.bf16.mxu0 %v5338_v1 }
 0x7b6   :  { %5341 = vmatpush3.bf16.msra.mxu0 %v5338_v1 }
 0x7b7   :  { %v5891_v33 = vpop.eup %5890  ;;  %5344 = vmatprep.subr.msk.bf16.mxu0 %vm7132_vm14, %v5342_v28 }
 0x7b8   :  { %v5893_v35 = vpop.eup %5892  ;;  %v1020_v37 = vmul.f32 %v5891_v33, %v5883_v3 }
 0x7b9   :  { %v1019_v36 = vmul.f32 %v5893_v35, %v5885_v4 }
 0x7bb   :  { %4953 = vmatprep.mubr.msk.f32.mxu0 %vm7134_vm0, %v1019_v36 }
 0x7bc   :  { %4954 = vmatmul.mubr.msk.f32.vlgmr.msra.gmra.mrb[10].mxu0 %vm7149_vm1, %v1020_v37  ;;  %vm7162_vm1 = vmmov %vm7134_vm0 }
 0x7bf   :  { %5347 = vmatpush3.bf16.xpose.msk.msra.mxu0 %vm7132_vm14, %v5342_v28 }
 0x7c0   :  { %5350 = vmatprep.subr.msk.bf16.mxu0 %vm7132_vm14, %v5348_v40 }
 0x7c7   :  { %5353 = vmatpush3.bf16.xpose.msk.msra.mxu0 %vm7132_vm14, %v5348_v40 }
 0x7e1   :  { %v1014_v41 = vpop.xlane.xlu0 %1013 }
 0x7e2   :  { %5894 = vrcp.f32 %v1014_v41  ;;  %v1011_v42 = vpop.xlane.xlu1 %1010 }
 0x7e3   :  { %5896 = vrcp.f32 %v1011_v42 }
 0x7e5   :  { %v1133_v50 = vpop.permute.xlu0 %1132 }
 0x7e6   :  { %v1135_v53 = vpop.permute.xlu1 %1134 }
 0x7e9   :  { %v1137_v55 = vpop.permute.xlu0 %1136 }
 0x7ea   :  { %v1139_v58 = vpop.permute.xlu1 %1138 }
 0x7ec   :  { %v5895_v43 = vpop.eup %5894 }
 0x7ed   :  { %v5897_v46 = vpop.eup %5896  ;;  %v1022_v51 = vmul.f32 %v5895_v43, %v5887_v15 }
 0x7ee   :  { %v1021_v48 = vmul.f32 %v5897_v46, %v5889_v16 }
 0x7f0   :  { %4956 = vmatprep.mubr.msk.f32.mxu0 %vm7150_vm2, %v1021_v48  ;;  %vm7163_vm2 = vmmov %vm7134_vm0 }
 0x7f1   :  { %4957 = vmatmul.mubr.msk.f32.gmra.mrb[12].mxu0 %vm7151_vm3, %v1022_v51  ;;  %vm7164_vm3 = vmmov %vm7134_vm0 }
 0x7f2   :  { %4967 = vmatprep.mubr.msk.f32.mxu0 %vm7138_vm4, %v1133_v50  ;;  %vm7165_vm4 = vmmov %vm7134_vm0 }
 0x7f5   :  { %4968 = vmatmul.mubr.msk.f32.vlgmr.msra.gmra.mrb[14].mxu0 %vm7152_vm8, %v1135_v53 }
 0x7f6   :  { %4970 = vmatprep.mubr.msk.f32.mxu0 %vm7153_vm9, %v1137_v55  ;;  %vm7166_vm9 = vmmov %vm7152_vm8 }
 0x7f9   :  { %4971 = vmatmul.mubr.msk.f32.gmra.mrb[16].mxu0 %vm7154_vm11, %v1139_v58  ;;  %vm7167_vm11 = vmmov %vm7152_vm8 }
 0x88f   :  { %v6436_v61 = vpop.f32.mrb[10].mxu0 }
 0x890   :  { %v6438_v62 = vpop.f32.mrb[11].mxu0 }
 0x8c4   :  { %v6440_v63 = vpop.f32.mrb[12].mxu0 }
 0x8c5   :  { %v6442_v2 = vpop.f32.mrb[13].mxu0 }
 0x8c8   :  { %v4969_v3 = vpop.f32.mrb[14].mxu0 }
 0x8c9   :  { %v1236_v4 = vadd.f32 %v4969_v3, %v6335_v14  ;;  %v1230_v5 = vpop.f32.mrb[15].mxu0 }
 0x8ca   :  { %v1231_v6 = vadd.f32 %v1230_v5, %v6335_v14 }
 0x8cb   :  { %v1252_v7 = vsel %vm7155_vm5, %v1236_v4, -inf  ;;  %vm7168_vm5 = vmmov %vm7152_vm8 }
 0x8cc   :  { %1253 = vmax.xlane.f32.xlu1 %v1252_v7  ;;  %v4972_v8 = vpop.f32.mrb[16].mxu0  ;;  %v1249_v9 = vsel %vm7156_vm6, %v1231_v6, -inf  ;;  %vm7169_vm6 = vmmov %vm7134_vm0 }
 0x8cd   :  { %v1240_v10 = vpop.f32.mrb[17].mxu0  ;;  %1250 = vmax.xlane.f32.xlu0 %v1249_v9  ;;  %v1246_v13 = vadd.f32 %v4972_v8, %v6342_v22 }
 0x8ce   :  { %v1241_v12 = vadd.f32 %v1240_v10, %v6342_v22 }
 0x8cf   :  { %v1258_v16 = vsel %vm7158_vm10, %v1246_v13, -inf  ;;  %vm7171_vm10 = vmmov %vm7134_vm0 }
 0x8d0   :  { %v1255_v15 = vsel %vm7157_vm7, %v1241_v12, -inf  ;;  %vm7170_vm7 = vmmov %vm7134_vm0 }
 0x8d1   :  { %1256 = vmax.xlane.f32.xlu0 %v1255_v15 }
 0x8d5   :  { %1259 = vmax.xlane.f32.xlu0 %v1258_v16 }
 0x8dd   :  { %5653 = vrot.lane.b32.xlu1 %v6298_v56, %s6139_s16 }
 0x8e1   :  { %5663 = vrot.lane.b32.xlu1 %v6298_v56, %s6140_s17 }
 0x959   :  { %v1254_v17 = vpop.xlane.xlu1 %1253 }
 0x95a   :  { %v1262_v18 = vsub.f32 %v1236_v4, %v1254_v17  ;;  %v1251_v19 = vpop.xlane.xlu0 %1250 }
 0x95b   :  { %v1261_v20 = vsub.f32 %v1231_v6, %v1251_v19 }
 0x95c   :  { %v1267_v21 = vmul.f32 1.442695, %v1262_v18 }
 0x95d   :  { %v1265_v23 = vmul.f32 1.442695, %v1261_v20  ;;  %v5654_v24 = vpop.permute.xlu1 %5653 }
 0x95e   :  { %5898 = vpow2.f32 %v1267_v21  ;;  %v5656_v25 = vunpack.i.h.bf16 %v5654_v24  ;;  %v5655_v26 = vunpack.i.l.bf16 %v5654_v24  ;;  %v1257_v35 = vpop.xlane.xlu0 %1256 }
 0x95f   :  { %5900 = vpow2.f32 %v1265_v23  ;;  %v1263_v38 = vsub.f32 %v1241_v12, %v1257_v35 }
 0x960   :  { %v5354_v27 = vpack.c.bf16 %v5656_v25, %v5655_v26 }
 0x961   :  { %v1269_v40 = vmul.f32 1.442695, %v1263_v38  ;;  %v5664_v48 = vpop.permute.xlu1 %5663 }
 0x962   :  { %5355 = vmatprep.subr.bf16.mxu1 %v5354_v27  ;;  %v1260_v36 = vpop.xlane.xlu0 %1259  ;;  %v5666_v55 = vunpack.i.h.bf16 %v5664_v48  ;;  %v5665_v58 = vunpack.i.l.bf16 %v5664_v48 }
 0x963   :  { %5357 = vmatpush3.bf16.msra.mxu1 %v5354_v27  ;;  %v1264_v37 = vsub.f32 %v1246_v13, %v1260_v36 }
 0x964   :  { %v5362_v5 = vpack.c.bf16 %v5666_v55, %v5665_v58 }
 0x965   :  { %v1271_v39 = vmul.f32 1.442695, %v1264_v37 }
 0x967   :  { %5902 = vpow2.f32 %v1271_v39 }
 0x968   :  { %v5899_v1 = vpop.eup %5898  ;;  %5904 = vpow2.f32 %v1269_v40 }
 0x969   :  { %v5901_v28 = vpop.eup %5900  ;;  %v1276_v33 = vsel %vm7159_vm12, %v5899_v1, 0.0  ;;  %vm7172_vm12 = vmmov %vm7134_vm0 }
 0x96a   :  { %1277 = vadd.xlane.f32.xlu0 %v1276_v33  ;;  %v1273_v34 = vsel %vm7160_vm13, %v5901_v28, 0.0  ;;  %vm7173_vm13 = vmmov %vm7134_vm0 }
 0x96b   :  { %1274 = vadd.xlane.f32.xlu1 %v1273_v34 }
 0x971   :  { %v5903_v41 = vpop.eup %5902 }
 0x972   :  { %v5905_v42 = vpop.eup %5904  ;;  %v1282_v43 = vsel %vm7161_vm15, %v5903_v41, 0.0  ;;  %vm7174_vm15 = vmmov %vm7134_vm0 }
 0x973   :  { %v1279_v46 = vsel %vm7134_vm0, %v5905_v42, 0.0 }
 0x97c   :  { %5668 = vrot.lane.b32.xlu1 %v6308_v60, %s6140_s17 }
 0x980   :  { %5658 = vrot.lane.b32.xlu0 %v6308_v60, %s6139_s16 }
 0x99f   :  { %1283 = vadd.xlane.f32.xlu0 %v1282_v43 }
 0x9a0   :  { %1280 = vadd.xlane.f32.xlu1 %v1279_v46 }
 0x9b1   :  { %1404 = vrot.lane.b32.xlu1 %v6290_v52, %s6141_s18 }
 0x9b5   :  { %1408 = vrot.lane.b32.xlu1 %v6300_v57, %s6141_s18  ;;  %1402 = vrot.lane.b32.xlu0 %v6292_v54, %s6141_s18 }
 0x9b9   :  { %1406 = vrot.lane.b32.xlu0 %v6302_v59, %s6141_s18 }
 0x9f7   :  { %v1278_v50 = vpop.xlane.xlu0 %1277 }
 0x9f8   :  { %5906 = vrcp.f32 %v1278_v50  ;;  %v1275_v51 = vpop.xlane.xlu1 %1274 }
 0x9f9   :  { %5908 = vrcp.f32 %v1275_v51 }
 0x9fb   :  { %v5659_v53 = vpop.permute.xlu0 %5658 }
 0x9fc   :  { %v5661_v3 = vunpack.i.h.bf16 %v5659_v53  ;;  %v5660_v4 = vunpack.i.l.bf16 %v5659_v53  ;;  %v5669_v6 = vpop.permute.xlu1 %5668 }
 0x9fd   :  { %v5671_v8 = vunpack.i.h.bf16 %v5669_v6  ;;  %v5670_v9 = vunpack.i.l.bf16 %v5669_v6 }
 0x9fe   :  { %v5358_v52 = vpack.c.bf16 %v5661_v3, %v5660_v4 }
 0x9ff   :  { %v5368_v10 = vpack.c.bf16 %v5671_v8, %v5670_v9 }
 0xa00   :  { %5359 = vmatprep.subr.bf16.mxu1 %v5358_v52 }
 0xa01   :  { %5361 = vmatpush3.bf16.msra.mxu1 %v5358_v52 }
 0xa02   :  { %v5907_v57 = vpop.eup %5906  ;;  %5364 = vmatprep.subr.msk.bf16.mxu1 %vm7132_vm14, %v5362_v5 }
 0xa03   :  { %v5909_v54 = vpop.eup %5908  ;;  %v1290_v7 = vmul.f32 %v5907_v57, %v5899_v1 }
 0xa04   :  { %v1289_v59 = vmul.f32 %v5909_v54, %v5901_v28 }
 0xa06   :  { %4981 = vmatprep.mubr.msk.f32.mxu1 %vm7162_vm1, %v1289_v59  ;;  %vm7175_vm1 = vmmov %vm7134_vm0 }
 0xa07   :  { %4982 = vmatmul.mubr.msk.f32.vlgmr.msra.gmra.mrb[16].mxu1 %vm7163_vm2, %v1290_v7  ;;  %vm7176_vm2 = vmmov %vm7134_vm0 }
 0xa0a   :  { %5367 = vmatpush3.bf16.xpose.msk.msra.mxu1 %vm7132_vm14, %v5362_v5 }
 0xa0b   :  { %5370 = vmatprep.subr.msk.bf16.mxu1 %vm7132_vm14, %v5368_v10 }
 0xa12   :  { %5373 = vmatpush3.bf16.xpose.msk.msra.mxu1 %vm7132_vm14, %v5368_v10 }
 0xa2c   :  { %v1284_v12 = vpop.xlane.xlu0 %1283 }
 0xa2d   :  { %5910 = vrcp.f32 %v1284_v12  ;;  %v1281_v13 = vpop.xlane.xlu1 %1280 }
 0xa2e   :  { %5912 = vrcp.f32 %v1281_v13 }
 0xa30   :  { %v1403_v18 = vpop.permute.xlu0 %1402 }
 0xa31   :  { %v1405_v20 = vpop.permute.xlu1 %1404 }
 0xa34   :  { %v1407_v21 = vpop.permute.xlu0 %1406 }
 0xa35   :  { %v1409_v23 = vpop.permute.xlu1 %1408 }
 0xa37   :  { %v5911_v15 = vpop.eup %5910 }
 0xa38   :  { %v5913_v16 = vpop.eup %5912  ;;  %v1292_v19 = vmul.f32 %v5911_v15, %v5903_v41 }
 0xa39   :  { %v1291_v17 = vmul.f32 %v5913_v16, %v5905_v42 }
 0xa3b   :  { %4984 = vmatprep.mubr.msk.f32.mxu1 %vm7164_vm3, %v1291_v17  ;;  %vm7177_vm3 = vmmov %vm7134_vm0 }
 0xa3c   :  { %4985 = vmatmul.mubr.msk.f32.gmra.mrb[18].mxu1 %vm7165_vm4, %v1292_v19  ;;  %vm7178_vm4 = vmmov %vm7134_vm0 }
 0xa3d   :  { %4995 = vmatprep.mubr.msk.f32.mxu1 %vm7152_vm8, %v1403_v18  ;;  %vm7179_vm8 = vmmov %vm7134_vm0 }
 0xa40   :  { %4996 = vmatmul.mubr.msk.f32.vlgmr.msra.gmra.mrb[20].mxu1 %vm7166_vm9, %v1405_v20  ;;  %vm1724_vm9 = vcmask 130048  }
 0xa41   :  { %4998 = vmatprep.mubr.msk.f32.mxu1 %vm7167_vm11, %v1407_v21  ;;  %vm1729_vm11 = vcmask 195584  }
 0xa44   :  { %4999 = vmatmul.mubr.msk.f32.gmra.mrb[22].mxu1 %vm7168_vm5, %v1409_v23 }
 0xada   :  { %v4983_v24 = vpop.f32.mrb[16].mxu1 }
 0xadb   :  { %v1383_v25 = vpop.f32.mrb[17].mxu1 }
 0xb0f   :  { %v6488_v26 = vpop.f32.mrb[18].mxu1 }
 0xb10   :  { %v6490_v27 = vpop.f32.mrb[19].mxu1 }
 0xb13   :  { %v4997_v1 = vpop.f32.mrb[20].mxu1 }
 0xb14   :  { %v1506_v28 = vadd.f32 %v4997_v1, %v6335_v14  ;;  %v1500_v33 = vpop.f32.mrb[21].mxu1 }
 0xb15   :  { %v1501_v34 = vadd.f32 %v1500_v33, %v6335_v14  ;;  %v6525_v33 = vld [vmem:[%s7114_s4 + $0x8] sm:$0xff] }
 0xb16   :  { %v1522_v35 = vsel %vm7169_vm6, %v1506_v28, -inf  ;;  %vm7180_vm6 = vmmov %vm7168_vm5 }
 0xb17   :  { %1523 = vmax.xlane.f32.xlu1 %v1522_v35  ;;  %v5000_v36 = vpop.f32.mrb[22].mxu1  ;;  %v1519_v37 = vsel %vm7170_vm7, %v1501_v34, -inf  ;;  %v6535_v35 = vld [vmem:[%s7114_s4 + $0x48] sm:$0xff]  ;;  %vm7181_vm7 = vmmov %vm7134_vm0 }
 0xb18   :  { %v1510_v38 = vpop.f32.mrb[23].mxu1  ;;  %1520 = vmax.xlane.f32.xlu0 %v1519_v37  ;;  %v1516_v40 = vadd.f32 %v5000_v36, %v6342_v22  ;;  %v6542_v37 = vld [vmem:[%s7114_s4 + $0x68] sm:$0xff] }
 0xb19   :  { %v1511_v39 = vadd.f32 %v1510_v38, %v6342_v22  ;;  %v5386_v38 = vpack.c.bf16 %v6542_v37, %v6535_v35 }
 0xb1a   :  { %v1528_v42 = vsel %vm7172_vm12, %v1516_v40, -inf  ;;  %vm7183_vm12 = vmmov %vm7168_vm5 }
 0xb1b   :  { %v1525_v41 = vsel %vm7171_vm10, %v1511_v39, -inf  ;;  %vm7182_vm10 = vmmov %vm7134_vm0 }
 0xb1c   :  { %1526 = vmax.xlane.f32.xlu0 %v1525_v41 }
 0xb20   :  { %1529 = vmax.xlane.f32.xlu0 %v1528_v42 }
 0xba4   :  { %v1524_v43 = vpop.xlane.xlu1 %1523 }
 0xba5   :  { %v1532_v46 = vsub.f32 %v1506_v28, %v1524_v43  ;;  %v1521_v48 = vpop.xlane.xlu0 %1520 }
 0xba6   :  { %v1531_v50 = vsub.f32 %v1501_v34, %v1521_v48  ;;  %v6530_v34 = vld [vmem:[%s7114_s4 + $0x28] sm:$0xff] }
 0xba7   :  { %v1537_v51 = vmul.f32 1.442695, %v1532_v46  ;;  %v5382_v36 = vpack.c.bf16 %v6530_v34, %v6525_v33 }
 0xba8   :  { %v1535_v53 = vmul.f32 1.442695, %v1531_v50 }
 0xba9   :  { %5914 = vpow2.f32 %v1537_v51  ;;  %v1527_v55 = vpop.xlane.xlu0 %1526 }
 0xbaa   :  { %5916 = vpow2.f32 %v1535_v53  ;;  %v1533_v58 = vsub.f32 %v1511_v39, %v1527_v55 }
 0xbac   :  { %v1539_v3 = vmul.f32 1.442695, %v1533_v58 }
 0xbad   :  { %v1530_v4 = vpop.xlane.xlu0 %1529 }
 0xbae   :  { %5918 = vpow2.f32 %v1539_v3  ;;  %v1534_v52 = vsub.f32 %v1516_v40, %v1530_v4 }
 0xbb0   :  { %v1541_v5 = vmul.f32 1.442695, %v1534_v52 }
 0xbb2   :  { %5920 = vpow2.f32 %v1541_v5 }
 0xbb3   :  { %v5915_v57 = vpop.eup %5914 }
 0xbb4   :  { %v5917_v6 = vpop.eup %5916  ;;  %v1546_v54 = vsel %vm7173_vm13, %v5915_v57, 0.0  ;;  %vm7184_vm13 = vmmov %vm7168_vm5 }
 0xbb5   :  { %1547 = vadd.xlane.f32.xlu0 %v1546_v54  ;;  %v1543_v59 = vsel %vm7174_vm15, %v5917_v6, 0.0  ;;  %vm7185_vm15 = vmmov %vm7134_vm0 }
 0xbb6   :  { %1544 = vadd.xlane.f32.xlu1 %v1543_v59 }
 0xbb8   :  { %v5919_v7 = vpop.eup %5918 }
 0xbb9   :  { %v1549_v8 = vsel %vm7134_vm0, %v5919_v7, 0.0 }
 0xbba   :  { %1550 = vadd.xlane.f32.xlu1 %v1549_v8 }
 0xbbc   :  { %v5921_v9 = vpop.eup %5920 }
 0xbbd   :  { %v1552_v10 = vsel %vm7175_vm1, %v5921_v9, 0.0  ;;  %vm7186_vm1 = vmmov %vm7134_vm0 }
 0xbbe   :  { %1553 = vadd.xlane.f32.xlu0 %v1552_v10 }
 0xbcb   :  { %5673 = vrot.lane.b32.xlu1 %v6298_v56, %s6142_s19 }
 0xbcf   :  { %1676 = vrot.lane.b32.xlu1 %v6438_v62, %s6123_s14 }
 0xbd3   :  { %1678 = vrot.lane.b32.xlu1 %v6436_v61, %s6123_s14 }
 0xbd4   :  { %5678 = vrot.lane.b32.xlu0 %v6308_v60, %s6142_s19 }
 0xbd7   :  { %1694 = vrot.lane.b32.xlu1 %v4983_v24, %s6125_s2 }
 0xbd8   :  { %1692 = vrot.lane.b32.xlu0 %v1383_v25, %s6125_s2 }
 0xbdb   :  { %1682 = vrot.lane.b32.xlu1 %v6440_v63, %s6123_s14 }
 0xbdc   :  { %1680 = vrot.lane.b32.xlu0 %v6442_v2, %s6123_s14 }
 0xc42   :  { %v1548_v12 = vpop.xlane.xlu0 %1547 }
 0xc43   :  { %v1545_v56 = vpop.xlane.xlu1 %1544 }
 0xc44   :  { %5922 = vrcp.f32 %v1545_v56  ;;  %v4515_v56 = vld [vmem:[#allocation6 + $0x3] ss:$0 sm:$0xff] }
 0xc45   :  { %5924 = vrcp.f32 %v1548_v12 }
 0xc47   :  { %v1551_v62 = vpop.xlane.xlu1 %1550 }
 0xc48   :  { %5926 = vrcp.f32 %v1551_v62 }
 0xc4b   :  { %v5674_v61 = vpop.permute.xlu1 %5673  ;;  %v1554_v13 = vpop.xlane.xlu0 %1553 }
 0xc4c   :  { %v5676_v15 = vunpack.i.h.bf16 %v5674_v61  ;;  %v5675_v60 = vunpack.i.l.bf16 %v5674_v61  ;;  %5928 = vrcp.f32 %v1554_v13 }
 0xc4e   :  { %v5923_v16 = vpop.eup %5922  ;;  %v5374_v17 = vpack.c.bf16 %v5676_v15, %v5675_v60 }
 0xc4f   :  { %v5679_v18 = vpop.permute.xlu0 %5678  ;;  %v1559_v19 = vmul.f32 %v5923_v16, %v5917_v6  ;;  %v5925_v21 = vpop.eup %5924 }
 0xc50   :  { %v5681_v20 = vunpack.i.h.bf16 %v5679_v18  ;;  %v5680_v63 = vunpack.i.l.bf16 %v5679_v18  ;;  %5375 = vmatprep.subr.bf16.mxu0 %v5374_v17  ;;  %v1560_v24 = vmul.f32 %v5925_v21, %v5915_v57  ;;  %v1677_v43 = vpop.permute.xlu1 %1676 }
 0xc51   :  { %5377 = vmatpush3.bf16.msra.mxu0 %v5374_v17  ;;  %5009 = vmatprep.mubr.msk.f32.mxu0 %vm7176_vm2, %v1559_v19  ;;  %v1720_v55 = vsel %vm7168_vm5, %v6386_v30, %v1677_v43  ;;  %vm7187_vm2 = vmmov %vm7134_vm0 }
 0xc52   :  { %v5378_v2 = vpack.c.bf16 %v5681_v20, %v5680_v63  ;;  %v5927_v23 = vpop.eup %5926  ;;  %vm7191_vm5 = vmmov %vm7134_vm0 }
 0xc53   :  { %v1561_v1 = vmul.f32 %v5927_v23, %v5919_v7  ;;  %v1693_v50 = vpop.permute.xlu0 %1692 }
 0xc54   :  { %5379 = vmatprep.subr.bf16.mxu0 %v5378_v2  ;;  %v1679_v46 = vpop.permute.xlu1 %1678 }
 0xc55   :  { %5381 = vmatpush3.bf16.msra.mxu0 %v5378_v2  ;;  %v1721_v58 = vsel %vm7180_vm6, %v6384_v29, %v1679_v46  ;;  %vm7192_vm6 = vmmov %vm7134_vm0 }
 0xc56   :  { %v5929_v25 = vpop.eup %5928  ;;  %5383 = vmatprep.subr.bf16.mxu0 %v5382_v36 }
 0xc57   :  { %v1562_v28 = vmul.f32 %v5929_v25, %v5921_v9  ;;  %v1681_v53 = vpop.permute.xlu0 %1680 }
 0xc58   :  { %5010 = vmatmul.mubr.msk.f32.vlgmr.msra.gmra.mrb[18].mxu0 %vm7177_vm3, %v1560_v24  ;;  %v1695_v48 = vpop.permute.xlu1 %1694  ;;  %v1722_v30 = vsel %vm7183_vm12, %v6390_v32, %v1681_v53  ;;  %vm7188_vm3 = vmmov %vm7134_vm0  ;;  %v5682_v53 = vpack.i.bf16 %v6530_v34, %v6525_v33 }
 0xc59   :  { %5012 = vmatprep.mubr.msk.f32.mxu0 %vm7178_vm4, %v1561_v1  ;;  %5385 = vmatpush3.bf16.msra.mxu0 %v5382_v36  ;;  %v1726_v4 = vsel %vm1724_vm9, %v1721_v58, %v1695_v48  ;;  %vm7189_vm4 = vmmov %vm7134_vm0  ;;  %v84_v58 = vld [vmem:[#allocation4 + $0x8] sm:$0xff] }
 0xc5a   :  { %5387 = vmatprep.subr.bf16.mxu0 %v5386_v38  ;;  %vm7195_vm12 = vmmov %vm7134_vm0 }
 0xc5c   :  { %5013 = vmatmul.mubr.msk.f32.gmra.mrb[20].mxu0 %vm7179_vm8, %v1562_v28  ;;  %v1683_v51 = vpop.permute.xlu1 %1682  ;;  %vm7190_vm8 = vmmov %vm7134_vm0 }
 0xc5d   :  { %5389 = vmatpush3.bf16.msra.mxu0 %v5386_v38  ;;  %v1723_v29 = vsel %vm7184_vm13, %v6388_v31, %v1683_v51  ;;  %vm7196_vm13 = vmmov %vm7134_vm0 }
 0xd2b   :  { %v5011_v39 = vpop.f32.mrb[18].mxu0 }
 0xd2c   :  { %1710 = vrot.lane.b32.xlu1 %v5011_v39, %s6143_s26  ;;  %v1653_v40 = vpop.f32.mrb[19].mxu0 }
 0xd2d   :  { %1708 = vrot.lane.b32.xlu0 %v1653_v40, %s6143_s26 }
 0xd2f   :  { %v5014_v41 = vpop.f32.mrb[20].mxu0 }
 0xd30   :  { %1698 = vrot.lane.b32.xlu1 %v6488_v26, %s6125_s2  ;;  %v1663_v42 = vpop.f32.mrb[21].mxu0 }
 0xd31   :  { %1696 = vrot.lane.b32.xlu0 %v6490_v27, %s6125_s2  ;;  %v1725_v27 = vsel %vm1724_vm9, %v1720_v55, %v1693_v50  ;;  %v5687_v55 = vpack.i.bf16 %v6542_v37, %v6535_v35 }
 0xd34   :  { %1714 = vrot.lane.b32.xlu1 %v5014_v41, %s6143_s26 }
 0xd35   :  { %1712 = vrot.lane.b32.xlu0 %v1663_v42, %s6143_s26 }
 0xd9e   :  { %v1711_v26 = vpop.permute.xlu1 %1710 }
 0xd9f   :  { %v1709_v3 = vpop.permute.xlu0 %1708  ;;  %v1731_v5 = vsel %vm1729_vm11, %v1726_v4, %v1711_v26  ;;  %v83_v26 = vld [vmem:[#allocation4] sm:$0xff]  ;;  %v86_v4 = vld [vmem:[#allocation4 + $0x18] sm:$0xff] }
 0xda0   :  { %v1730_v52 = vsel %vm1729_vm11, %v1725_v27, %v1709_v3  ;;  %v85_v27 = vld [vmem:[#allocation4 + $0x10] sm:$0xff]  ;;  %v5398_v3 = vpack.c.bf16 %v84_v58, %v83_v26 }
 0xda1   :  { %5023 = vmatprep.mubr.msk.f32.mxu0 %vm7181_vm7, %v1730_v52  ;;  %vm7193_vm7 = vmmov %vm7134_vm0  ;;  %v5402_v52 = vpack.c.bf16 %v86_v4, %v85_v27 }
 0xda2   :  { %v1699_v57 = vpop.permute.xlu1 %1698  ;;  %5024 = vmatmul.mubr.msk.f32.vlgmr.msra.gmra.mrb[22].mxu0 %vm7182_vm10, %v1731_v5  ;;  %v87_v5 = vld [vmem:[#allocation4 + $0x20] sm:$0xff]  ;;  %5399 = vmatprep.subr.bf16.mxu0 %v5398_v3  ;;  %vm7194_vm10 = vmmov %vm7134_vm0 }
 0xda3   :  { %v1697_v6 = vpop.permute.xlu0 %1696  ;;  %v1728_v8 = vsel %vm1724_vm9, %v1723_v29, %v1699_v57  ;;  %v88_v57 = vld [vmem:[#allocation4 + $0x28] sm:$0xff]  ;;  %5401 = vmatpush3.bf16.msra.mxu0 %v5398_v3 }
 0xda4   :  { %v1727_v59 = vsel %vm1724_vm9, %v1722_v30, %v1697_v6  ;;  %5403 = vmatprep.subr.bf16.mxu0 %v5402_v52  ;;  %v5406_v6 = vpack.c.bf16 %v88_v57, %v87_v5  ;;  %v4527_v57 = vld [vmem:[#allocation6 + $0x5] ss:$0 sm:$0xff] }
 0xda6   :  { %v1715_v54 = vpop.permute.xlu1 %1714 }
 0xda7   :  { %v1713_v7 = vpop.permute.xlu0 %1712  ;;  %v1733_v10 = vsel %vm1729_vm11, %v1728_v8, %v1715_v54  ;;  %5405 = vmatpush3.bf16.msra.mxu0 %v5402_v52 }
 0xda8   :  { %v1732_v9 = vsel %vm1729_vm11, %v1727_v59, %v1713_v7  ;;  %5407 = vmatprep.subr.bf16.mxu0 %v5406_v6 }
 0xda9   :  { %5026 = vmatprep.mubr.msk.f32.mxu0 %vm7185_vm15, %v1732_v9  ;;  %vm7197_vm15 = vmmov %vm7134_vm0 }
 0xdaa   :  { %5027 = vmatmul.mubr.msk.f32.gmra.mrb[24].mxu0 %vm7134_vm0, %v1733_v10  ;;  %vm2053_vm0 = vcmask 523264  }
 0xdab   :  { %5409 = vmatpush3.bf16.msra.mxu0 %v5406_v6 }
 0xe75   :  { %v5025_v12 = vpop.f32.mrb[22].mxu0 }
 0xe76   :  { %v1826_v32 = vadd.f32 %v5025_v12, %v4515_v56  ;;  %v1820_v62 = vpop.f32.mrb[23].mxu0 }
 0xe77   :  { %v1821_v61 = vadd.f32 %v4515_v56, %v1820_v62 }
 0xe78   :  { %v1840_v31 = vadd.f32 %v1826_v32, %v6276_v45 }
 0xe79   :  { %v1839_v13 = vadd.f32 %v1821_v61, %v6274_v44 }
 0xe7a   :  { %v1846_v15 = vsel %vm7186_vm1, %v1840_v31, 0.0 }
 0xe7b   :  { %1847 = vadd.xlane.f32.xlu1 %v1846_v15  ;;  %v1843_v60 = vsel %vm7187_vm2, %v1839_v13, 0.0  ;;  %vm7198_vm2 = vmmov %vm7186_vm1 }
 0xe7c   :  { %1844 = vadd.xlane.f32.xlu0 %v1843_v60 }
 0xe7d   :  { %v5028_v16 = vpop.f32.mrb[24].mxu0 }
 0xe7e   :  { %v1830_v17 = vpop.f32.mrb[25].mxu0  ;;  %v1836_v18 = vadd.f32 %v5028_v16, %v4515_v56 }
 0xe7f   :  { %v1831_v19 = vadd.f32 %v4515_v56, %v1830_v17 }
 0xe80   :  { %v1842_v2 = vadd.f32 %v1836_v18, %v6280_v47  ;;  %v4520_v18 = vld [vmem:[#allocation6 + $0x6] ss:$0 sm:$0xff] }
 0xe81   :  { %v1841_v20 = vadd.f32 %v1831_v19, %v6284_v49 }
 0xe82   :  { %v1852_v45 = vsel %vm7189_vm4, %v1842_v2, 0.0  ;;  %vm7200_vm4 = vmmov %vm7186_vm1 }
 0xe83   :  { %v1849_v63 = vsel %vm7188_vm3, %v1841_v20, 0.0  ;;  %vm7199_vm3 = vmmov %vm7186_vm1 }
 0xe84   :  { %1850 = vadd.xlane.f32.xlu0 %v1849_v63 }
 0xe88   :  { %1853 = vadd.xlane.f32.xlu0 %v1852_v45  ;;  %v4521_v45 = vld [vmem:[#allocation6 + $0x7] ss:$0 sm:$0xff] }
 0xf08   :  { %v1848_v44 = vpop.xlane.xlu1 %1847 }
 0xf09   :  { %v1857_v21 = vmul.f32 0.03125, %v1848_v44  ;;  %v1845_v23 = vpop.xlane.xlu0 %1844 }
 0xf0a   :  { %v1856_v24 = vmul.f32 0.03125, %v1845_v23 }
 0xf0b   :  { %v1861_v25 = vsub.f32 %v1840_v31, %v1857_v21 }
 0xf0c   :  { %v1860_v1 = vsub.f32 %v1839_v13, %v1856_v24 }
 0xf0d   :  { %v1865_v28 = vmul.f32 %v1861_v25, %v1861_v25 }
 0xf0e   :  { %v1864_v36 = vmul.f32 %v1860_v1, %v1860_v1 }
 0xf0f   :  { %v1871_v38 = vsel %vm7190_vm8, %v1865_v28, 0.0  ;;  %vm7201_vm8 = vmmov %vm7186_vm1 }
 0xf10   :  { %1872 = vadd.xlane.f32.xlu0 %v1871_v38  ;;  %v1868_v49 = vsel %vm7191_vm5, %v1864_v36, 0.0  ;;  %vm7202_vm5 = vmmov %vm7186_vm1 }
 0xf11   :  { %1869 = vadd.xlane.f32.xlu1 %v1868_v49  ;;  %v1851_v39 = vpop.xlane.xlu0 %1850 }
 0xf12   :  { %v1858_v47 = vmul.f32 0.03125, %v1851_v39 }
 0xf14   :  { %v6584_v40 = vsub.f32 %v1841_v20, %v1858_v47 }
 0xf15   :  { %v1854_v41 = vpop.xlane.xlu0 %1853 }
 0xf16   :  { %v1859_v42 = vmul.f32 0.03125, %v1854_v41  ;;  %v1866_v43 = vmul.f32 %v6584_v40, %v6584_v40 }
 0xf18   :  { %v6588_v46 = vsub.f32 %v1842_v2, %v1859_v42  ;;  %v1874_v48 = vsel %vm7192_vm6, %v1866_v43, 0.0  ;;  %v89_v42 = vld [vmem:[#allocation4 + $0x30] sm:$0xff]  ;;  %v90_v43 = vld [vmem:[#allocation4 + $0x38] sm:$0xff]  ;;  %vm7203_vm6 = vmmov %vm7186_vm1 }
 0xf19   :  { %1875 = vadd.xlane.f32.xlu1 %v1874_v48  ;;  %v5410_v48 = vpack.c.bf16 %v90_v43, %v89_v42 }
 0xf1a   :  { %v1867_v50 = vmul.f32 %v6588_v46, %v6588_v46 }
 0xf1b   :  { %5411 = vmatprep.subr.bf16.mxu0 %v5410_v48 }
 0xf1c   :  { %v1877_v51 = vsel %vm7193_vm7, %v1867_v50, 0.0  ;;  %5413 = vmatpush3.bf16.msra.mxu0 %v5410_v48  ;;  %v4522_v50 = vld [vmem:[#allocation6 + $0x4] ss:$0 sm:$0xff]  ;;  %vm7204_vm7 = vmmov %vm7186_vm1 }
 0xf1d   :  { %1878 = vadd.xlane.f32.xlu0 %v1877_v51 }
 0xf2a   :  { %5683 = vrot.lane.b32.xlu1 %v5682_v53, %s6131_s9 }
 0xf33   :  { %5688 = vrot.lane.b32.xlu0 %v5687_v55, %s6131_s9 }
 0xf9d   :  { %v1873_v30 = vpop.xlane.xlu0 %1872 }
 0xf9e   :  { %v1881_v54 = vmul.f32 0.03125, %v1873_v30  ;;  %v1870_v29 = vpop.xlane.xlu1 %1869 }
 0xf9f   :  { %v1880_v59 = vmul.f32 0.03125, %v1870_v29 }
 0xfa0   :  { %v1885_v7 = vadd.f32 1e-05, %v1881_v54 }
 0xfa1   :  { %v1884_v8 = vadd.f32 1e-05, %v1880_v59 }
 0xfa2   :  { %5930 = vrsqrt.f32 %v1885_v7 }
 0xfa3   :  { %5932 = vrsqrt.f32 %v1884_v8 }
 0xfa6   :  { %v1876_v9 = vpop.xlane.xlu1 %1875 }
 0xfa7   :  { %v1882_v10 = vmul.f32 0.03125, %v1876_v9 }
 0xfa9   :  { %v1886_v56 = vadd.f32 1e-05, %v1882_v10 }
 0xfaa   :  { %v5684_v12 = vpop.permute.xlu1 %5683  ;;  %v1879_v32 = vpop.xlane.xlu0 %1878 }
 0xfab   :  { %5934 = vrsqrt.f32 %v1886_v56  ;;  %v5686_v62 = vunpack.i.h.bf16 %v5684_v12  ;;  %v5685_v61 = vunpack.i.l.bf16 %v5684_v12  ;;  %v1883_v31 = vmul.f32 0.03125, %v1879_v32 }
 0xfac   :  { %v5931_v13 = vpop.eup %5930 }
 0xfad   :  { %v5933_v15 = vpop.eup %5932  ;;  %v1893_v60 = vmul.f32 %v5931_v13, %v1861_v25  ;;  %v1887_v16 = vadd.f32 1e-05, %v1883_v31  ;;  %v5390_v17 = vpack.c.bf16 %v5686_v62, %v5685_v61 }
 0xfae   :  { %v5689_v19 = vpop.permute.xlu0 %5688  ;;  %v1892_v20 = vmul.f32 %v5933_v15, %v1860_v1  ;;  %v6617_v15 = vld [vmem:[%s7114_s4 + $0x10] sm:$0xff] }
 0xfaf   :  { %5936 = vrsqrt.f32 %v1887_v16  ;;  %v5691_v63 = vunpack.i.h.bf16 %v5689_v19  ;;  %v5690_v2 = vunpack.i.l.bf16 %v5689_v19  ;;  %5391 = vmatprep.subr.bf16.mxu1 %v5390_v17  ;;  %v1905_v23 = vmul.f32 %v4520_v18, %v1893_v60  ;;  %v6625_v16 = vld [vmem:[%s7114_s4 + $0x50] sm:$0xff] }
 0xfb0   :  { %5393 = vmatpush3.bf16.msra.mxu1 %v5390_v17  ;;  %v1904_v44 = vmul.f32 %v4520_v18, %v1892_v20  ;;  %v5692_v60 = vpack.i.bf16 %v6617_v15, %v6525_v33  ;;  %v6630_v17 = vld [vmem:[%s7114_s4 + $0x70] sm:$0xff] }
 0xfb1   :  { %v5394_v21 = vpack.c.bf16 %v5691_v63, %v5690_v2  ;;  %v1917_v28 = vadd.f32 %v4521_v45, %v1905_v23 }
 0xfb2   :  { %v1916_v24 = vadd.f32 %v4521_v45, %v1904_v44 }
 0xfb3   :  { %5395 = vmatprep.subr.bf16.mxu1 %v5394_v21 }
 0xfb4   :  { %5397 = vmatpush3.bf16.msra.mxu1 %v5394_v21  ;;  %5037 = vmatprep.mubr.msk.f32.mxu1 %vm7194_vm10, %v1916_v24  ;;  %vm7205_vm10 = vmmov %vm7186_vm1 }
 0xfb5   :  { %v5935_v25 = vpop.eup %5934 }
 0xfb6   :  { %v1894_v36 = vmul.f32 %v5935_v25, %v6584_v40 }
 0xfb7   :  { %5038 = vmatmul.mubr.msk.f32.vlgmr.msra.gmra.mrb[24].mxu1 %vm7195_vm12, %v1917_v28  ;;  %vm7206_vm12 = vmmov %vm7186_vm1 }
 0xfb8   :  { %v1906_v1 = vmul.f32 %v4520_v18, %v1894_v36 }
 0xfb9   :  { %v5937_v38 = vpop.eup %5936 }
 0xfba   :  { %v1918_v49 = vadd.f32 %v4521_v45, %v1906_v1  ;;  %v1895_v39 = vmul.f32 %v5937_v38, %v6588_v46 }
 0xfbc   :  { %5040 = vmatprep.mubr.msk.f32.mxu1 %vm7196_vm13, %v1918_v49  ;;  %v1907_v47 = vmul.f32 %v4520_v18, %v1895_v39  ;;  %v5797_v18 = vpack.i.bf16 %v6630_v17, %v6625_v16  ;;  %v6651_v39 = vld [vmem:[%s7114_s4 + $0x30] sm:$0xff]  ;;  %vm7207_vm13 = vmmov %vm7186_vm1 }
 0xfbe   :  { %v1919_v41 = vadd.f32 %v4521_v45, %v1907_v47  ;;  %v5697_v47 = vpack.i.bf16 %v6651_v39, %v6530_v34 }
 0xfc0   :  { %5041 = vmatmul.mubr.msk.f32.gmra.mrb[26].mxu1 %vm7197_vm15, %v1919_v41  ;;  %vm7208_vm15 = vmmov %vm7186_vm1 }
0x108a   :  { %v5039_v40 = vpop.f32.mrb[24].mxu1 }
0x108b   :  { %v2028_v51 = vadd.f32 %v5039_v40, %v4522_v50  ;;  %v2022_v53 = vpop.f32.mrb[25].mxu1 }
0x108c   :  { %v2023_v55 = vadd.f32 %v4522_v50, %v2022_v53 }
0x108d   :  { %v2042_v58 = vmax.f32 %v2028_v51, 0.0 }
0x108e   :  { %v2041_v26 = vmax.f32 %v2023_v55, 0.0 }
0x1090   :  { %5059 = vmatprep.mubr.msk.f32.mxu0 %vm2053_vm0, %v2041_v26 }
0x1091   :  { %5060 = vmatmul.mubr.msk.f32.vlgmr.msra.gmra.mrb[26].mxu0 %vm2053_vm0, %v2042_v58 }
0x1093   :  { %v5042_v46 = vpop.f32.mrb[26].mxu1 }
0x1094   :  { %v2038_v27 = vadd.f32 %v5042_v46, %v4522_v50  ;;  %v2032_v3 = vpop.f32.mrb[27].mxu1 }
0x1095   :  { %v2033_v4 = vadd.f32 %v4522_v50, %v2032_v3 }
0x1096   :  { %v2044_v5 = vmax.f32 %v2038_v27, 0.0 }
0x1097   :  { %v2043_v52 = vmax.f32 %v2033_v4, 0.0 }
0x1099   :  { %5062 = vmatprep.mubr.msk.f32.mxu0 %vm2053_vm0, %v2043_v52 }
0x109a   :  { %5063 = vmatmul.mubr.msk.f32.gmra.mrb[28].mxu0 %vm2053_vm0, %v2044_v5 }
0x1164   :  { %v5061_v6 = vpop.f32.mrb[26].mxu0 }
0x1165   :  { %v2138_v30 = vadd.f32 %v5061_v6, %v4527_v57  ;;  %v2132_v54 = vpop.f32.mrb[27].mxu0 }
0x1166   :  { %v2133_v29 = vadd.f32 %v4527_v57, %v2132_v54  ;;  %v4533_v54 = vld [vmem:[#allocation6 + $0x9] ss:$0 sm:$0xff] }
0x1167   :  { %v2152_v59 = vadd.f32 %v2138_v30, %v1917_v28 }
0x1168   :  { %v2151_v7 = vadd.f32 %v2133_v29, %v1916_v24 }
0x1169   :  { %v2158_v8 = vsel %vm7186_vm1, %v2152_v59, 0.0 }
0x116a   :  { %2159 = vadd.xlane.f32.xlu0 %v2158_v8  ;;  %v2155_v9 = vsel %vm7198_vm2, %v2151_v7, 0.0  ;;  %vm7209_vm2 = vmmov %vm7186_vm1 }
0x116b   :  { %2156 = vadd.xlane.f32.xlu1 %v2155_v9 }
0x116d   :  { %v5064_v10 = vpop.f32.mrb[28].mxu0 }
0x116e   :  { %v2148_v56 = vadd.f32 %v5064_v10, %v4527_v57  ;;  %v2142_v12 = vpop.f32.mrb[29].mxu0 }
0x116f   :  { %v2143_v32 = vadd.f32 %v4527_v57, %v2142_v12  ;;  %v4532_v57 = vld [vmem:[#allocation6 + $0x8] ss:$0 sm:$0xff] }
0x1170   :  { %v2154_v62 = vadd.f32 %v2148_v56, %v1919_v41 }
0x1171   :  { %v2153_v61 = vadd.f32 %v2143_v32, %v1918_v49  ;;  %v5702_v49 = vpack.i.bf16 %v6625_v16, %v6535_v35  ;;  %v5707_v35 = vpack.i.bf16 %v6630_v17, %v6542_v37 }
0x1172   :  { %v2164_v31 = vsel %vm7199_vm3, %v2154_v62, 0.0  ;;  %vm7210_vm3 = vmmov %vm7186_vm1 }
0x1173   :  { %2165 = vadd.xlane.f32.xlu0 %v2164_v31  ;;  %v2161_v13 = vsel %vm7200_vm4, %v2153_v61, 0.0  ;;  %vm7211_vm4 = vmmov %vm7186_vm1 }
0x1174   :  { %2162 = vadd.xlane.f32.xlu1 %v2161_v13 }
0x1185   :  { %5693 = vrot.lane.b32.xlu1 %v5692_v60, %s6144_s3 }
0x11f7   :  { %v2160_v19 = vpop.xlane.xlu0 %2159 }
0x11f8   :  { %v2168_v20 = vmul.f32 0.03125, %v2160_v19  ;;  %v2157_v63 = vpop.xlane.xlu1 %2156 }
0x11f9   :  { %v2167_v33 = vmul.f32 0.03125, %v2157_v63 }
0x11fa   :  { %v6634_v2 = vsub.f32 %v2152_v59, %v2168_v20 }
0x11fb   :  { %v2171_v45 = vsub.f32 %v2151_v7, %v2167_v33 }
0x11fc   :  { %v2176_v44 = vmul.f32 %v6634_v2, %v6634_v2 }
0x11fd   :  { %v2175_v21 = vmul.f32 %v2171_v45, %v2171_v45 }
0x11fe   :  { %v2182_v23 = vsel %vm7201_vm8, %v2176_v44, 0.0  ;;  %vm7212_vm8 = vcmask 64512  }
0x11ff   :  { %2183 = vadd.xlane.f32.xlu0 %v2182_v23  ;;  %v2179_v24 = vsel %vm7202_vm5, %v2175_v21, 0.0  ;;  %vm7213_vm5 = vmmov %vm7212_vm8 }
0x1200   :  { %v2166_v25 = vpop.xlane.xlu0 %2165  ;;  %2180 = vadd.xlane.f32.xlu1 %v2179_v24 }
0x1201   :  { %v2170_v28 = vmul.f32 0.03125, %v2166_v25  ;;  %v2163_v41 = vpop.xlane.xlu1 %2162 }
0x1202   :  { %v2169_v42 = vmul.f32 0.03125, %v2163_v41  ;;  %v4534_v41 = vld [vmem:[#allocation6 + $0xa] ss:$0 sm:$0xff] }
0x1203   :  { %v6640_v36 = vsub.f32 %v2154_v62, %v2170_v28 }
0x1204   :  { %v2173_v43 = vsub.f32 %v2153_v61, %v2169_v42 }
0x1205   :  { %v2178_v1 = vmul.f32 %v6640_v36, %v6640_v36  ;;  %v6660_v40 = vpop.permute.xlu1 %5693 }
0x1206   :  { %v2177_v48 = vmul.f32 %v2173_v43, %v2173_v43  ;;  %v5696_v58 = vunpack.i.h.bf16 %v6660_v40  ;;  %v5695_v46 = vunpack.i.l.bf16 %v6660_v40 }
0x1207   :  { %v2188_v38 = vsel %vm7203_vm6, %v2178_v1, 0.0  ;;  %vm7214_vm6 = vmmov %vm7213_vm5 }
0x1208   :  { %2189 = vadd.xlane.f32.xlu0 %v2188_v38  ;;  %v2185_v50 = vsel %vm7204_vm7, %v2177_v48, 0.0  ;;  %v2259_v52 = vsel %vm7205_vm10, %v5695_v46, %v5696_v58  ;;  %vm7215_vm7 = vmmov %vm7213_vm5 }
0x1209   :  { %vm7216_vm10 = vmmov %vm7186_vm1 }
0x1211   :  { %5703 = vrot.lane.b32.xlu1 %v5702_v49, %s6144_s3 }
0x121e   :  { %5698 = vrot.lane.b32.xlu0 %v5697_v47, %s6144_s3 }
0x1235   :  { %2186 = vadd.xlane.f32.xlu1 %v2185_v50 }
0x1246   :  { %5708 = vrot.lane.b32.xlu1 %v5707_v35, %s6144_s3 }
0x128c   :  { %v2184_v34 = vpop.xlane.xlu0 %2183 }
0x128d   :  { %v2181_v51 = vpop.xlane.xlu1 %2180  ;;  %v2192_v7 = vmul.f32 0.03125, %v2184_v34 }
0x128e   :  { %v2191_v53 = vmul.f32 0.03125, %v2181_v51 }
0x128f   :  { %v2196_v8 = vadd.f32 1e-05, %v2192_v7 }
0x1290   :  { %v2195_v55 = vadd.f32 1e-05, %v2191_v53 }
0x1291   :  { %v6678_v10 = vpop.permute.xlu1 %5703 }
0x1292   :  { %5938 = vrsqrt.f32 %v2195_v55  ;;  %v5706_v61 = vunpack.i.h.bf16 %v6678_v10  ;;  %v5705_v31 = vunpack.i.l.bf16 %v6678_v10 }
0x1293   :  { %5940 = vrsqrt.f32 %v2196_v8 }
0x1294   :  { %v2261_v33 = vsel %vm7208_vm15, %v5705_v31, %v5706_v61  ;;  %vm7219_vm15 = vmmov %vm7186_vm1 }
0x1295   :  { %v2190_v26 = vpop.xlane.xlu0 %2189 }
0x1296   :  { %v2194_v9 = vmul.f32 0.03125, %v2190_v26 }
0x1298   :  { %v2198_v56 = vadd.f32 1e-05, %v2194_v9 }
0x1299   :  { %v6664_v27 = vpop.permute.xlu0 %5698 }
0x129a   :  { %v5701_v3 = vunpack.i.h.bf16 %v6664_v27  ;;  %v5700_v37 = vunpack.i.l.bf16 %v6664_v27  ;;  %5942 = vrsqrt.f32 %v2198_v56 }
0x129c   :  { %v5939_v4 = vpop.eup %5938  ;;  %v2260_v5 = vsel %vm7206_vm12, %v5700_v37, %v5701_v3  ;;  %vm7217_vm12 = vmmov %vm7186_vm1 }
0x129d   :  { %v5414_v6 = vpack.c.bf16 %v2260_v5, %v2259_v52  ;;  %v2203_v30 = vmul.f32 %v5939_v4, %v2171_v45  ;;  %v5941_v32 = vpop.eup %5940 }
0x129e   :  { %v2204_v60 = vmul.f32 %v5941_v32, %v6634_v2 }
0x129f   :  { %5415 = vmatprep.subr.bf16.mxu1 %v5414_v6  ;;  %v2215_v29 = vmul.f32 %v4532_v57, %v2203_v30 }
0x12a0   :  { %5417 = vmatpush3.bf16.msra.mxu1 %v5414_v6  ;;  %v2216_v44 = vmul.f32 %v4532_v57, %v2204_v60 }
0x12a1   :  { %v6674_v59 = vadd.f32 %v4533_v54, %v2215_v29 }
0x12a2   :  { %v6693_v2 = vadd.f32 %v4533_v54, %v2216_v44 }
0x12a3   :  { %5073 = vmatprep.mubr.msk.f32.mxu1 %vm7207_vm13, %v6674_v59  ;;  %vm7218_vm13 = vmmov %vm7186_vm1 }
0x12a4   :  { %v5943_v23 = vpop.eup %5942 }
0x12a5   :  { %v2206_v24 = vmul.f32 %v5943_v23, %v6640_v36 }
0x12a7   :  { %v2218_v1 = vmul.f32 %v4532_v57, %v2206_v24 }
0x12a9   :  { %v6700_v47 = vadd.f32 %v4533_v54, %v2218_v1 }
0x12c2   :  { %v2187_v12 = vpop.xlane.xlu1 %2186 }
0x12c3   :  { %v2193_v62 = vmul.f32 0.03125, %v2187_v12 }
0x12c5   :  { %v2197_v13 = vadd.f32 1e-05, %v2193_v62 }
0x12c6   :  { %v6683_v19 = vpop.permute.xlu1 %5708 }
0x12c7   :  { %5944 = vrsqrt.f32 %v2197_v13  ;;  %v5711_v20 = vunpack.i.h.bf16 %v6683_v19  ;;  %v5710_v63 = vunpack.i.l.bf16 %v6683_v19 }
0x12c9   :  { %v2262_v45 = vsel %vm7186_vm1, %v5710_v63, %v5711_v20 }
0x12ca   :  { %v5418_v21 = vpack.c.bf16 %v2262_v45, %v2261_v33 }
0x12cc   :  { %5419 = vmatprep.subr.bf16.mxu1 %v5418_v21 }
0x12cd   :  { %5421 = vmatpush3.bf16.msra.mxu1 %v5418_v21 }
0x12d0   :  { %5074 = vmatmul.mubr.msk.f32.vlgmr.msra.gmra.mrb[28].mxu1 %vm7209_vm2, %v6693_v2  ;;  %vm7220_vm2 = vmmov %vm7186_vm1 }
0x12d1   :  { %v5945_v25 = vpop.eup %5944 }
0x12d2   :  { %v2205_v28 = vmul.f32 %v5945_v25, %v2173_v43 }
0x12d4   :  { %v2217_v38 = vmul.f32 %v4532_v57, %v2205_v28 }
0x12d6   :  { %v6698_v49 = vadd.f32 %v4533_v54, %v2217_v38 }
0x12d8   :  { %5076 = vmatprep.mubr.msk.f32.mxu1 %vm7210_vm3, %v6698_v49  ;;  %vm7221_vm3 = vmmov %vm7186_vm1 }
0x12d9   :  { %5077 = vmatmul.mubr.msk.f32.gmra.mrb[30].mxu1 %vm7211_vm4, %v6700_v47  ;;  %vm7222_vm4 = vmmov %vm7186_vm1 }
0x13a3   :  { %v5075_v42 = vpop.f32.mrb[28].mxu1 }
0x13a4   :  { %v6706_v36 = vadd.f32 %v5075_v42, %v4534_v41  ;;  %v2345_v48 = vpop.f32.mrb[29].mxu1 }
0x13a5   :  { %v6708_v50 = vadd.f32 %v4534_v41, %v2345_v48 }
0x13a7   :  { %5087 = vmatprep.mubr.msk.f32.mxu1 %vm7212_vm8, %v6708_v50  ;;  %v6714_v43 = vpack.i.bf16 %v6706_v36, %v6708_v50  ;;  %vm7223_vm8 = vmmov %vm7186_vm1 }
0x13a9   :  { %5713 = vrot.lane.b32.xlu0 %v6714_v43, %s6131_s9 }
0x13ac   :  { %v5078_v35 = vpop.f32.mrb[30].mxu1 }
0x13ad   :  { %v6718_v51 = vadd.f32 %v5078_v35, %v4534_v41  ;;  %v2355_v53 = vpop.f32.mrb[31].mxu1 }
0x13ae   :  { %v6720_v55 = vadd.f32 %v4534_v41, %v2355_v53 }
0x13b0   :  { %v6724_v34 = vpack.i.bf16 %v6718_v51, %v6720_v55 }
0x13b2   :  { %5718 = vrot.lane.b32.xlu1 %v6724_v34, %s6131_s9 }
0x141b   :  { %v5714_v26 = vpop.permute.xlu0 %5713 }
0x141c   :  { %v5716_v46 = vunpack.i.h.bf16 %v5714_v26  ;;  %v5715_v37 = vunpack.i.l.bf16 %v5714_v26 }
0x141e   :  { %v5422_v4 = vpack.c.bf16 %v5716_v46, %v5715_v37 }
0x1420   :  { %5424 = vmatprep.subr.msk.bf16.mxu1 %vm7132_vm14, %v5422_v4 }
0x1421   :  { %5427 = vmatpush3.bf16.xpose.msk.msra.mxu1 %vm7132_vm14, %v5422_v4 }
0x1424   :  { %v5719_v52 = vpop.permute.xlu1 %5718 }
0x1425   :  { %v5721_v5 = vunpack.i.h.bf16 %v5719_v52  ;;  %v5720_v57 = vunpack.i.l.bf16 %v5719_v52 }
0x1427   :  { %v5428_v6 = vpack.c.bf16 %v5721_v5, %v5720_v57 }
0x1429   :  { %5430 = vmatprep.subr.msk.bf16.mxu1 %vm7132_vm14, %v5428_v6 }
0x142a   :  { %5433 = vmatpush3.bf16.xpose.msk.msra.mxu1 %vm7132_vm14, %v5428_v6 }
0x1431   :  { %5088 = vmatmul.mubr.msk.f32.vlgmr.msra.gmra.mrb[32].mxu1 %vm7213_vm5, %v6706_v36  ;;  %vm7224_vm5 = vmmov %vm7186_vm1 }
0x1432   :  { %5090 = vmatprep.mubr.msk.f32.mxu1 %vm7214_vm6, %v6720_v55  ;;  %vm7225_vm6 = vmmov %vm7186_vm1 }
0x1435   :  { %5091 = vmatmul.mubr.msk.f32.gmra.mrb[34].mxu1 %vm7215_vm7, %v6718_v51  ;;  %vm7226_vm7 = vmmov %vm7186_vm1 }
0x1504   :  { %v5089_v30 = vpop.f32.mrb[32].mxu1 }
0x1505   :  { %v2464_v54 = vadd.f32 %v5089_v30, %v6335_v14  ;;  %v2458_v29 = vpop.f32.mrb[33].mxu1 }
0x1506   :  { %v2459_v7 = vadd.f32 %v2458_v29, %v6335_v14 }
0x1507   :  { %v2480_v8 = vsel %vm7216_vm10, %v2464_v54, -inf  ;;  %vm7227_vm10 = vcmask 64512  }
0x1508   :  { %2481 = vmax.xlane.f32.xlu1 %v2480_v8  ;;  %v5092_v9 = vpop.f32.mrb[34].mxu1  ;;  %v2477_v56 = vsel %vm7217_vm12, %v2459_v7, -inf  ;;  %vm7228_vm12 = vmmov %vm7227_vm10 }
0x1509   :  { %v2468_v12 = vpop.f32.mrb[35].mxu1  ;;  %2478 = vmax.xlane.f32.xlu0 %v2477_v56  ;;  %v2474_v62 = vadd.f32 %v5092_v9, %v6342_v22 }
0x150a   :  { %v2469_v32 = vadd.f32 %v2468_v12, %v6342_v22 }
0x150b   :  { %v2486_v13 = vsel %vm7219_vm15, %v2474_v62, -inf  ;;  %vm7230_vm15 = vmmov %vm7227_vm10 }
0x150c   :  { %v2483_v31 = vsel %vm7218_vm13, %v2469_v32, -inf  ;;  %vm7229_vm13 = vmmov %vm7227_vm10 }
0x150d   :  { %2484 = vmax.xlane.f32.xlu0 %v2483_v31 }
0x1511   :  { %2487 = vmax.xlane.f32.xlu0 %v2486_v13 }
0x1519   :  { %5723 = vrot.lane.b32.xlu1 %v6714_v43, %s6133_s10 }
0x151d   :  { %5733 = vrot.lane.b32.xlu1 %v6714_v43, %s6134_s11 }
0x1595   :  { %v2482_v60 = vpop.xlane.xlu1 %2481 }
0x1596   :  { %v2490_v63 = vsub.f32 %v2464_v54, %v2482_v60  ;;  %v2479_v33 = vpop.xlane.xlu0 %2478 }
0x1597   :  { %v2489_v45 = vsub.f32 %v2459_v7, %v2479_v33 }
0x1598   :  { %v2495_v44 = vmul.f32 1.442695, %v2490_v63 }
0x1599   :  { %v2493_v21 = vmul.f32 1.442695, %v2489_v45  ;;  %v5724_v23 = vpop.permute.xlu1 %5723 }
0x159a   :  { %5946 = vpow2.f32 %v2495_v44  ;;  %v5726_v24 = vunpack.i.h.bf16 %v5724_v23  ;;  %v5725_v25 = vunpack.i.l.bf16 %v5724_v23  ;;  %v2485_v48 = vpop.xlane.xlu0 %2484 }
0x159b   :  { %5948 = vpow2.f32 %v2493_v21  ;;  %v2491_v26 = vsub.f32 %v2469_v32, %v2485_v48 }
0x159c   :  { %v5434_v28 = vpack.c.bf16 %v5726_v24, %v5725_v25 }
0x159d   :  { %v2497_v37 = vmul.f32 1.442695, %v2491_v26  ;;  %v5734_v6 = vpop.permute.xlu1 %5733 }
0x159e   :  { %5435 = vmatprep.subr.bf16.mxu0 %v5434_v28  ;;  %v2488_v35 = vpop.xlane.xlu0 %2487  ;;  %v5736_v7 = vunpack.i.h.bf16 %v5734_v6  ;;  %v5735_v8 = vunpack.i.l.bf16 %v5734_v6 }
0x159f   :  { %5437 = vmatpush3.bf16.msra.mxu0 %v5434_v28  ;;  %v2492_v53 = vsub.f32 %v2474_v62, %v2488_v35 }
0x15a0   :  { %v5442_v32 = vpack.c.bf16 %v5736_v7, %v5735_v8 }
0x15a1   :  { %v2499_v46 = vmul.f32 1.442695, %v2492_v53 }
0x15a3   :  { %5950 = vpow2.f32 %v2499_v46 }
0x15a4   :  { %v5947_v1 = vpop.eup %5946  ;;  %5952 = vpow2.f32 %v2497_v37 }
0x15a5   :  { %v5949_v38 = vpop.eup %5948  ;;  %v2504_v41 = vsel %vm7186_vm1, %v5947_v1, 0.0 }
0x15a6   :  { %2505 = vadd.xlane.f32.xlu0 %v2504_v41  ;;  %v2501_v42 = vsel %vm7220_vm2, %v5949_v38, 0.0  ;;  %vm7231_vm2 = vmmov %vm7186_vm1 }
0x15a7   :  { %2502 = vadd.xlane.f32.xlu1 %v2501_v42 }
0x15ad   :  { %v5951_v4 = vpop.eup %5950 }
0x15ae   :  { %v5953_v52 = vpop.eup %5952  ;;  %v2510_v5 = vsel %vm7221_vm3, %v5951_v4, 0.0  ;;  %vm7232_vm3 = vmmov %vm7186_vm1 }
0x15af   :  { %v2507_v57 = vsel %vm7222_vm4, %v5953_v52, 0.0  ;;  %vm7233_vm4 = vmmov %vm7186_vm1 }
0x15b8   :  { %5738 = vrot.lane.b32.xlu1 %v6724_v34, %s6134_s11 }
0x15bc   :  { %5728 = vrot.lane.b32.xlu0 %v6724_v34, %s6133_s10 }
0x15db   :  { %2511 = vadd.xlane.f32.xlu0 %v2510_v5 }
0x15dc   :  { %2508 = vadd.xlane.f32.xlu1 %v2507_v57 }
0x15ed   :  { %2632 = vrot.lane.b32.xlu1 %v6706_v36, %s6135_s12 }
0x15f1   :  { %2636 = vrot.lane.b32.xlu1 %v6718_v51, %s6135_s12  ;;  %2630 = vrot.lane.b32.xlu0 %v6708_v50, %s6135_s12 }
0x15f5   :  { %2634 = vrot.lane.b32.xlu0 %v6720_v55, %s6135_s12 }
0x1633   :  { %v2506_v30 = vpop.xlane.xlu0 %2505 }
0x1634   :  { %5954 = vrcp.f32 %v2506_v30  ;;  %v2503_v54 = vpop.xlane.xlu1 %2502 }
0x1635   :  { %5956 = vrcp.f32 %v2503_v54 }
0x1637   :  { %v5729_v29 = vpop.permute.xlu0 %5728 }
0x1638   :  { %v5731_v9 = vunpack.i.h.bf16 %v5729_v29  ;;  %v5730_v56 = vunpack.i.l.bf16 %v5729_v29  ;;  %v5739_v31 = vpop.permute.xlu1 %5738 }
0x1639   :  { %v5741_v33 = vunpack.i.h.bf16 %v5739_v31  ;;  %v5740_v45 = vunpack.i.l.bf16 %v5739_v31 }
0x163a   :  { %v5438_v12 = vpack.c.bf16 %v5731_v9, %v5730_v56 }
0x163b   :  { %v5448_v44 = vpack.c.bf16 %v5741_v33, %v5740_v45 }
0x163c   :  { %5439 = vmatprep.subr.bf16.mxu0 %v5438_v12 }
0x163d   :  { %5441 = vmatpush3.bf16.msra.mxu0 %v5438_v12 }
0x163e   :  { %v5955_v62 = vpop.eup %5954  ;;  %5444 = vmatprep.subr.msk.bf16.mxu0 %vm7132_vm14, %v5442_v32 }
0x163f   :  { %v5957_v13 = vpop.eup %5956  ;;  %v2518_v63 = vmul.f32 %v5955_v62, %v5947_v1 }
0x1640   :  { %v2517_v60 = vmul.f32 %v5957_v13, %v5949_v38 }
0x1642   :  { %5101 = vmatprep.mubr.msk.f32.mxu0 %vm7223_vm8, %v2517_v60  ;;  %vm7234_vm8 = vmmov %vm7186_vm1 }
0x1643   :  { %5102 = vmatmul.mubr.msk.f32.vlgmr.msra.gmra.mrb[30].mxu0 %vm7224_vm5, %v2518_v63  ;;  %vm7235_vm5 = vmmov %vm7186_vm1 }
0x1646   :  { %5447 = vmatpush3.bf16.xpose.msk.msra.mxu0 %vm7132_vm14, %v5442_v32 }
0x1647   :  { %5450 = vmatprep.subr.msk.bf16.mxu0 %vm7132_vm14, %v5448_v44 }
0x164e   :  { %5453 = vmatpush3.bf16.xpose.msk.msra.mxu0 %vm7132_vm14, %v5448_v44 }
0x1668   :  { %v2512_v21 = vpop.xlane.xlu0 %2511 }
0x1669   :  { %5958 = vrcp.f32 %v2512_v21  ;;  %v2509_v23 = vpop.xlane.xlu1 %2508 }
0x166a   :  { %5960 = vrcp.f32 %v2509_v23 }
0x166c   :  { %v2631_v1 = vpop.permute.xlu0 %2630 }
0x166d   :  { %v2633_v41 = vpop.permute.xlu1 %2632 }
0x1670   :  { %v2635_v42 = vpop.permute.xlu0 %2634 }
0x1671   :  { %v2637_v48 = vpop.permute.xlu1 %2636 }
0x1673   :  { %v5959_v24 = vpop.eup %5958 }
0x1674   :  { %v5961_v25 = vpop.eup %5960  ;;  %v2520_v38 = vmul.f32 %v5959_v24, %v5951_v4 }
0x1675   :  { %v2519_v28 = vmul.f32 %v5961_v25, %v5953_v52 }
0x1677   :  { %5104 = vmatprep.mubr.msk.f32.mxu0 %vm7225_vm6, %v2519_v28  ;;  %vm7236_vm6 = vmmov %vm7186_vm1 }
0x1678   :  { %5105 = vmatmul.mubr.msk.f32.gmra.mrb[32].mxu0 %vm7226_vm7, %v2520_v38  ;;  %vm7237_vm7 = vmmov %vm7186_vm1 }
0x1679   :  { %5115 = vmatprep.mubr.msk.f32.mxu0 %vm7227_vm10, %v2631_v1  ;;  %vm7238_vm10 = vmmov %vm7186_vm1 }
0x167c   :  { %5116 = vmatmul.mubr.msk.f32.vlgmr.msra.gmra.mrb[34].mxu0 %vm7228_vm12, %v2633_v41  ;;  %vm7239_vm12 = vmmov %vm7186_vm1 }
0x167d   :  { %5118 = vmatprep.mubr.msk.f32.mxu0 %vm7229_vm13, %v2635_v42  ;;  %vm7240_vm13 = vmmov %vm7186_vm1 }
0x1680   :  { %5119 = vmatmul.mubr.msk.f32.gmra.mrb[36].mxu0 %vm7230_vm15, %v2637_v48  ;;  %vm7241_vm15 = vmmov %vm7186_vm1 }
0x1716   :  { %v6786_v35 = vpop.f32.mrb[30].mxu0 }
0x1717   :  { %v6788_v53 = vpop.f32.mrb[31].mxu0 }
0x174b   :  { %v6790_v26 = vpop.f32.mrb[32].mxu0 }
0x174c   :  { %v6792_v46 = vpop.f32.mrb[33].mxu0 }
0x174f   :  { %v5117_v37 = vpop.f32.mrb[34].mxu0 }
0x1750   :  { %v2734_v4 = vadd.f32 %v5117_v37, %v6335_v14  ;;  %v2728_v52 = vpop.f32.mrb[35].mxu0 }
0x1751   :  { %v2729_v5 = vadd.f32 %v2728_v52, %v6335_v14 }
0x1752   :  { %v2750_v57 = vsel %vm7186_vm1, %v2734_v4, -inf  ;;  %vm7242_vm1 = vcmask 64512  }
0x1753   :  { %2751 = vmax.xlane.f32.xlu1 %v2750_v57  ;;  %v5120_v6 = vpop.f32.mrb[36].mxu0  ;;  %v2747_v30 = vsel %vm7231_vm2, %v2729_v5, -inf  ;;  %vm7243_vm2 = vmmov %vm7242_vm1 }
0x1754   :  { %v2738_v54 = vpop.f32.mrb[37].mxu0  ;;  %2748 = vmax.xlane.f32.xlu0 %v2747_v30  ;;  %v2744_v7 = vadd.f32 %v5120_v6, %v6342_v22 }
0x1755   :  { %v2739_v29 = vadd.f32 %v2738_v54, %v6342_v22 }
0x1756   :  { %v2756_v9 = vsel %vm7233_vm4, %v2744_v7, -inf  ;;  %vm7245_vm4 = vmmov %vm7242_vm1 }
0x1757   :  { %v2753_v8 = vsel %vm7232_vm3, %v2739_v29, -inf  ;;  %vm7244_vm3 = vmmov %vm7242_vm1 }
0x1758   :  { %2754 = vmax.xlane.f32.xlu0 %v2753_v8 }
0x175c   :  { %2757 = vmax.xlane.f32.xlu0 %v2756_v9 }
0x1764   :  { %5743 = vrot.lane.b32.xlu1 %v6714_v43, %s6136_s15 }
0x1768   :  { %5753 = vrot.lane.b32.xlu1 %v6714_v43, %s6137_s27 }
0x17e0   :  { %v2752_v56 = vpop.xlane.xlu1 %2751 }
0x17e1   :  { %v2760_v12 = vsub.f32 %v2734_v4, %v2752_v56  ;;  %v2749_v32 = vpop.xlane.xlu0 %2748 }
0x17e2   :  { %v2759_v62 = vsub.f32 %v2729_v5, %v2749_v32 }
0x17e3   :  { %v2765_v31 = vmul.f32 1.442695, %v2760_v12 }
0x17e4   :  { %v2763_v13 = vmul.f32 1.442695, %v2759_v62  ;;  %v5744_v60 = vpop.permute.xlu1 %5743 }
0x17e5   :  { %5962 = vpow2.f32 %v2765_v31  ;;  %v5746_v63 = vunpack.i.h.bf16 %v5744_v60  ;;  %v5745_v33 = vunpack.i.l.bf16 %v5744_v60  ;;  %v2755_v25 = vpop.xlane.xlu0 %2754 }
0x17e6   :  { %5964 = vpow2.f32 %v2763_v13  ;;  %v2761_v38 = vsub.f32 %v2739_v29, %v2755_v25 }
0x17e7   :  { %v5454_v45 = vpack.c.bf16 %v5746_v63, %v5745_v33 }
0x17e8   :  { %v2767_v42 = vmul.f32 1.442695, %v2761_v38  ;;  %v5754_v5 = vpop.permute.xlu1 %5753 }
0x17e9   :  { %5455 = vmatprep.subr.bf16.mxu1 %v5454_v45  ;;  %v2758_v28 = vpop.xlane.xlu0 %2757  ;;  %v5756_v54 = vunpack.i.h.bf16 %v5754_v5  ;;  %v5755_v29 = vunpack.i.l.bf16 %v5754_v5 }
0x17ea   :  { %5457 = vmatpush3.bf16.msra.mxu1 %v5454_v45  ;;  %v2762_v1 = vsub.f32 %v2744_v7, %v2758_v28 }
0x17eb   :  { %v5462_v56 = vpack.c.bf16 %v5756_v54, %v5755_v29 }
0x17ec   :  { %v2769_v41 = vmul.f32 1.442695, %v2762_v1 }
0x17ee   :  { %5966 = vpow2.f32 %v2769_v41 }
0x17ef   :  { %v5963_v44 = vpop.eup %5962  ;;  %5968 = vpow2.f32 %v2767_v42 }
0x17f0   :  { %v5965_v21 = vpop.eup %5964  ;;  %v2774_v23 = vsel %vm7234_vm8, %v5963_v44, 0.0  ;;  %vm7246_vm8 = vmmov %vm7235_vm5 }
0x17f1   :  { %2775 = vadd.xlane.f32.xlu0 %v2774_v23  ;;  %v2771_v24 = vsel %vm7235_vm5, %v5965_v21, 0.0 }
0x17f2   :  { %2772 = vadd.xlane.f32.xlu1 %v2771_v24 }
0x17f8   :  { %v5967_v48 = vpop.eup %5966 }
0x17f9   :  { %v5969_v37 = vpop.eup %5968  ;;  %v2780_v4 = vsel %vm7236_vm6, %v5967_v48, 0.0  ;;  %vm7247_vm6 = vmmov %vm7235_vm5 }
0x17fa   :  { %v2777_v52 = vsel %vm7237_vm7, %v5969_v37, 0.0  ;;  %vm7248_vm7 = vmmov %vm7235_vm5 }
0x1803   :  { %5758 = vrot.lane.b32.xlu1 %v6724_v34, %s6137_s27 }
0x1807   :  { %5748 = vrot.lane.b32.xlu0 %v6724_v34, %s6136_s15 }
0x1826   :  { %2781 = vadd.xlane.f32.xlu0 %v2780_v4 }
0x1827   :  { %2778 = vadd.xlane.f32.xlu1 %v2777_v52 }
0x1838   :  { %2902 = vrot.lane.b32.xlu1 %v6706_v36, %s6138_s13 }
0x183c   :  { %2906 = vrot.lane.b32.xlu1 %v6718_v51, %s6138_s13  ;;  %2900 = vrot.lane.b32.xlu0 %v6708_v50, %s6138_s13 }
0x1840   :  { %2904 = vrot.lane.b32.xlu0 %v6720_v55, %s6138_s13 }
0x187e   :  { %v2776_v57 = vpop.xlane.xlu0 %2775 }
0x187f   :  { %5970 = vrcp.f32 %v2776_v57  ;;  %v2773_v6 = vpop.xlane.xlu1 %2772 }
0x1880   :  { %5972 = vrcp.f32 %v2773_v6 }
0x1882   :  { %v5749_v30 = vpop.permute.xlu0 %5748 }
0x1883   :  { %v5751_v7 = vunpack.i.h.bf16 %v5749_v30  ;;  %v5750_v8 = vunpack.i.l.bf16 %v5749_v30  ;;  %v5759_v32 = vpop.permute.xlu1 %5758 }
0x1884   :  { %v5761_v60 = vunpack.i.h.bf16 %v5759_v32  ;;  %v5760_v63 = vunpack.i.l.bf16 %v5759_v32 }
0x1885   :  { %v5458_v9 = vpack.c.bf16 %v5751_v7, %v5750_v8 }
0x1886   :  { %v5468_v33 = vpack.c.bf16 %v5761_v60, %v5760_v63 }
0x1887   :  { %5459 = vmatprep.subr.bf16.mxu1 %v5458_v9 }
0x1888   :  { %5461 = vmatpush3.bf16.msra.mxu1 %v5458_v9 }
0x1889   :  { %v5971_v12 = vpop.eup %5970  ;;  %5464 = vmatprep.subr.msk.bf16.mxu1 %vm7132_vm14, %v5462_v56 }
0x188a   :  { %v5973_v62 = vpop.eup %5972  ;;  %v2788_v13 = vmul.f32 %v5971_v12, %v5963_v44 }
0x188b   :  { %v2787_v31 = vmul.f32 %v5973_v62, %v5965_v21 }
0x188d   :  { %5129 = vmatprep.mubr.msk.f32.mxu1 %vm7238_vm10, %v2787_v31  ;;  %vm7249_vm10 = vmmov %vm7235_vm5 }
0x188e   :  { %5130 = vmatmul.mubr.msk.f32.vlgmr.msra.gmra.mrb[36].mxu1 %vm7239_vm12, %v2788_v13  ;;  %vm7250_vm12 = vmmov %vm7235_vm5 }
0x1891   :  { %5467 = vmatpush3.bf16.xpose.msk.msra.mxu1 %vm7132_vm14, %v5462_v56 }
0x1892   :  { %5470 = vmatprep.subr.msk.bf16.mxu1 %vm7132_vm14, %v5468_v33 }
0x1899   :  { %5473 = vmatpush3.bf16.xpose.msk.msra.mxu1 %vm7132_vm14, %v5468_v33 }
0x18b3   :  { %v2782_v45 = vpop.xlane.xlu0 %2781 }
0x18b4   :  { %5974 = vrcp.f32 %v2782_v45  ;;  %v2779_v21 = vpop.xlane.xlu1 %2778 }
0x18b5   :  { %5976 = vrcp.f32 %v2779_v21 }
0x18b7   :  { %v2901_v25 = vpop.permute.xlu0 %2900 }
0x18b8   :  { %v2903_v1 = vpop.permute.xlu1 %2902 }
0x18bb   :  { %v2905_v38 = vpop.permute.xlu0 %2904 }
0x18bc   :  { %v2907_v41 = vpop.permute.xlu1 %2906 }
0x18be   :  { %v5975_v44 = vpop.eup %5974 }
0x18bf   :  { %v5977_v23 = vpop.eup %5976  ;;  %v2790_v28 = vmul.f32 %v5975_v44, %v5967_v48 }
0x18c0   :  { %v2789_v24 = vmul.f32 %v5977_v23, %v5969_v37 }
0x18c2   :  { %5132 = vmatprep.mubr.msk.f32.mxu1 %vm7240_vm13, %v2789_v24  ;;  %vm7251_vm13 = vmmov %vm7235_vm5 }
0x18c3   :  { %5133 = vmatmul.mubr.msk.f32.gmra.mrb[38].mxu1 %vm7241_vm15, %v2790_v28  ;;  %vm7252_vm15 = vmmov %vm7235_vm5 }
0x18c4   :  { %5143 = vmatprep.mubr.msk.f32.mxu1 %vm7242_vm1, %v2901_v25  ;;  %vm7253_vm1 = vmmov %vm7235_vm5 }
0x18c7   :  { %5144 = vmatmul.mubr.msk.f32.vlgmr.msra.gmra.mrb[40].mxu1 %vm7243_vm2, %v2903_v1  ;;  %vm7254_vm2 = vmmov %vm7253_vm1 }
0x18c8   :  { %5146 = vmatprep.mubr.msk.f32.mxu1 %vm7244_vm3, %v2905_v38  ;;  %vm7255_vm3 = vmmov %vm7253_vm1 }
0x18cb   :  { %5147 = vmatmul.mubr.msk.f32.gmra.mrb[42].mxu1 %vm7245_vm4, %v2907_v41  ;;  %vm7256_vm4 = vmmov %vm7253_vm1 }
0x1961   :  { %v6838_v42 = vpop.f32.mrb[36].mxu1 }
0x1962   :  { %v6840_v37 = vpop.f32.mrb[37].mxu1 }
0x1996   :  { %v6842_v48 = vpop.f32.mrb[38].mxu1 }
0x1997   :  { %v6844_v4 = vpop.f32.mrb[39].mxu1 }
0x199a   :  { %v5145_v52 = vpop.f32.mrb[40].mxu1 }
0x199b   :  { %v3004_v5 = vadd.f32 %v5145_v52, %v6335_v14  ;;  %v2998_v57 = vpop.f32.mrb[41].mxu1 }
0x199c   :  { %v2999_v6 = vadd.f32 %v2998_v57, %v6335_v14 }
0x199d   :  { %v3020_v30 = vsel %vm7246_vm8, %v3004_v5, -inf  ;;  %vm7257_vm8 = vcmask 64512  }
0x199e   :  { %3021 = vmax.xlane.f32.xlu1 %v3020_v30  ;;  %v5148_v54 = vpop.f32.mrb[42].mxu1  ;;  %v3017_v29 = vsel %vm7235_vm5, %v2999_v6, -inf  ;;  %vm7258_vm5 = vmmov %vm7257_vm8 }
0x199f   :  { %v3008_v7 = vpop.f32.mrb[43].mxu1  ;;  %3018 = vmax.xlane.f32.xlu0 %v3017_v29  ;;  %v3014_v9 = vadd.f32 %v5148_v54, %v6342_v22 }
0x19a0   :  { %v3009_v8 = vadd.f32 %v3008_v7, %v6342_v22 }
0x19a1   :  { %v3026_v12 = vsel %vm7248_vm7, %v3014_v9, -inf  ;;  %vm7261_vm7 = vmmov %vm7253_vm1 }
0x19a2   :  { %v3023_v56 = vsel %vm7247_vm6, %v3009_v8, -inf  ;;  %vm7260_vm6 = vmmov %vm7258_vm5 }
0x19a3   :  { %3024 = vmax.xlane.f32.xlu0 %v3023_v56 }
0x19a7   :  { %3027 = vmax.xlane.f32.xlu0 %v3026_v12 }
0x19af   :  { %5763 = vrot.lane.b32.xlu1 %v6714_v43, %s6139_s16 }
0x19b3   :  { %5773 = vrot.lane.b32.xlu1 %v6714_v43, %s6140_s17 }
0x19b7   :  { %5778 = vrot.lane.b32.xlu1 %v6724_v34, %s6140_s17 }
0x1a2b   :  { %v3022_v32 = vpop.xlane.xlu1 %3021 }
0x1a2c   :  { %v3030_v62 = vsub.f32 %v3004_v5, %v3022_v32  ;;  %v3019_v31 = vpop.xlane.xlu0 %3018 }
0x1a2d   :  { %v3029_v13 = vsub.f32 %v2999_v6, %v3019_v31 }
0x1a2e   :  { %v3035_v60 = vmul.f32 1.442695, %v3030_v62 }
0x1a2f   :  { %v3033_v63 = vmul.f32 1.442695, %v3029_v13  ;;  %v5764_v33 = vpop.permute.xlu1 %5763 }
0x1a30   :  { %5978 = vpow2.f32 %v3035_v60  ;;  %v5766_v45 = vunpack.i.h.bf16 %v5764_v33  ;;  %v5765_v21 = vunpack.i.l.bf16 %v5764_v33  ;;  %v3025_v1 = vpop.xlane.xlu0 %3024 }
0x1a31   :  { %5980 = vpow2.f32 %v3033_v63  ;;  %v3031_v52 = vsub.f32 %v3009_v8, %v3025_v1 }
0x1a32   :  { %v5474_v44 = vpack.c.bf16 %v5766_v45, %v5765_v21 }
0x1a33   :  { %v3037_v57 = vmul.f32 1.442695, %v3031_v52 }
0x1a34   :  { %5475 = vmatprep.subr.bf16.mxu0 %v5474_v44  ;;  %v3028_v38 = vpop.xlane.xlu0 %3027 }
0x1a35   :  { %5477 = vmatpush3.bf16.msra.mxu0 %v5474_v44  ;;  %v3032_v41 = vsub.f32 %v3014_v9, %v3028_v38 }
0x1a37   :  { %v3039_v5 = vmul.f32 1.442695, %v3032_v41 }
0x1a39   :  { %5982 = vpow2.f32 %v3039_v5 }
0x1a3a   :  { %v5979_v23 = vpop.eup %5978  ;;  %5984 = vpow2.f32 %v3037_v57 }
0x1a3b   :  { %v5981_v24 = vpop.eup %5980  ;;  %v3044_v25 = vsel %vm7249_vm10, %v5979_v23, 0.0  ;;  %vm7262_vm10 = vmmov %vm7253_vm1 }
0x1a3c   :  { %3045 = vadd.xlane.f32.xlu0 %v3044_v25  ;;  %v3041_v28 = vsel %vm7250_vm12, %v5981_v24, 0.0  ;;  %vm7263_vm12 = vmmov %vm7253_vm1 }
0x1a3d   :  { %3042 = vadd.xlane.f32.xlu1 %v3041_v28 }
0x1a43   :  { %v5983_v6 = vpop.eup %5982 }
0x1a44   :  { %v5985_v30 = vpop.eup %5984  ;;  %v3050_v54 = vsel %vm7251_vm13, %v5983_v6, 0.0  ;;  %vm7264_vm13 = vmmov %vm7253_vm1 }
0x1a45   :  { %v3047_v29 = vsel %vm7252_vm15, %v5985_v30, 0.0  ;;  %vm7265_vm15 = vmmov %vm7253_vm1 }
0x1a4e   :  { %3172 = vrot.lane.b32.xlu1 %v6706_v36, %s6141_s18  ;;  %v5774_v36 = vpop.permute.xlu1 %5773 }
0x1a4f   :  { %v5776_v12 = vunpack.i.h.bf16 %v5774_v36  ;;  %v5775_v32 = vunpack.i.l.bf16 %v5774_v36 }
0x1a51   :  { %v5482_v60 = vpack.c.bf16 %v5776_v12, %v5775_v32 }
0x1a52   :  { %5768 = vrot.lane.b32.xlu0 %v6724_v34, %s6139_s16  ;;  %v5779_v7 = vpop.permute.xlu1 %5778 }
0x1a53   :  { %v5781_v63 = vunpack.i.h.bf16 %v5779_v7  ;;  %v5780_v33 = vunpack.i.l.bf16 %v5779_v7 }
0x1a55   :  { %v5488_v21 = vpack.c.bf16 %v5781_v63, %v5780_v33 }
0x1a71   :  { %3051 = vadd.xlane.f32.xlu0 %v3050_v54 }
0x1a72   :  { %3048 = vadd.xlane.f32.xlu1 %v3047_v29 }
0x1a83   :  { %3176 = vrot.lane.b32.xlu1 %v6718_v51, %s6141_s18 }
0x1a87   :  { %3170 = vrot.lane.b32.xlu0 %v6708_v50, %s6141_s18 }
0x1a8b   :  { %3174 = vrot.lane.b32.xlu0 %v6720_v55, %s6141_s18 }
0x1ac9   :  { %v3046_v8 = vpop.xlane.xlu0 %3045 }
0x1aca   :  { %5986 = vrcp.f32 %v3046_v8  ;;  %v3043_v9 = vpop.xlane.xlu1 %3042 }
0x1acb   :  { %5988 = vrcp.f32 %v3043_v9 }
0x1acd   :  { %v5769_v56 = vpop.permute.xlu0 %5768 }
0x1ace   :  { %v5771_v62 = vunpack.i.h.bf16 %v5769_v56  ;;  %v5770_v31 = vunpack.i.l.bf16 %v5769_v56  ;;  %v3173_v44 = vpop.permute.xlu1 %3172 }
0x1ad0   :  { %v5478_v13 = vpack.c.bf16 %v5771_v62, %v5770_v31 }
0x1ad2   :  { %5479 = vmatprep.subr.bf16.mxu0 %v5478_v13 }
0x1ad3   :  { %5481 = vmatpush3.bf16.msra.mxu0 %v5478_v13 }
0x1ad4   :  { %v5987_v51 = vpop.eup %5986  ;;  %5484 = vmatprep.subr.msk.bf16.mxu0 %vm7132_vm14, %v5482_v60 }
0x1ad5   :  { %v5989_v50 = vpop.eup %5988  ;;  %v3058_v45 = vmul.f32 %v5987_v51, %v5979_v23 }
0x1ad6   :  { %v3057_v55 = vmul.f32 %v5989_v50, %v5981_v24 }
0x1ad8   :  { %5157 = vmatprep.mubr.msk.f32.mxu0 %vm7253_vm1, %v3057_v55 }
0x1ad9   :  { %5158 = vmatmul.mubr.msk.f32.vlgmr.msra.gmra.mrb[38].mxu0 %vm7254_vm2, %v3058_v45  ;;  %vm7266_vm2 = vmmov %vm7253_vm1 }
0x1adc   :  { %5487 = vmatpush3.bf16.xpose.msk.msra.mxu0 %vm7132_vm14, %v5482_v60 }
0x1add   :  { %5490 = vmatprep.subr.msk.bf16.mxu0 %vm7132_vm14, %v5488_v21 }
0x1ae4   :  { %5493 = vmatpush3.bf16.xpose.msk.msra.mxu0 %vm7132_vm14, %v5488_v21  ;;  %vm7259_vm14 = vmmov %vm7258_vm5 }
0x1afe   :  { %v3052_v25 = vpop.xlane.xlu0 %3051 }
0x1aff   :  { %5990 = vrcp.f32 %v3052_v25  ;;  %v3049_v24 = vpop.xlane.xlu1 %3048 }
0x1b00   :  { %5992 = vrcp.f32 %v3049_v24 }
0x1b02   :  { %v3171_v38 = vpop.permute.xlu0 %3170 }
0x1b03   :  { %v3177_v0 = vpop.permute.xlu1 %3176 }
0x1b06   :  { %v3175_v52 = vpop.permute.xlu0 %3174 }
0x1b09   :  { %v5991_v23 = vpop.eup %5990 }
0x1b0a   :  { %v5993_v28 = vpop.eup %5992  ;;  %v3060_v41 = vmul.f32 %v5991_v23, %v5983_v6 }
0x1b0b   :  { %v3059_v1 = vmul.f32 %v5993_v28, %v5985_v30 }
0x1b0d   :  { %5160 = vmatprep.mubr.msk.f32.mxu0 %vm7255_vm3, %v3059_v1  ;;  %vm7267_vm3 = vmmov %vm7253_vm1 }
0x1b0e   :  { %5161 = vmatmul.mubr.msk.f32.gmra.mrb[40].mxu0 %vm7256_vm4, %v3060_v41  ;;  %vm7268_vm4 = vmmov %vm7253_vm1 }
0x1b0f   :  { %5171 = vmatprep.mubr.msk.f32.mxu0 %vm7257_vm8, %v3171_v38  ;;  %vm7269_vm8 = vmmov %vm7253_vm1 }
0x1b12   :  { %5172 = vmatmul.mubr.msk.f32.vlgmr.msra.gmra.mrb[42].mxu0 %vm7258_vm5, %v3173_v44  ;;  %vm7270_vm5 = vmmov %vm7253_vm1 }
0x1b13   :  { %5174 = vmatprep.mubr.msk.f32.mxu0 %vm7259_vm14, %v3175_v52  ;;  %vm7271_vm14 = vmmov %vm7253_vm1 }
0x1b16   :  { %5175 = vmatmul.mubr.msk.f32.gmra.mrb[44].mxu0 %vm7260_vm6, %v3177_v0 }
0x1bac   :  { %v5159_v5 = vpop.f32.mrb[38].mxu0 }
0x1bad   :  { %v3151_v57 = vpop.f32.mrb[39].mxu0 }
0x1be1   :  { %v5162_v54 = vpop.f32.mrb[40].mxu0 }
0x1be2   :  { %v3161_v30 = vpop.f32.mrb[41].mxu0 }
0x1be5   :  { %v5173_v29 = vpop.f32.mrb[42].mxu0 }
0x1be6   :  { %v3274_v6 = vadd.f32 %v5173_v29, %v6335_v14  ;;  %v3268_v36 = vpop.f32.mrb[43].mxu0  ;;  %v5792_v29 = vpack.i.bf16 %v6651_v39, %v6617_v15 }
0x1be7   :  { %v3269_v7 = vadd.f32 %v3268_v36, %v6335_v14 }
0x1be8   :  { %v3290_v8 = vsel %vm7261_vm7, %v3274_v6, -inf  ;;  %vm7272_vm7 = vmmov %vm7260_vm6 }
0x1be9   :  { %3291 = vmax.xlane.f32.xlu1 %v3290_v8  ;;  %v5176_v9 = vpop.f32.mrb[44].mxu0  ;;  %v3287_v56 = vsel %vm7262_vm10, %v3269_v7, -inf  ;;  %vm7273_vm10 = vmmov %vm7253_vm1 }
0x1bea   :  { %v3278_v12 = vpop.f32.mrb[45].mxu0  ;;  %3288 = vmax.xlane.f32.xlu0 %v3287_v56  ;;  %v3284_v62 = vadd.f32 %v5176_v9, %v6342_v22 }
0x1beb   :  { %v3279_v32 = vadd.f32 %v3278_v12, %v6342_v22 }
0x1bec   :  { %v3296_v13 = vsel %vm7264_vm13, %v3284_v62, -inf  ;;  %vm7275_vm13 = vmmov %vm7253_vm1 }
0x1bed   :  { %v3293_v31 = vsel %vm7263_vm12, %v3279_v32, -inf  ;;  %vm7274_vm12 = vmmov %vm7260_vm6 }
0x1bee   :  { %3294 = vmax.xlane.f32.xlu0 %v3293_v31 }
0x1bf2   :  { %3297 = vmax.xlane.f32.xlu0 %v3296_v13 }
0x1c76   :  { %v3292_v60 = vpop.xlane.xlu1 %3291 }
0x1c77   :  { %v3300_v14 = vsub.f32 %v3274_v6, %v3292_v60  ;;  %v3289_v51 = vpop.xlane.xlu0 %3288 }
0x1c78   :  { %v3299_v50 = vsub.f32 %v3269_v7, %v3289_v51 }
0x1c79   :  { %v3305_v55 = vmul.f32 1.442695, %v3300_v14 }
0x1c7a   :  { %v3303_v63 = vmul.f32 1.442695, %v3299_v50 }
0x1c7b   :  { %5994 = vpow2.f32 %v3305_v55  ;;  %v3295_v33 = vpop.xlane.xlu0 %3294 }
0x1c7c   :  { %5996 = vpow2.f32 %v3303_v63  ;;  %v3301_v45 = vsub.f32 %v3279_v32, %v3295_v33 }
0x1c7e   :  { %v3307_v21 = vmul.f32 1.442695, %v3301_v45 }
0x1c7f   :  { %v3298_v44 = vpop.xlane.xlu0 %3297 }
0x1c80   :  { %5998 = vpow2.f32 %v3307_v21  ;;  %v3302_v22 = vsub.f32 %v3284_v62, %v3298_v44 }
0x1c82   :  { %v3309_v25 = vmul.f32 1.442695, %v3302_v22 }
0x1c84   :  { %6000 = vpow2.f32 %v3309_v25 }
0x1c85   :  { %v5995_v24 = vpop.eup %5994 }
0x1c86   :  { %v5997_v23 = vpop.eup %5996  ;;  %v3314_v28 = vsel %vm7265_vm15, %v5995_v24, 0.0  ;;  %vm7276_vm15 = vmmov %vm7260_vm6 }
0x1c87   :  { %3315 = vadd.xlane.f32.xlu0 %v3314_v28  ;;  %v3311_v1 = vsel %vm7253_vm1, %v5997_v23, 0.0 }
0x1c88   :  { %3312 = vadd.xlane.f32.xlu1 %v3311_v1 }
0x1c8a   :  { %v5999_v38 = vpop.eup %5998 }
0x1c8b   :  { %v3317_v41 = vsel %vm7266_vm2, %v5999_v38, 0.0  ;;  %vm7277_vm2 = vmmov %vm7253_vm1 }
0x1c8c   :  { %3318 = vadd.xlane.f32.xlu1 %v3317_v41 }
0x1c8e   :  { %v6001_v52 = vpop.eup %6000 }
0x1c8f   :  { %v3320_v0 = vsel %vm7267_vm3, %v6001_v52, 0.0  ;;  %vm7278_vm3 = vmmov %vm7253_vm1 }
0x1c90   :  { %3321 = vadd.xlane.f32.xlu0 %v3320_v0 }
0x1c9d   :  { %5783 = vrot.lane.b32.xlu1 %v6714_v43, %s6142_s19 }
0x1ca1   :  { %5793 = vrot.lane.b32.xlu1 %v5792_v29, %s6133_s10 }
0x1ca5   :  { %5798 = vrot.lane.b32.xlu1 %v5797_v18, %s6133_s10 }
0x1ca6   :  { %5788 = vrot.lane.b32.xlu0 %v6724_v34, %s6142_s19 }
0x1ca9   :  { %3446 = vrot.lane.b32.xlu1 %v6838_v42, %s6123_s14 }
0x1caa   :  { %3444 = vrot.lane.b32.xlu0 %v6840_v37, %s6123_s14 }
0x1cad   :  { %3462 = vrot.lane.b32.xlu1 %v5159_v5, %s6125_s2 }
0x1cae   :  { %3460 = vrot.lane.b32.xlu0 %v3151_v57, %s6125_s2 }
0x1cb1   :  { %3450 = vrot.lane.b32.xlu1 %v6842_v48, %s6123_s14 }
0x1cb2   :  { %3448 = vrot.lane.b32.xlu0 %v6844_v4, %s6123_s14 }
0x1cb5   :  { %3466 = vrot.lane.b32.xlu1 %v5162_v54, %s6125_s2 }
0x1cb6   :  { %3464 = vrot.lane.b32.xlu0 %v3161_v30, %s6125_s2 }
0x1d14   :  { %v3316_v16 = vpop.xlane.xlu0 %3315 }
0x1d15   :  { %v3313_v15 = vpop.xlane.xlu1 %3312 }
0x1d16   :  { %6002 = vrcp.f32 %v3313_v15 }
0x1d17   :  { %6004 = vrcp.f32 %v3316_v16 }
0x1d19   :  { %v3319_v17 = vpop.xlane.xlu1 %3318 }
0x1d1a   :  { %6006 = vrcp.f32 %v3319_v17 }
0x1d1d   :  { %v5784_v18 = vpop.permute.xlu1 %5783  ;;  %v3322_v39 = vpop.xlane.xlu0 %3321 }
0x1d1e   :  { %v5786_v43 = vunpack.i.h.bf16 %v5784_v18  ;;  %v5785_v34 = vunpack.i.l.bf16 %v5784_v18  ;;  %6008 = vrcp.f32 %v3322_v39 }
0x1d20   :  { %v6003_v42 = vpop.eup %6002  ;;  %v5494_v37 = vpack.c.bf16 %v5786_v43, %v5785_v34 }
0x1d21   :  { %v5794_v48 = vpop.permute.xlu1 %5793  ;;  %v5789_v5 = vpop.permute.xlu0 %5788  ;;  %v3327_v4 = vmul.f32 %v6003_v42, %v5997_v23 }
0x1d22   :  { %v5796_v57 = vunpack.i.h.bf16 %v5794_v48  ;;  %v5795_v54 = vunpack.i.l.bf16 %v5794_v48  ;;  %v5791_v6 = vunpack.i.h.bf16 %v5789_v5  ;;  %v5790_v30 = vunpack.i.l.bf16 %v5789_v5  ;;  %5495 = vmatprep.subr.bf16.mxu1 %v5494_v37  ;;  %v6005_v8 = vpop.eup %6004 }
0x1d23   :  { %5497 = vmatpush3.bf16.msra.mxu1 %v5494_v37  ;;  %5185 = vmatprep.mubr.msk.f32.mxu1 %vm7268_vm4, %v3327_v4  ;;  %v3328_v62 = vmul.f32 %v6005_v8, %v5995_v24  ;;  %vm7280_vm4 = vmmov %vm7253_vm1 }
0x1d24   :  { %v5502_v36 = vpack.c.bf16 %v5796_v57, %v5795_v54  ;;  %v5498_v7 = vpack.c.bf16 %v5791_v6, %v5790_v30  ;;  %v6007_v56 = vpop.eup %6006 }
0x1d25   :  { %v5799_v9 = vpop.permute.xlu1 %5798  ;;  %v3329_v60 = vmul.f32 %v6007_v56, %v5999_v38  ;;  %v3445_v45 = vpop.permute.xlu0 %3444 }
0x1d26   :  { %v5801_v12 = vunpack.i.h.bf16 %v5799_v9  ;;  %v5800_v32 = vunpack.i.l.bf16 %v5799_v9  ;;  %5499 = vmatprep.subr.bf16.mxu1 %v5498_v7  ;;  %v3488_v28 = vsel %vm7260_vm6, %v6788_v53, %v3445_v45  ;;  %vm7284_vm6 = vmmov %vm7253_vm1 }
0x1d27   :  { %5501 = vmatpush3.bf16.msra.mxu1 %v5498_v7 }
0x1d28   :  { %v5506_v31 = vpack.c.bf16 %v5801_v12, %v5800_v32  ;;  %5503 = vmatprep.subr.bf16.mxu1 %v5502_v36  ;;  %v6009_v13 = vpop.eup %6008 }
0x1d29   :  { %v3330_v14 = vmul.f32 %v6009_v13, %v6001_v52  ;;  %v3447_v33 = vpop.permute.xlu1 %3446  ;;  %v3461_v44 = vpop.permute.xlu0 %3460 }
0x1d2a   :  { %5186 = vmatmul.mubr.msk.f32.vlgmr.msra.gmra.mrb[44].mxu1 %vm7269_vm8, %v3328_v62  ;;  %v3489_v38 = vsel %vm7272_vm7, %v6786_v35, %v3447_v33  ;;  %v3492_v41 = vsel %vm1724_vm9, %v3488_v28, %v3461_v44  ;;  %vm7281_vm8 = vmmov %vm7253_vm1 }
0x1d2b   :  { %5188 = vmatprep.mubr.msk.f32.mxu1 %vm7270_vm5, %v3329_v60  ;;  %5505 = vmatpush3.bf16.msra.mxu1 %v5502_v36  ;;  %vm7282_vm5 = vmmov %vm7253_vm1 }
0x1d2c   :  { %5507 = vmatprep.subr.bf16.mxu1 %v5506_v31  ;;  %vm7285_vm7 = vmmov %vm7253_vm1 }
0x1d2d   :  { %v3463_v21 = vpop.permute.xlu1 %3462  ;;  %v3449_v25 = vpop.permute.xlu0 %3448 }
0x1d2e   :  { %5189 = vmatmul.mubr.msk.f32.gmra.mrb[46].mxu1 %vm7271_vm14, %v3330_v14  ;;  %v3493_v0 = vsel %vm1724_vm9, %v3489_v38, %v3463_v21  ;;  %v3490_v16 = vsel %vm7274_vm12, %v6792_v46, %v3449_v25  ;;  %v4587_v46 = vld [vmem:[#allocation6 + $0xb] ss:$0 sm:$0xff]  ;;  %vm7283_vm14 = vmmov %vm7253_vm1 }
0x1d2f   :  { %5509 = vmatpush3.bf16.msra.mxu1 %v5506_v31  ;;  %v82_v38 = vld [vmem:[%s7114_s4 + $0x78] sm:$0xff]  ;;  %vm7287_vm12 = vmmov %vm7253_vm1 }
0x1d31   :  { %v3451_v22 = vpop.permute.xlu1 %3450  ;;  %v3465_v23 = vpop.permute.xlu0 %3464 }
0x1d32   :  { %v3491_v35 = vsel %vm7276_vm15, %v6790_v26, %v3451_v22  ;;  %v3494_v17 = vsel %vm1724_vm9, %v3490_v16, %v3465_v23  ;;  %v74_v23 = vld [vmem:[%s7114_s4 + $0x38] sm:$0xff]  ;;  %vm7289_vm15 = vmmov %vm7253_vm1 }
0x1d33   :  { %v6045_v16 = vld [vmem:[#allocation4 + $0x28] sm:$0xff] }
0x1d35   :  { %v3467_v24 = vpop.permute.xlu1 %3466 }
0x1d36   :  { %v3495_v39 = vsel %vm1724_vm9, %v3491_v35, %v3467_v24  ;;  %v70_v24 = vld [vmem:[%s7114_s4 + $0x18] sm:$0xff]  ;;  %v6046_v35 = vld [vmem:[#allocation4 + $0x10] sm:$0xff] }
0x1d37   :  { %v6987_v28 = vpack.i.bf16 %v74_v23, %v70_v24 }
0x1dfd   :  { %v5187_v51 = vpop.f32.mrb[44].mxu1 }
0x1dfe   :  { %3478 = vrot.lane.b32.xlu1 %v5187_v51, %s6143_s26  ;;  %v3421_v50 = vpop.f32.mrb[45].mxu1 }
0x1dff   :  { %3476 = vrot.lane.b32.xlu0 %v3421_v50, %s6143_s26 }
0x1e01   :  { %v5190_v55 = vpop.f32.mrb[46].mxu1 }
0x1e02   :  { %3482 = vrot.lane.b32.xlu1 %v5190_v55, %s6143_s26  ;;  %v3431_v63 = vpop.f32.mrb[47].mxu1 }
0x1e03   :  { %3480 = vrot.lane.b32.xlu0 %v3431_v63, %s6143_s26 }
0x1e70   :  { %v3479_v1 = vpop.permute.xlu1 %3478 }
0x1e71   :  { %v3477_v52 = vpop.permute.xlu0 %3476  ;;  %v3497_v15 = vsel %vm1729_vm11, %v3493_v0, %v3479_v1  ;;  %v78_v1 = vld [vmem:[%s7114_s4 + $0x58] sm:$0xff] }
0x1e72   :  { %v3496_v29 = vsel %vm1729_vm11, %v3492_v41, %v3477_v52  ;;  %v6997_v41 = vpack.i.bf16 %v82_v38, %v78_v1  ;;  %v6042_v52 = vld [vmem:[#allocation4] sm:$0xff]  ;;  %v6043_v0 = vld [vmem:[#allocation4 + $0x8] sm:$0xff] }
0x1e73   :  { %5199 = vmatprep.mubr.msk.f32.mxu1 %vm7273_vm10, %v3496_v29  ;;  %v7001_v29 = vpack.i.bf16 %v6043_v0, %v6042_v52  ;;  %vm7286_vm10 = vmmov %vm7253_vm1 }
0x1e74   :  { %5200 = vmatmul.mubr.msk.f32.vlgmr.msra.gmra.mrb[48].mxu1 %vm7275_vm13, %v3497_v15  ;;  %v3483_v53 = vpop.permute.xlu1 %3482  ;;  %v6044_v15 = vld [vmem:[#allocation4 + $0x20] sm:$0xff]  ;;  %vm7288_vm13 = vmmov %vm7253_vm1 }
0x1e75   :  { %v3481_v18 = vpop.permute.xlu0 %3480  ;;  %v3499_v34 = vsel %vm1729_vm11, %v3495_v39, %v3483_v53  ;;  %v7003_v53 = vpack.i.bf16 %v6045_v16, %v6044_v15  ;;  %v6048_v39 = vld [vmem:[#allocation4 + $0x30] sm:$0xff] }
0x1e76   :  { %v3498_v43 = vsel %vm1729_vm11, %v3494_v17, %v3481_v18  ;;  %vm7279_vm11 = vmmov %vm7253_vm1  ;;  %v6047_v17 = vld [vmem:[#allocation4 + $0x18] sm:$0xff] }
0x1e77   :  { %5202 = vmatprep.mubr.msk.f32.mxu1 %vm7253_vm1, %v3498_v43  ;;  %v7007_v18 = vpack.i.bf16 %v6047_v17, %v6046_v35  ;;  %v6049_v43 = vld [vmem:[#allocation4 + $0x38] sm:$0xff] }
0x1e78   :  { %5203 = vmatmul.mubr.msk.f32.gmra.mrb[50].mxu1 %vm7277_vm2, %v3499_v34  ;;  %v7013_v34 = vpack.i.bf16 %v6049_v43, %v6048_v39  ;;  %vm7290_vm2 = vmmov %vm7253_vm1 }
0x1f47   :  { %v5201_v42 = vpop.f32.mrb[48].mxu1 }
0x1f48   :  { %v3604_v37 = vadd.f32 %v5201_v42, %v4587_v46  ;;  %v3598_v48 = vpop.f32.mrb[49].mxu1 }
0x1f49   :  { %v3599_v5 = vadd.f32 %v4587_v46, %v3598_v48 }
0x1f4a   :  { %v3618_v26 = vadd.f32 %v3604_v37, %v6693_v2 }
0x1f4b   :  { %v3617_v4 = vadd.f32 %v3599_v5, %v6674_v59  ;;  %v5204_v57 = vpop.f32.mrb[50].mxu1 }
0x1f4c   :  { %v3608_v54 = vpop.f32.mrb[51].mxu1  ;;  %v3624_v6 = vsel %vm7278_vm3, %v3618_v26, 0.0  ;;  %v3614_v30 = vadd.f32 %v5204_v57, %v4587_v46  ;;  %vm7291_vm3 = vmmov %vm7253_vm1 }
0x1f4d   :  { %v3609_v36 = vadd.f32 %v4587_v46, %v3608_v54  ;;  %3625 = vadd.xlane.f32.xlu1 %v3624_v6  ;;  %v3621_v7 = vsel %vm7279_vm11, %v3617_v4, 0.0  ;;  %vm7292_vm11 = vmmov %vm7253_vm1 }
0x1f4e   :  { %3622 = vadd.xlane.f32.xlu0 %v3621_v7  ;;  %v3620_v9 = vadd.f32 %v3614_v30, %v6700_v47 }
0x1f4f   :  { %v3619_v8 = vadd.f32 %v3609_v36, %v6698_v49 }
0x1f50   :  { %v3630_v2 = vsel %vm7281_vm8, %v3620_v9, 0.0  ;;  %vm7294_vm8 = vmmov %vm7253_vm1 }
0x1f51   :  { %v3627_v56 = vsel %vm7280_vm4, %v3619_v8, 0.0  ;;  %vm7293_vm4 = vmmov %vm7253_vm1 }
0x1f52   :  { %3628 = vadd.xlane.f32.xlu0 %v3627_v56 }
0x1f56   :  { %3631 = vadd.xlane.f32.xlu0 %v3630_v2 }
0x1fda   :  { %v3626_v59 = vpop.xlane.xlu1 %3625 }
0x1fdb   :  { %v3634_v12 = vmul.f32 0.03125, %v3626_v59  ;;  %v3623_v32 = vpop.xlane.xlu0 %3622 }
0x1fdc   :  { %v3633_v62 = vmul.f32 0.03125, %v3623_v32 }
0x1fdd   :  { %v6961_v31 = vsub.f32 %v3618_v26, %v3634_v12 }
0x1fde   :  { %v6963_v13 = vsub.f32 %v3617_v4, %v3633_v62 }
0x1fdf   :  { %v3629_v60 = vpop.xlane.xlu0 %3628  ;;  %v3642_v49 = vmul.f32 %v6961_v31, %v6961_v31 }
0x1fe0   :  { %v3635_v14 = vmul.f32 0.03125, %v3629_v60  ;;  %v3641_v47 = vmul.f32 %v6963_v13, %v6963_v13 }
0x1fe1   :  { %v3648_v51 = vsel %vm7282_vm5, %v3642_v49, 0.0  ;;  %v4592_v49 = vld [vmem:[#allocation6 + $0xe] ss:$0 sm:$0xff]  ;;  %vm7295_vm5 = vmmov %vm7253_vm1 }
0x1fe2   :  { %v6970_v50 = vsub.f32 %v3619_v8, %v3635_v14  ;;  %3649 = vadd.xlane.f32.xlu0 %v3648_v51  ;;  %v3645_v55 = vsel %vm7283_vm14, %v3641_v47, 0.0  ;;  %vm7296_vm14 = vmmov %vm7253_vm1 }
0x1fe3   :  { %3646 = vadd.xlane.f32.xlu1 %v3645_v55  ;;  %v3632_v63 = vpop.xlane.xlu0 %3631  ;;  %v4593_v55 = vld [vmem:[#allocation6 + $0xf] ss:$0 sm:$0xff] }
0x1fe4   :  { %v3636_v33 = vmul.f32 0.03125, %v3632_v63  ;;  %v3643_v45 = vmul.f32 %v6970_v50, %v6970_v50 }
0x1fe6   :  { %v6975_v21 = vsub.f32 %v3620_v9, %v3636_v33  ;;  %v3651_v44 = vsel %vm7284_vm6, %v3643_v45, 0.0  ;;  %vm7297_vm6 = vmmov %vm7253_vm1 }
0x1fe7   :  { %3652 = vadd.xlane.f32.xlu1 %v3651_v44 }
0x1fe8   :  { %v3644_v22 = vmul.f32 %v6975_v21, %v6975_v21 }
0x1fea   :  { %v3654_v25 = vsel %vm7285_vm7, %v3644_v22, 0.0  ;;  %vm7298_vm7 = vmmov %vm7253_vm1 }
0x1feb   :  { %3655 = vadd.xlane.f32.xlu0 %v3654_v25 }
0x1ff8   :  { %5803 = vrot.lane.b32.xlu1 %v6987_v28, %s6144_s3 }
0x1ffc   :  { %5813 = vrot.lane.b32.xlu1 %v7001_v29, %s6131_s9 }
0x2000   :  { %5818 = vrot.lane.b32.xlu1 %v7007_v18, %s6131_s9 }
0x2001   :  { %5808 = vrot.lane.b32.xlu0 %v6997_v41, %s6144_s3 }
0x2004   :  { %5828 = vrot.lane.b32.xlu1 %v7013_v34, %s6131_s9 }
0x2005   :  { %5823 = vrot.lane.b32.xlu0 %v7003_v53, %s6131_s9 }
0x206f   :  { %v3650_v46 = vpop.xlane.xlu0 %3649 }
0x2070   :  { %v3658_v42 = vmul.f32 0.03125, %v3650_v46  ;;  %v3647_v37 = vpop.xlane.xlu1 %3646 }
0x2071   :  { %v3657_v48 = vmul.f32 0.03125, %v3647_v37 }
0x2072   :  { %v3662_v5 = vadd.f32 1e-05, %v3658_v42 }
0x2073   :  { %v3661_v26 = vadd.f32 1e-05, %v3657_v48 }
0x2074   :  { %6010 = vrsqrt.f32 %v3662_v5  ;;  %v3653_v4 = vpop.xlane.xlu1 %3652 }
0x2075   :  { %6012 = vrsqrt.f32 %v3661_v26  ;;  %v3659_v57 = vmul.f32 0.03125, %v3653_v4 }
0x2077   :  { %v3663_v54 = vadd.f32 1e-05, %v3659_v57 }
0x2078   :  { %v5804_v6 = vpop.permute.xlu1 %5803  ;;  %v3656_v30 = vpop.xlane.xlu0 %3655 }
0x2079   :  { %6014 = vrsqrt.f32 %v3663_v54  ;;  %v5806_v36 = vunpack.i.h.bf16 %v5804_v6  ;;  %v5805_v7 = vunpack.i.l.bf16 %v5804_v6  ;;  %v3660_v8 = vmul.f32 0.03125, %v3656_v30 }
0x207b   :  { %v3664_v9 = vadd.f32 1e-05, %v3660_v8  ;;  %v3717_v56 = vsel %vm7286_vm10, %v5696_v58, %v5805_v7  ;;  %v3718_v2 = vsel %vm7287_vm12, %v5701_v3, %v5806_v36 }
0x207c   :  { %v5809_v59 = vpop.permute.xlu0 %5808  ;;  %v5510_v12 = vpack.c.bf16 %v3718_v2, %v3717_v56  ;;  %v5814_v33 = vpop.permute.xlu1 %5813 }
0x207d   :  { %6016 = vrsqrt.f32 %v3664_v9  ;;  %v5811_v32 = vunpack.i.h.bf16 %v5809_v59  ;;  %v5810_v62 = vunpack.i.l.bf16 %v5809_v59  ;;  %v5815_v22 = vunpack.i.l.bf16 %v5814_v33  ;;  %v4599_v9 = vld [vmem:[#allocation6 + $0xd] ss:$0 sm:$0xff] }
0x207e   :  { %v6011_v60 = vpop.eup %6010  ;;  %5511 = vmatprep.subr.bf16.mxu0 %v5510_v12 }
0x207f   :  { %v6013_v14 = vpop.eup %6012  ;;  %v3670_v47 = vmul.f32 %v6011_v60, %v6961_v31  ;;  %5513 = vmatpush3.bf16.msra.mxu0 %v5510_v12  ;;  %v3719_v40 = vsel %vm7288_vm13, %v5706_v61, %v5810_v62  ;;  %v3720_v58 = vsel %vm7289_vm15, %v5711_v20, %v5811_v32  ;;  %v5816_v31 = vunpack.i.h.bf16 %v5814_v33 }
0x2080   :  { %v5514_v27 = vpack.c.bf16 %v3720_v58, %v3719_v40  ;;  %v3669_v3 = vmul.f32 %v6013_v14, %v6963_v13  ;;  %v5824_v45 = vpop.permute.xlu0 %5823  ;;  %v5819_v23 = vpop.permute.xlu1 %5818  ;;  %vm4241_vm15 = vcmask 15360  }
0x2081   :  { %v3682_v51 = vmul.f32 %v4592_v49, %v3670_v47  ;;  %v5518_v19 = vpack.c.bf16 %v5816_v31, %v5815_v22  ;;  %v5826_v24 = vunpack.i.h.bf16 %v5824_v45  ;;  %v5825_v20 = vunpack.i.l.bf16 %v5824_v45 }
0x2082   :  { %5515 = vmatprep.subr.bf16.mxu0 %v5514_v27  ;;  %v3681_v63 = vmul.f32 %v4592_v49, %v3669_v3  ;;  %v5821_v38 = vunpack.i.h.bf16 %v5819_v23  ;;  %v5820_v52 = vunpack.i.l.bf16 %v5819_v23 }
0x2083   :  { %v6015_v44 = vpop.eup %6014  ;;  %5517 = vmatpush3.bf16.msra.mxu0 %v5514_v27  ;;  %v3694_v25 = vadd.f32 %v4593_v55, %v3682_v51  ;;  %5519 = vmatprep.subr.bf16.mxu1 %v5518_v19 }
0x2084   :  { %v3693_v10 = vadd.f32 %v4593_v55, %v3681_v63  ;;  %v3671_v61 = vmul.f32 %v6015_v44, %v6970_v50  ;;  %5521 = vmatpush3.bf16.msra.mxu1 %v5518_v19  ;;  %v5522_v16 = vpack.c.bf16 %v5821_v38, %v5820_v52  ;;  %v5526_v50 = vpack.c.bf16 %v5826_v24, %v5825_v20  ;;  %v5829_v17 = vpop.permute.xlu1 %5828 }
0x2085   :  { %v5831_v39 = vunpack.i.h.bf16 %v5829_v17  ;;  %v5830_v43 = vunpack.i.l.bf16 %v5829_v17 }
0x2086   :  { %5213 = vmatprep.mubr.msk.f32.mxu0 %vm7253_vm1, %v3693_v10  ;;  %v3683_v13 = vmul.f32 %v4592_v49, %v3671_v61  ;;  %5523 = vmatprep.subr.bf16.mxu1 %v5522_v16 }
0x2087   :  { %v6017_v1 = vpop.eup %6016  ;;  %5214 = vmatmul.mubr.msk.f32.vlgmr.msra.gmra.mrb[46].mxu0 %vm7290_vm2, %v3694_v25  ;;  %v5530_v42 = vpack.c.bf16 %v5831_v39, %v5830_v43 }
0x2088   :  { %v3695_v0 = vadd.f32 %v4593_v55, %v3683_v13  ;;  %v3672_v15 = vmul.f32 %v6017_v1, %v6975_v21  ;;  %5525 = vmatpush3.bf16.msra.mxu1 %v5522_v16  ;;  %v4594_v21 = vld [vmem:[#allocation6 + $0xc] ss:$0 sm:$0xff] }
0x2089   :  { %5527 = vmatprep.subr.bf16.mxu1 %v5526_v50 }
0x208a   :  { %5216 = vmatprep.mubr.msk.f32.mxu0 %vm7291_vm3, %v3695_v0  ;;  %v3684_v35 = vmul.f32 %v4592_v49, %v3672_v15 }
0x208c   :  { %v3696_v46 = vadd.f32 %v4593_v55, %v3684_v35  ;;  %5529 = vmatpush3.bf16.msra.mxu1 %v5526_v50 }
0x208d   :  { %5531 = vmatprep.subr.bf16.mxu1 %v5530_v42 }
0x208e   :  { %5217 = vmatmul.mubr.msk.f32.gmra.mrb[48].mxu0 %vm7292_vm11, %v3696_v46 }
0x2090   :  { %5533 = vmatpush3.bf16.msra.mxu1 %v5530_v42 }
0x215a   :  { %v5215_v37 = vpop.f32.mrb[46].mxu0 }
0x215b   :  { %v3809_v48 = vadd.f32 %v5215_v37, %v4594_v21  ;;  %v3803_v5 = vpop.f32.mrb[47].mxu0 }
0x215c   :  { %v3804_v26 = vadd.f32 %v4594_v21, %v3803_v5 }
0x215d   :  { %v3823_v57 = vmax.f32 %v3809_v48, 0.0 }
0x215e   :  { %v3822_v4 = vmax.f32 %v3804_v26, 0.0 }
0x2160   :  { %5235 = vmatprep.mubr.msk.f32.mxu1 %vm2053_vm0, %v3822_v4 }
0x2161   :  { %v5218_v54 = vpop.f32.mrb[48].mxu0  ;;  %5236 = vmatmul.mubr.msk.f32.vlgmr.msra.gmra.mrb[52].mxu1 %vm2053_vm0, %v3823_v57 }
0x2162   :  { %v3819_v6 = vadd.f32 %v5218_v54, %v4594_v21  ;;  %v3813_v30 = vpop.f32.mrb[49].mxu0 }
0x2163   :  { %v3814_v36 = vadd.f32 %v4594_v21, %v3813_v30 }
0x2164   :  { %v3825_v8 = vmax.f32 %v3819_v6, 0.0 }
0x2165   :  { %v3824_v7 = vmax.f32 %v3814_v36, 0.0 }
0x2167   :  { %5238 = vmatprep.mubr.msk.f32.mxu1 %vm2053_vm0, %v3824_v7  ;;  %v7062_v7 = vld [vmem:[%s7111_s1 + $0x8] sm:$0xff] }
0x2168   :  { %5239 = vmatmul.mubr.msk.f32.gmra.mrb[54].mxu1 %vm2053_vm0, %v3825_v8  ;;  %v7067_v8 = vld [vmem:[%s7111_s1] sm:$0xff]  ;;  %vm4228_vm10 = vcmp.gt.f32.partialorder %v7062_v7, 0.0  ;;  %s6147_s1 = smov 126  }
0x2169   :  { %vm4227_vm12 = vcmp.gt.f32.partialorder %v7067_v8, 0.0 }
0x2234   :  { %v5237_v56 = vpop.f32.mrb[52].mxu1 }
0x2235   :  { %v3949_v2 = vadd.f32 %v5237_v56, %v4599_v9  ;;  %v3944_v59 = vpop.f32.mrb[53].mxu1  ;;  %v4230_v56 = vsel %vm4228_vm10, 1, %v6132_v11 }
0x2236   :  { %v4606_v59 = vld [vmem:[#allocation6 + $0x12] ss:$0 sm:$0xff] }
0x2237   :  { %v3961_v12 = vadd.f32 %v3949_v2, %v3694_v25  ;;  %v4229_v2 = vsel %vm4227_vm12, 1, %v6132_v11 }
0x2239   :  { %v3963_v32 = vsel %vm7293_vm4, %v3961_v12, 0.0 }
0x223a   :  { %3964 = vadd.xlane.f32.xlu0 %v3963_v32 }
0x223b   :  { %v5240_v62 = vpop.f32.mrb[54].mxu1 }
0x223c   :  { %v3958_v60 = vadd.f32 %v5240_v62, %v4599_v9  ;;  %v3953_v49 = vpop.f32.mrb[55].mxu1  ;;  %v6145_v9 = vmov 2  }
0x223d   :  { %5863 = vset.pattern.permute.xlu1 %v6145_v9  ;;  %5862 = vset.pattern.permute.xlu0 %v6145_v9 }
0x223e   :  { %v3962_v14 = vadd.f32 %v3958_v60, %v3696_v46 }
0x2240   :  { %v3966_v47 = vsel %vm7294_vm8, %v3962_v14, 0.0 }
0x2241   :  { %3967 = vadd.xlane.f32.xlu1 %v3966_v47  ;;  %v6146_v47 = vmov 3  }
0x2252   :  { %5833 = vrot.lane.b32.xlu1 %v6987_v28, %s6131_s9 }
0x2256   :  { %5843 = vrot.lane.b32.xlu1 %v7001_v29, %s6133_s10 }
0x225a   :  { %5848 = vrot.lane.b32.xlu1 %v7007_v18, %s6133_s10  ;;  %v4605_v18 = vld [vmem:[#allocation6 + $0x11] ss:$0 sm:$0xff] }
0x225e   :  { %5858 = vrot.lane.b32.xlu1 %v7013_v34, %s6133_s10 }
0x2262   :  { %4235 = vperm.xlu1 %5863, %v4230_v56  }
0x2266   :  { %5864 = vset.pattern.permute.xlu1 %v6146_v47 }
0x22c7   :  { %v3965_v40 = vpop.xlane.xlu0 %3964 }
0x22c8   :  { %v3969_v58 = vmul.f32 0.03125, %v3965_v40  ;;  %v4259_v40 = vld [vmem:[#allocation2] sm:$0xff] }
0x22ca   :  { %v3971_v27 = vsub.f32 %v3961_v12, %v3969_v58  ;;  %v4609_v58 = vld [vmem:[#allocation6 + $0x13] ss:$0 sm:$0xff] }
0x22cc   :  { %v3973_v3 = vmul.f32 %v3971_v27, %v3971_v27 }
0x22ce   :  { %v3968_v51 = vpop.xlane.xlu1 %3967  ;;  %v3975_v55 = vsel %vm7295_vm5, %v3973_v3, 0.0 }
0x22cf   :  { %v3970_v63 = vmul.f32 0.03125, %v3968_v51  ;;  %3976 = vadd.xlane.f32.xlu0 %v3975_v55 }
0x22d1   :  { %v3972_v33 = vsub.f32 %v3962_v14, %v3970_v63 }
0x22d2   :  { %v5834_v31 = vpop.permute.xlu1 %5833 }
0x22d3   :  { %v3974_v45 = vmul.f32 %v3972_v33, %v3972_v33  ;;  %v5836_v22 = vunpack.i.h.bf16 %v5834_v31  ;;  %v5835_v28 = vunpack.i.l.bf16 %v5834_v31 }
0x22d5   :  { %v3978_v44 = vsel %vm7296_vm14, %v3974_v45, 0.0  ;;  %v5534_v10 = vpack.c.bf16 %v5836_v22, %v5835_v28 }
0x22d6   :  { %3979 = vadd.xlane.f32.xlu0 %v3978_v44  ;;  %v5844_v0 = vpop.permute.xlu1 %5843 }
0x22d7   :  { %5535 = vmatprep.subr.bf16.mxu1 %v5534_v10  ;;  %v5846_v16 = vunpack.i.h.bf16 %v5844_v0  ;;  %v5845_v50 = vunpack.i.l.bf16 %v5844_v0 }
0x22d8   :  { %5537 = vmatpush3.bf16.msra.mxu1 %v5534_v10 }
0x22d9   :  { %v5542_v17 = vpack.c.bf16 %v5846_v16, %v5845_v50 }
0x22da   :  { %v5849_v46 = vpop.permute.xlu1 %5848 }
0x22db   :  { %v5851_v21 = vunpack.i.h.bf16 %v5849_v46  ;;  %v5850_v37 = vunpack.i.l.bf16 %v5849_v46  ;;  %5543 = vmatprep.subr.bf16.mxu0 %v5542_v17 }
0x22dc   :  { %5545 = vmatpush3.bf16.msra.mxu0 %v5542_v17 }
0x22dd   :  { %v5546_v5 = vpack.c.bf16 %v5851_v21, %v5850_v37  ;;  %v4260_v37 = vld [vmem:[#allocation2 + $0x8] sm:$0xff] }
0x22de   :  { %v5859_v57 = vpop.permute.xlu1 %5858 }
0x22df   :  { %5547 = vmatprep.subr.bf16.mxu0 %v5546_v5  ;;  %v5861_v54 = vunpack.i.h.bf16 %v5859_v57  ;;  %v5860_v6 = vunpack.i.l.bf16 %v5859_v57 }
0x22e0   :  { %5549 = vmatpush3.bf16.msra.mxu0 %v5546_v5 }
0x22e1   :  { %v5554_v36 = vpack.c.bf16 %v5861_v54, %v5860_v6 }
0x22e2   :  { %v7076_v11 = vpop.permute.xlu1 %4235 }
0x22e3   :  { %vm4238_vm13 = vcmp.eq.s32.totalorder %v7076_v11, 1 }
0x22ec   :  { %5838 = vrot.lane.b32.xlu0 %v6997_v41, %s6131_s9 }
0x22f0   :  { %5853 = vrot.lane.b32.xlu0 %v7003_v53, %s6133_s10  ;;  %v4604_v53 = vld [vmem:[#allocation6 + $0x10] ss:$0 sm:$0xff] }
0x22f4   :  { %4232 = vperm.xlu0 %5862, %v4229_v2  }
0x22f8   :  { %5865 = vset.pattern.permute.xlu0 %v6146_v47 }
0x235c   :  { %v3977_v61 = vpop.xlane.xlu0 %3976 }
0x235d   :  { %v3981_v41 = vmul.f32 0.03125, %v3977_v61 }
0x235f   :  { %v3983_v25 = vadd.f32 1e-05, %v3981_v41 }
0x2361   :  { %6018 = vrsqrt.f32 %v3983_v25 }
0x2363   :  { %v3980_v19 = vpop.xlane.xlu0 %3979 }
0x2364   :  { %v3982_v24 = vmul.f32 0.03125, %v3980_v19 }
0x2366   :  { %v3984_v20 = vadd.f32 1e-05, %v3982_v24 }
0x2367   :  { %v5839_v13 = vpop.permute.xlu0 %5838 }
0x2368   :  { %6020 = vrsqrt.f32 %v3984_v20  ;;  %v5841_v23 = vunpack.i.h.bf16 %v5839_v13  ;;  %v5840_v29 = vunpack.i.l.bf16 %v5839_v13 }
0x236a   :  { %v5538_v1 = vpack.c.bf16 %v5841_v23, %v5840_v29 }
0x236b   :  { %v6019_v38 = vpop.eup %6018  ;;  %v5854_v34 = vpop.permute.xlu0 %5853 }
0x236c   :  { %v3987_v52 = vmul.f32 %v6019_v38, %v3971_v27  ;;  %5539 = vmatprep.subr.bf16.mxu1 %v5538_v1  ;;  %v5856_v39 = vunpack.i.h.bf16 %v5854_v34  ;;  %v5855_v43 = vunpack.i.l.bf16 %v5854_v34 }
0x236d   :  { %5541 = vmatpush3.bf16.msra.mxu1 %v5538_v1 }
0x236e   :  { %v3997_v15 = vmul.f32 %v4604_v53, %v3987_v52  ;;  %v5550_v26 = vpack.c.bf16 %v5856_v39, %v5855_v43 }
0x2370   :  { %v4007_v35 = vadd.f32 %v4605_v18, %v3997_v15  ;;  %5551 = vmatprep.subr.bf16.mxu0 %v5550_v26 }
0x2371   :  { %5553 = vmatpush3.bf16.msra.mxu0 %v5550_v26 }
0x2372   :  { %v6021_v42 = vpop.eup %6020  ;;  %5249 = vmatprep.mubr.msk.f32.mxu1 %vm7297_vm6, %v4007_v35  ;;  %5555 = vmatprep.subr.bf16.mxu0 %v5554_v36 }
0x2373   :  { %v3988_v48 = vmul.f32 %v6021_v42, %v3972_v33  ;;  %v7078_v27 = vpop.permute.xlu0 %4232 }
0x2374   :  { %vm4237_vm1 = vcmp.eq.s32.totalorder %v7078_v27, 1 }
0x2375   :  { %v3998_v4 = vmul.f32 %v4604_v53, %v3988_v48  ;;  %5557 = vmatpush3.bf16.msra.mxu0 %v5554_v36  ;;  %vm5559_vm5 = vmpackc.low %vm4238_vm13, %vm4237_vm1 }
0x2377   :  { %v4008_v30 = vadd.f32 %v4605_v18, %v3998_v4 }
0x2379   :  { %5250 = vmatmul.mubr.msk.f32.vlgmr.msra.gmra.mrb[56].mxu1 %vm7298_vm7, %v4008_v30 }
0x237a   :  { %5275 = vmatprep.mubr.msk.f32.mxu1 %vm1724_vm9, %v4259_v40 }
0x244c   :  { %v5251_v12 = vpop.f32.mrb[56].mxu1 }
0x244d   :  { %v4107_v32 = vadd.f32 %v5251_v12, %v4606_v59  ;;  %v4101_v62 = vpop.f32.mrb[57].mxu1 }
0x244e   :  { %v4102_v60 = vadd.f32 %v4606_v59, %v4101_v62 }
0x244f   :  { %v4111_v14 = vmax.f32 %v4107_v32, 0.0 }
0x2450   :  { %v4110_v49 = vmax.f32 %v4102_v60, 0.0 }
0x2452   :  { %5268 = vmatprep.mubr.msk.f32.mxu0 %vm2053_vm0, %v4110_v49 }
0x2453   :  { %5269 = vmatmul.mubr.msk.f32.vlgmr.msra.gmra.mrb[50].mxu0 %vm2053_vm0, %v4111_v14 }
0x2526   :  { %v5270_v3 = vpop.f32.mrb[50].mxu0 }
0x2527   :  { %v4222_v51 = vadd.f32 %v5270_v3, %v4609_v58  ;;  %v4216_v55 = vpop.f32.mrb[51].mxu0 }
0x2528   :  { %v4217_v63 = vadd.f32 %v4609_v58, %v4216_v55 }
0x2529   :  { %v4364_v33 = vmul.f32 1.442695, %v4222_v51  ;;  %v4240_v45 = vsel %vm4238_vm13, %v4222_v51, -1e+30 }
0x252a   :  { %v4243_v44 = vsel %vm4241_vm15, %v4240_v45, -inf  ;;  %v4362_v31 = vmul.f32 1.442695, %v4217_v63  ;;  %v4239_v22 = vsel %vm4237_vm1, %v4217_v63, -1e+30 }
0x252b   :  { %6022 = vpow2.f32 %v4364_v33  ;;  %v4242_v28 = vsel %vm4241_vm15, %v4239_v22, -inf }
0x252c   :  { %6024 = vpow2.f32 %v4362_v31  ;;  %v4244_v10 = vmax.f32 %v4242_v28, %v4243_v44 }
0x252e   :  { %v4245_v61 = vrot.slane %v4244_v10, 4 }
0x2530   :  { %v4246_v41 = vmax.f32 %v4244_v10, %v4245_v61 }
0x2532   :  { %v4247_v25 = vrot.slane %v4246_v41, 2 }
0x2534   :  { %v4248_v19 = vmax.f32 %v4246_v41, %v4247_v25 }
0x2535   :  { %v6023_v24 = vpop.eup %6022 }
0x2536   :  { %v6025_v20 = vpop.eup %6024  ;;  %v4249_v13 = vrot.slane %v4248_v19, 1  ;;  %vm4367_vm0 = vcmp.ne.f32.partialorder %v6023_v24, %v6023_v24 }
0x2537   :  { %v4369_v23 = vsel %vm4367_vm0, 1.0, %v6023_v24  ;;  %vm4366_vm2 = vcmp.ne.f32.partialorder %v6025_v20, %v6025_v20 }
0x2538   :  { %v4250_v29 = vmax.f32 %v4248_v19, %v4249_v13  ;;  %vm4371_vm3 = vcmp.eq.f32.partialorder %v4369_v23, inf  ;;  %v4368_v1 = vsel %vm4366_vm2, 1.0, %v6025_v20 }
0x2539   :  { %v4373_v38 = vsel %vm4371_vm3, 1000000.0, %v4369_v23  ;;  %vm4370_vm11 = vcmp.eq.f32.partialorder %v4368_v1, inf }
0x253a   :  { %v4251_v53 = vsub.f32 %v4239_v22, %v4250_v29  ;;  %v4252_v52 = vsub.f32 %v4240_v45, %v4250_v29  ;;  %vm4375_vm4 = vcmp.eq.f32.partialorder %v4373_v38, -inf  ;;  %v4372_v18 = vsel %vm4370_vm11, 1000000.0, %v4368_v1 }
0x253b   :  { %v4377_v0 = vsel %vm4375_vm4, 1e-06, %v4373_v38  ;;  %vm4374_vm8 = vcmp.eq.f32.partialorder %v4372_v18, -inf }
0x253c   :  { %v4253_v34 = vmul.f32 1.442695, %v4251_v53  ;;  %v4255_v15 = vmul.f32 1.442695, %v4252_v52  ;;  %v4379_v16 = vmax.f32 %v4377_v0, 1e-06 }
0x253d   :  { %v4376_v50 = vsel %vm4374_vm8, 1e-06, %v4372_v18 }
0x253e   :  { %6026 = vpow2.f32 %v4253_v34  ;;  %4386 = vrot.lane.b32.xlu0 %v4379_v16, %s6147_s1  ;;  %v4378_v35 = vmax.f32 %v4376_v50, 1e-06 }
0x253f   :  { %6028 = vpow2.f32 %v4255_v15 }
0x2540   :  { %4384 = vrot.lane.b32.xlu1 %v4378_v35, %s6147_s1  ;;  %6030 = vlog2.f32 %v4378_v35 }
0x2541   :  { %6032 = vlog2.f32 %v4379_v16 }
0x2542   :  { %4421 = vperm.xlu0 %5865, %v7062_v7  }
0x2544   :  { %4416 = vperm.xlu1 %5864, %v7067_v8  }
0x2548   :  { %v6027_v17 = vpop.eup %6026 }
0x2549   :  { %v6029_v39 = vpop.eup %6028  ;;  %v4257_v56 = vsel %vm4237_vm1, %v6027_v17, 0.0 }
0x254a   :  { %v5558_v43 = vpack.c.bf16 %v6029_v39, %v6027_v17  ;;  %v6031_v46 = vpop.eup %6030  ;;  %v4258_v36 = vsel %vm4238_vm13, %v6029_v39, 0.0 }
0x254b   :  { %v4399_v42 = vmul.f32 0.6931472, %v6031_v46  ;;  %v6033_v21 = vpop.eup %6032 }
0x254c   :  { %5560 = vmatprep.subr.msk.bf16.mxu1 %vm5559_vm5, %v5558_v43  ;;  %v4401_v48 = vmul.f32 0.6931472, %v6033_v21 }
0x254d   :  { %5563 = vmatpush3.bf16.msk.msra.mxu1 %vm5559_vm5, %v5558_v43  ;;  %4404 = vrot.lane.b32.xlu1 %v4399_v42, %s6147_s1 }
0x2550   :  { %5276 = vmatmul.mubr.msk.f32.vlgmr.msra.gmra.mrb[58].mxu1 %vm1724_vm9, %v4260_v37 }
0x2551   :  { %4406 = vrot.lane.b32.xlu1 %v4401_v48, %s6147_s1 }
0x25b0   :  { %v4387_v54 = vpop.permute.xlu0 %4386 }
0x25b2   :  { %v4385_v6 = vpop.permute.xlu1 %4384 }
0x25c1   :  { %v4422_v61 = vpop.permute.xlu0 %4421 }
0x25c3   :  { %v4417_v62 = vpop.permute.xlu1 %4416 }
0x25c7   :  { %v4405_v51 = vpop.permute.xlu1 %4404 }
0x25cb   :  { %v4407_v22 = vpop.permute.xlu1 %4406 }
0x2623   :  { %v5277_v5 = vpop.f32.mrb[58].mxu1 }
0x2624   :  { %v4343_v26 = vmax.f32 %v5277_v5, 1e-30  ;;  %v4333_v4 = vpop.f32.mrb[59].mxu1 }
0x2625   :  { %v4342_v57 = vmax.f32 %v4333_v4, 1e-30 }
0x2626   :  { %6034 = vrcp.f32 %v4343_v26 }
0x2627   :  { %6036 = vrcp.f32 %v4342_v57 }
0x2628   :  { %6038 = vrcp.f32 %v4387_v54 }
0x2629   :  { %6040 = vrcp.f32 %v4385_v6 }
0x2630   :  { %v6035_v30 = vpop.eup %6034 }
0x2631   :  { %v6037_v9 = vpop.eup %6036  ;;  %v4347_v2 = vmul.f32 %v6035_v30, %v4258_v36 }
0x2632   :  { %v4345_v59 = vmul.f32 %v6037_v9, %v4257_v56  ;;  %v6039_v11 = vpop.eup %6038 }
0x2633   :  { %v4349_v12 = vsel %vm4238_vm13, %v4347_v2, 0.0  ;;  %v6041_v55 = vpop.eup %6040 }
0x2634   :  { %v4348_v32 = vsel %vm4237_vm1, %v4345_v59, 0.0  ;;  %vm4351_vm9 = vcmp.ne.f32.partialorder %v4349_v12, %v4349_v12 }
0x2635   :  { %vm4350_vm14 = vcmp.ne.f32.partialorder %v4348_v32, %v4348_v32  ;;  %v4353_v60 = vsel %vm4351_vm9, 0.0, %v4349_v12 }
0x2636   :  { %v4352_v49 = vsel %vm4350_vm14, 0.0, %v4348_v32  ;;  %vm4355_vm6 = vcmp.eq.f32.partialorder %v4353_v60, inf }
0x2637   :  { %v4357_v14 = vsel %vm4355_vm6, 1000000.0, %v4353_v60  ;;  %vm4354_vm7 = vcmp.eq.f32.partialorder %v4352_v49, inf }
0x2638   :  { %vm4359_vm10 = vcmp.eq.f32.partialorder %v4357_v14, -inf  ;;  %v4356_v47 = vsel %vm4354_vm7, 1000000.0, %v4352_v49 }
0x2639   :  { %v4361_v40 = vsel %vm4359_vm10, -1000000.0, %v4357_v14  ;;  %vm4358_vm12 = vcmp.eq.f32.partialorder %v4356_v47, -inf }
0x263a   :  { %v4381_v58 = vsub.f32 %v7062_v7, %v4361_v40  ;;  %v4360_v3 = vsel %vm4358_vm12, -1000000.0, %v4356_v47 }
0x263b   :  { %v4380_v27 = vsub.f32 %v7067_v8, %v4360_v3 }
0x263c   :  { %v4393_v63 = vmul.f32 %v6039_v11, %v4381_v58 }
0x263d   :  { %v4391_v33 = vmul.f32 %v6041_v55, %v4380_v27 }
0x263e   :  { %v4395_v45 = vmul.f32 -0.5, %v4393_v63 }
0x263f   :  { %v4394_v44 = vmul.f32 -0.5, %v4391_v33 }
0x2640   :  { %v4397_v31 = vmul.f32 %v4395_v45, %v4393_v63 }
0x2641   :  { %v4396_v28 = vmul.f32 %v4394_v44, %v4391_v33 }
0x2642   :  { %v4411_v10 = vsub.f32 %v4397_v31, %v4407_v22 }
0x2643   :  { %v4410_v41 = vsub.f32 %v4396_v28, %v4405_v51 }
0x2644   :  { %v4617_v25 = vadd.f32 -0.9189385, %v4411_v10 }
0x2645   :  { %v4616_v19 = vadd.f32 -0.9189385, %v4410_v41 }
0x2646   :  { %v4425_v24 = vmul.f32 %v4617_v25, %v4422_v61 }
0x2647   :  { %v4424_v7 = vmul.f32 %v4616_v19, %v4417_v62 }
0x2648   :  { %v4429_v20 = vsel %vm4241_vm15, %v4425_v24, 0.0 }
0x2649   :  { %4430 = vadd.xlane.f32.xlu1 %v4429_v20  ;;  %v4426_v8 = vsel %vm4241_vm15, %v4424_v7, 0.0 }
0x264a   :  { %4427 = vadd.xlane.f32.xlu0 %v4426_v8 }
0x26d6   :  { %v4431_v13 = vpop.xlane.xlu1 %4430 }
0x26d7   :  { %v4428_v23 = vpop.xlane.xlu0 %4427 }
0x26d8   :  { %v4432_v29 = vadd.f32 %v4431_v13, %v4428_v23 }
0x26da   :  { %v4433_v1 = vrot.slane %v4432_v29, 4 }
0x26dc   :  { %v4434_v38 = vadd.f32 %v4433_v1, %v4432_v29 }
0x26de   :  { %v4435_v53 = vrot.slane %v4434_v38, 2 }
0x26e0   :  { %v4436_v52 = vadd.f32 %v4435_v53, %v4434_v38 }
0x26e2   :  { %v4437_v18 = vrot.slane %v4436_v52, 1 }
0x26e4   :  { %v4438_v0 = vadd.f32 %v4437_v18, %v4436_v52 }
0x26e6   :  { %4439 = vst [vmem:[%s7117_s7] sm:$0xff] %v4438_v0 }
0x26e7   :  { %4444 = vsyncpa [#allocation3], 1 }
0x26e8   :  { %4445 = vsyncpa [#allocation5], 1 }

</bundles_post_ra>
